<compile_context>
chip_gen: v7x
topology: tpu7x:2x2x1
jax: 0.10.0
libtpu: 0.0.40
codegen_flags: <defaults>
</compile_context>

<pallas_src>
import math

import jax
import jax.numpy as jnp
import numpy as np
from jax.experimental import pallas as pl
from jax.experimental.pallas import tpu as pltpu


# ----------------------------- helpers -----------------------------
def _pick_row_tile(h, w, target_m=512):
    """Largest divisor of h with tile_rows * w <= target_m (matmul M target)."""
    cap = max(1, target_m // max(w, 1))
    best = 1
    for d in range(1, h + 1):
        if h % d == 0 and d <= cap:
            best = d
    return best


def _collapse_upsample_conv_weights(w, bias, fh, fw, ph, pw):
    """Fold nearest-upsample(fh,fw) + 'same' conv(w, pad=(ph,pw)) into per-row-phase weights.

    The upsample+conv acting on an upsampled pixel collapses, per output row
    phase rh, into a sum over a small set of (dh, dw) shifts of the ORIGINAL
    input.  We stack the (structurally non-zero) shift blocks along the
    contraction axis so the kernel does one matmul per row phase.

    Returns:
      wst:      (fh, Kmax, fw*Cout) f32  stacked per-phase weights (zero-padded to Kmax)
      bias_row: (1, fw*Cout) f32
      taps:     list of length fh; taps[rh] = [(dh, dw), ...] active shifts (shifted by halo)
      halo:     (dh_lo, dh_hi, dw_lo, dw_hi) input halo in ORIGINAL pixels
    """
    w = np.asarray(w, np.float32)
    bias = np.asarray(bias, np.float32)
    kh, kw, cin, cout = w.shape
    dh_lo, dh_hi = -((0 - ph) // fh), (fh - 1 + kh - 1 - ph) // fh
    dw_lo, dw_hi = -((0 - pw) // fw), (fw - 1 + kw - 1 - pw) // fw
    Dh, Dw = dh_lo + dh_hi + 1, dw_lo + dw_hi + 1
    mh = np.zeros((fh, kh, Dh), np.float32)
    mw = np.zeros((fw, kw, Dw), np.float32)
    for rh in range(fh):
        for i in range(kh):
            mh[rh, i, (rh + i - ph) // fh + dh_lo] = 1.0
    for rw in range(fw):
        for j in range(kw):
            mw[rw, j, (rw + j - pw) // fw + dw_lo] = 1.0
    # weff[rh, dh, dw, ci, rw, co]
    weff = np.einsum('rid,sje,ijco->rdecso', mh, mw, w)
    act_h = mh.any(axis=1)           # (fh, Dh)
    act_w = mw.any(axis=(0, 1))      # (Dw,)
    fwc = fw * cout

    taps = []
    for rh in range(fh):
        taps.append([(dh, dw) for dh in range(Dh) if act_h[rh, dh]
                     for dw in range(Dw) if act_w[dw]])
    assert all(len(t) > 0 for t in taps)
    kmax = max(len(t) for t in taps) * cin
    wst = np.zeros((fh, kmax, fwc), np.float32)
    for rh in range(fh):
        blocks = [weff[rh, dh, dw].reshape(cin, fwc) for (dh, dw) in taps[rh]]
        stacked = np.concatenate(blocks, axis=0)
        wst[rh, :stacked.shape[0], :] = stacked

    bias_row = np.tile(bias, fw).reshape(1, fwc)
    return wst, bias_row, taps, (dh_lo, dh_hi, dw_lo, dw_hi)


# ----------------------------- kernel 1: fused upsample + conv -----------------------------
def _make_fused_kernel(fh, taps, th, W, precision):
    union_taps = sorted({t for tl in taps for t in tl})

    def kernel(x_ref, w_ref, b_ref, o_ref, acc_ref):
        # x_ref : (1, Hp, Wp, Cin)        halo-padded ORIGINAL input (VMEM-resident per batch)
        # w_ref : (fh, Kmax, fw*Cout)     stacked per-phase weights
        # b_ref : (1, fw*Cout)            f32
        # o_ref : (1, th*fh, W, fw*Cout)  memory-identical to (th*fh, W*fw, Cout)
        # acc_ref: (th, fh, W, fw*Cout)   f32 VMEM scratch
        ht = pl.program_id(1)
        cin = x_ref.shape[-1]
        fwc = o_ref.shape[-1]

        # Load each needed shifted patch of the original input exactly once.
        patch = {}
        for (dh, dw) in union_taps:
            p = x_ref[0, pl.ds(ht * th + dh, th), dw:dw + W, :]       # (th, W, Cin)
            patch[(dh, dw)] = p.reshape(th * W, cin)

        bias = b_ref[...]                                             # (1, fwc) f32
        # One matmul per row phase: lane-concat the active shifted patches and
        # hit the pre-stacked weight slab (no accumulator read-modify-write).
        for rh in range(fh):
            tl = taps[rh]
            pieces = [patch[t] for t in tl]
            lhs = pieces[0] if len(pieces) == 1 else jnp.concatenate(pieces, axis=-1)
            k_rh = len(tl) * cin
            res = jnp.dot(lhs, w_ref[rh, :k_rh, :],
                          preferred_element_type=jnp.float32,
                          precision=precision)                        # (th*W, fwc)
            acc_ref[:, rh, :, :] = (res + bias).reshape(th, W, fwc)

        # (th, fh, W, fwc) -> (th*fh, W, fwc): leading-dim merge == the H interleave.
        o_ref[0] = acc_ref[...].reshape(th * fh, W, fwc).astype(o_ref.dtype)
    return kernel


def fused_nearest_upsample_conv(x, wst, bias_row, taps, fh, fw, halo, cout,
                                compute_dtype, precision, row_tile=None):
    """x: (N, H, W, Cin) -> (N, H*fh, W*fw, Cout): nearest upsample + 'same' conv, fused."""
    n, H, W, cin = x.shape
    dh_lo, dh_hi, dw_lo, dw_hi = halo
    Dh, Dw = dh_lo + dh_hi + 1, dw_lo + dw_hi + 1
    fwc = fw * cout
    th = row_tile or _pick_row_tile(H, W)
    n_ht = H // th
    out_dtype = x.dtype

    # Only the small ORIGINAL input is halo-padded (never the f*f-larger upsampled tensor).
    xp = jnp.pad(x, ((0, 0), (dh_lo, dh_hi), (dw_lo, dw_hi), (0, 0))).astype(compute_dtype)
    hp, wp = H + Dh - 1, W + Dw - 1
    kmax = wst.shape[1]
    w_d = jnp.asarray(wst, compute_dtype)
    b_d = jnp.asarray(bias_row, jnp.float32)

    out = pl.pallas_call(
        _make_fused_kernel(fh, taps, th, W, precision),
        out_shape=jax.ShapeDtypeStruct((n, H * fh, W, fwc), out_dtype),
        grid=(n, n_ht),
        in_specs=[
            # constant index along the row-tile axis -> input stays VMEM-resident per batch
            pl.BlockSpec((1, hp, wp, cin), lambda i, j: (i, 0, 0, 0)),
            pl.BlockSpec((fh, kmax, fwc), lambda i, j: (0, 0, 0)),
            pl.BlockSpec((1, fwc), lambda i, j: (0, 0)),
        ],
        out_specs=pl.BlockSpec((1, th * fh, W, fwc), lambda i, j: (i, j, 0, 0)),
        scratch_shapes=[pltpu.VMEM((th, fh, W, fwc), jnp.float32)],
        compiler_params=pltpu.CompilerParams(
            dimension_semantics=("parallel", "parallel"),
            vmem_limit_bytes=48 * 1024 * 1024),
    )(xp, w_d, b_d)
    # (N, H*fh, W, fw*Cout) is memory-identical to (N, H*fh, W*fw, Cout): free reshape.
    return out.reshape(n, H * fh, W * fw, cout)


# ----------------------------- kernel 2: nearest upsample only -----------------------------
def _make_upsample_kernel(fh, fw, th, W):
    def kernel(x_ref, o_ref):
        c = x_ref.shape[-1]
        xt = x_ref[0]                                                   # (th, W, C)
        row = jnp.concatenate([xt] * fw, axis=-1) if fw > 1 else xt     # (th, W, fw*C)
        out = jnp.broadcast_to(row[:, None, :, :], (th, fh, W, fw * c))
        o_ref[0] = out.reshape(th * fh, W, fw * c)                      # leading-dim merge
    return kernel


def nearest_upsample(x, fh, fw, row_tile=None):
    """x: (N, H, W, C) -> (N, H*fh, W*fw, C) nearest-neighbor, interleaved write (no transpose)."""
    n, H, W, c = x.shape
    th = row_tile or _pick_row_tile(H, W)
    out = pl.pallas_call(
        _make_upsample_kernel(fh, fw, th, W),
        out_shape=jax.ShapeDtypeStruct((n, H * fh, W, fw * c), x.dtype),
        grid=(n, H // th),
        in_specs=[pl.BlockSpec((1, th, W, c), lambda i, j: (i, j, 0, 0))],
        out_specs=pl.BlockSpec((1, th * fh, W, fw * c), lambda i, j: (i, j, 0, 0)),
        compiler_params=pltpu.CompilerParams(
            dimension_semantics=("parallel", "parallel"),
            vmem_limit_bytes=48 * 1024 * 1024),
    )(x)
    return out.reshape(n, H * fh, W * fw, c)


# ----------------------------- module -----------------------------
class UpsamplePallas:
    """Pallas port of the diffusion Upsample module (dims=1 or dims=2).

    compute_dtype=bfloat16 (default) runs the conv matmuls natively on the MXU;
    pass compute_dtype=float32 + precision=HIGHEST for strict f32 validation.
    """

    def __init__(self, channels, use_conv, dims=2, out_channels=None,
                 factor=None, ksize=3, pad=1, key=None,
                 compute_dtype=jnp.bfloat16, precision=None):
        assert dims in (1, 2)  # TODO(synk): dims==3 (anisotropic interpolate + conv3d) not implemented
        self.channels = channels
        self.out_channels = out_channels or channels
        self.use_conv = use_conv
        self.dims = dims
        self.factor = (4 if dims == 1 else 2) if factor is None else factor
        self.compute_dtype = compute_dtype
        self.precision = precision
        if use_conv:
            if dims == 1:
                ksize, pad = 5, 2
            # TODO(synk): non-'same' ksize/pad combinations not implemented in the fused kernel
            assert 2 * pad == ksize - 1, "fused kernel assumes a 'same' convolution"
            self.ksize, self.pad = ksize, pad
            if key is None:
                key = jax.random.PRNGKey(42)
            kw_, kb_ = jax.random.split(key)
            if dims == 1:
                kshape = (1, ksize, self.channels, self.out_channels)
                fan_in = self.channels * ksize
            else:
                kshape = (ksize, ksize, self.channels, self.out_channels)
                fan_in = self.channels * ksize * ksize
            bound = 1.0 / math.sqrt(fan_in)
            # deterministic synthetic init (PyTorch-conv-style uniform)
            self.weight = jax.random.uniform(kw_, kshape, jnp.float32, -bound, bound)
            self.bias = jax.random.uniform(kb_, (self.out_channels,), jnp.float32, -bound, bound)
            fh = 1 if dims == 1 else self.factor
            fw = self.factor
            ph = 0 if dims == 1 else pad
            pw = pad
            (self._wst, self._bias_row,
             self._taps, self._halo) = _collapse_upsample_conv_weights(
                self.weight, self.bias, fh, fw, ph, pw)

    def __call__(self, x):
        # x: PyTorch layout -- (N, C, L) for dims=1, (N, C, H, W) for dims=2
        assert x.shape[1] == self.channels
        if self.dims == 1:
            xh = jnp.transpose(x, (0, 2, 1))[:, None, :, :]           # (N, 1, L, C)
            fh, fw = 1, self.factor
        else:
            xh = jnp.transpose(x, (0, 2, 3, 1))                       # (N, H, W, C)
            fh = fw = self.factor
        if self.use_conv:
            y = fused_nearest_upsample_conv(
                xh, self._wst, self._bias_row, self._taps, fh, fw, self._halo,
                self.out_channels, self.compute_dtype, self.precision)
        else:
            y = nearest_upsample(xh, fh, fw)
        if self.dims == 1:
            return jnp.transpose(y[:, 0], (0, 2, 1))                  # (N, Cout, L*factor)
        return jnp.transpose(y, (0, 3, 1, 2))                         # (N, Cout, H*f, W*f)


# ----------------------------- pure-JAX reference -----------------------------
def reference_forward(mod, x):
    if mod.dims == 1:
        xr = jnp.repeat(x, mod.factor, axis=2)
        if mod.use_conv:
            w = mod.weight[0]  # (K, Cin, Cout) -> 'HIO'
            xr = jax.lax.conv_general_dilated(
                xr, w, (1,), [(mod.pad, mod.pad)],
                dimension_numbers=('NCH', 'HIO', 'NCH'),
                precision=jax.lax.Precision.HIGHEST) + mod.bias[None, :, None]
        return xr
    xr = jnp.repeat(jnp.repeat(x, mod.factor, axis=2), mod.factor, axis=3)
    if mod.use_conv:
        xr = jax.lax.conv_general_dilated(
            xr, mod.weight, (1, 1), [(mod.pad, mod.pad)] * 2,
            dimension_numbers=('NCHW', 'HWIO', 'NCHW'),
            precision=jax.lax.Precision.HIGHEST) + mod.bias[None, :, None, None]
    return xr


if __name__ == "__main__":
    key = jax.random.PRNGKey(0)
    k1, k2, kp1, kp2 = jax.random.split(key, 4)

    # ---- dims=2: channels=4, use_conv=True, factor=2 (k=3, pad=1) ----
    x2d = jax.random.normal(k1, (2, 4, 16, 16), jnp.float32)

    # strict f32 validation path
    up2_f32 = UpsamplePallas(4, True, dims=2, key=kp1,
                             compute_dtype=jnp.float32,
                             precision=jax.lax.Precision.HIGHEST)
    y2 = jax.block_until_ready(up2_f32(x2d))
    assert y2.shape == (2, 4, 32, 32)
    np.testing.assert_allclose(np.asarray(y2),
                               np.asarray(reference_forward(up2_f32, x2d)),
                               atol=1e-4, rtol=1e-4)

    # default bf16 MXU path (perf config) -- deliberately looser tolerance vs f32 ref
    up2_bf16 = UpsamplePallas(4, True, dims=2, key=kp1)
    y2b = jax.block_until_ready(up2_bf16(x2d))
    assert y2b.shape == (2, 4, 32, 32)
    np.testing.assert_allclose(np.asarray(y2b),
                               np.asarray(reference_forward(up2_bf16, x2d)),
                               atol=5e-2, rtol=5e-2)

    # ---- dims=1 (music codes): channels=4, use_conv=True -> factor=4, k=5, pad=2 ----
    x1d = jax.random.normal(k2, (2, 4, 16), jnp.float32)
    up1 = UpsamplePallas(4, True, dims=1, key=kp2,
                         compute_dtype=jnp.float32,
                         precision=jax.lax.Precision.HIGHEST)
    y1 = jax.block_until_ready(up1(x1d))
    assert y1.shape == (2, 4, 64)
    np.testing.assert_allclose(np.asarray(y1),
                               np.asarray(reference_forward(up1, x1d)),
                               atol=1e-4, rtol=1e-4)

    # ---- dims=2, use_conv=False: pure nearest upsample (bit exact) ----
    up2_nc = UpsamplePallas(4, False, dims=2)
    y2nc = jax.block_until_ready(up2_nc(x2d))
    assert y2nc.shape == (2, 4, 32, 32)
    np.testing.assert_allclose(np.asarray(y2nc),
                               np.asarray(reference_forward(up2_nc, x2d)),
                               atol=0, rtol=0)

    print("KERNEL_OK")
</pallas_src>

<mosaic_0001>
module attributes {stable_mosaic.version = 11 : i64} {
  func.func @kernel(%arg0: i32, %arg1: i32, %arg2: memref<1x18x18x4xf32, #tpu.memory_space<vmem>>, %arg3: memref<2x24x8xf32, #tpu.memory_space<vmem>>, %arg4: memref<1x8xf32, #tpu.memory_space<vmem>>, %arg5: memref<1x32x16x8xf32, #tpu.memory_space<vmem>>, %arg6: memref<16x2x16x8xf32, #tpu.memory_space<vmem>>) attributes {dimension_semantics = [#tpu.dimension_semantics<parallel>, #tpu.dimension_semantics<parallel>], iteration_bounds = array<i64: 2, 1>, scalar_prefetch = 0 : i64, scratch_operands = 1 : i64, tpu.core_type = #tpu.core_type<tc>, window_params = [{transform_indices = @transform_0, window_bounds = array<i64: 1, 18, 18, 4>}, {pipeline_mode = #tpu.pipeline_mode<synchronous>, transform_indices = @transform_1, window_bounds = array<i64: 2, 24, 8>}, {pipeline_mode = #tpu.pipeline_mode<synchronous>, transform_indices = @transform_2, window_bounds = array<i64: 1, 8>}, {transform_indices = @transform_3, window_bounds = array<i64: 1, 32, 16, 8>}]} {
    %c16_i32 = arith.constant 16 : i32
    %0 = arith.muli %arg1, %c16_i32 : i32
    %c0_i32 = arith.constant 0 : i32
    %1 = arith.addi %0, %c0_i32 : i32
    %c0 = arith.constant 0 : index
    %2 = arith.index_cast %1 : i32 to index
    %c0_0 = arith.constant 0 : index
    %c0_1 = arith.constant 0 : index
    %3 = vector.load %arg2[%c0, %2, %c0_0, %c0_1] : memref<1x18x18x4xf32, #tpu.memory_space<vmem>>, vector<1x16x16x4xf32>
    %4 = vector.shape_cast %3 : vector<1x16x16x4xf32> to vector<16x16x4xf32>
    %5 = vector.shape_cast %4 : vector<16x16x4xf32> to vector<256x4xf32>
    %c16_i32_2 = arith.constant 16 : i32
    %6 = arith.muli %arg1, %c16_i32_2 : i32
    %c0_i32_3 = arith.constant 0 : i32
    %7 = arith.addi %6, %c0_i32_3 : i32
    %c0_4 = arith.constant 0 : index
    %8 = arith.index_cast %7 : i32 to index
    %c1 = arith.constant 1 : index
    %c0_5 = arith.constant 0 : index
    %9 = vector.load %arg2[%c0_4, %8, %c1, %c0_5] : memref<1x18x18x4xf32, #tpu.memory_space<vmem>>, vector<1x16x16x4xf32>
    %10 = vector.shape_cast %9 : vector<1x16x16x4xf32> to vector<16x16x4xf32>
    %11 = vector.shape_cast %10 : vector<16x16x4xf32> to vector<256x4xf32>
    %c16_i32_6 = arith.constant 16 : i32
    %12 = arith.muli %arg1, %c16_i32_6 : i32
    %c0_i32_7 = arith.constant 0 : i32
    %13 = arith.addi %12, %c0_i32_7 : i32
    %c0_8 = arith.constant 0 : index
    %14 = arith.index_cast %13 : i32 to index
    %c2 = arith.constant 2 : index
    %c0_9 = arith.constant 0 : index
    %15 = vector.load %arg2[%c0_8, %14, %c2, %c0_9] : memref<1x18x18x4xf32, #tpu.memory_space<vmem>>, vector<1x16x16x4xf32>
    %16 = vector.shape_cast %15 : vector<1x16x16x4xf32> to vector<16x16x4xf32>
    %17 = vector.shape_cast %16 : vector<16x16x4xf32> to vector<256x4xf32>
    %c16_i32_10 = arith.constant 16 : i32
    %18 = arith.muli %arg1, %c16_i32_10 : i32
    %c1_i32 = arith.constant 1 : i32
    %19 = arith.addi %18, %c1_i32 : i32
    %c0_11 = arith.constant 0 : index
    %20 = arith.index_cast %19 : i32 to index
    %c0_12 = arith.constant 0 : index
    %c0_13 = arith.constant 0 : index
    %21 = vector.load %arg2[%c0_11, %20, %c0_12, %c0_13] : memref<1x18x18x4xf32, #tpu.memory_space<vmem>>, vector<1x16x16x4xf32>
    %22 = vector.shape_cast %21 : vector<1x16x16x4xf32> to vector<16x16x4xf32>
    %23 = vector.shape_cast %22 : vector<16x16x4xf32> to vector<256x4xf32>
    %c16_i32_14 = arith.constant 16 : i32
    %24 = arith.muli %arg1, %c16_i32_14 : i32
    %c1_i32_15 = arith.constant 1 : i32
    %25 = arith.addi %24, %c1_i32_15 : i32
    %c0_16 = arith.constant 0 : index
    %26 = arith.index_cast %25 : i32 to index
    %c1_17 = arith.constant 1 : index
    %c0_18 = arith.constant 0 : index
    %27 = vector.load %arg2[%c0_16, %26, %c1_17, %c0_18] : memref<1x18x18x4xf32, #tpu.memory_space<vmem>>, vector<1x16x16x4xf32>
    %28 = vector.shape_cast %27 : vector<1x16x16x4xf32> to vector<16x16x4xf32>
    %29 = vector.shape_cast %28 : vector<16x16x4xf32> to vector<256x4xf32>
    %c16_i32_19 = arith.constant 16 : i32
    %30 = arith.muli %arg1, %c16_i32_19 : i32
    %c1_i32_20 = arith.constant 1 : i32
    %31 = arith.addi %30, %c1_i32_20 : i32
    %c0_21 = arith.constant 0 : index
    %32 = arith.index_cast %31 : i32 to index
    %c2_22 = arith.constant 2 : index
    %c0_23 = arith.constant 0 : index
    %33 = vector.load %arg2[%c0_21, %32, %c2_22, %c0_23] : memref<1x18x18x4xf32, #tpu.memory_space<vmem>>, vector<1x16x16x4xf32>
    %34 = vector.shape_cast %33 : vector<1x16x16x4xf32> to vector<16x16x4xf32>
    %35 = vector.shape_cast %34 : vector<16x16x4xf32> to vector<256x4xf32>
    %c16_i32_24 = arith.constant 16 : i32
    %36 = arith.muli %arg1, %c16_i32_24 : i32
    %c2_i32 = arith.constant 2 : i32
    %37 = arith.addi %36, %c2_i32 : i32
    %c0_25 = arith.constant 0 : index
    %38 = arith.index_cast %37 : i32 to index
    %c0_26 = arith.constant 0 : index
    %c0_27 = arith.constant 0 : index
    %39 = vector.load %arg2[%c0_25, %38, %c0_26, %c0_27] : memref<1x18x18x4xf32, #tpu.memory_space<vmem>>, vector<1x16x16x4xf32>
    %40 = vector.shape_cast %39 : vector<1x16x16x4xf32> to vector<16x16x4xf32>
    %41 = vector.shape_cast %40 : vector<16x16x4xf32> to vector<256x4xf32>
    %c16_i32_28 = arith.constant 16 : i32
    %42 = arith.muli %arg1, %c16_i32_28 : i32
    %c2_i32_29 = arith.constant 2 : i32
    %43 = arith.addi %42, %c2_i32_29 : i32
    %c0_30 = arith.constant 0 : index
    %44 = arith.index_cast %43 : i32 to index
    %c1_31 = arith.constant 1 : index
    %c0_32 = arith.constant 0 : index
    %45 = vector.load %arg2[%c0_30, %44, %c1_31, %c0_32] : memref<1x18x18x4xf32, #tpu.memory_space<vmem>>, vector<1x16x16x4xf32>
    %46 = vector.shape_cast %45 : vector<1x16x16x4xf32> to vector<16x16x4xf32>
    %47 = vector.shape_cast %46 : vector<16x16x4xf32> to vector<256x4xf32>
    %c16_i32_33 = arith.constant 16 : i32
    %48 = arith.muli %arg1, %c16_i32_33 : i32
    %c2_i32_34 = arith.constant 2 : i32
    %49 = arith.addi %48, %c2_i32_34 : i32
    %c0_35 = arith.constant 0 : index
    %50 = arith.index_cast %49 : i32 to index
    %c2_36 = arith.constant 2 : index
    %c0_37 = arith.constant 0 : index
    %51 = vector.load %arg2[%c0_35, %50, %c2_36, %c0_37] : memref<1x18x18x4xf32, #tpu.memory_space<vmem>>, vector<1x16x16x4xf32>
    %52 = vector.shape_cast %51 : vector<1x16x16x4xf32> to vector<16x16x4xf32>
    %53 = vector.shape_cast %52 : vector<16x16x4xf32> to vector<256x4xf32>
    %c0_38 = arith.constant 0 : index
    %c0_39 = arith.constant 0 : index
    %54 = vector.load %arg4[%c0_38, %c0_39] : memref<1x8xf32, #tpu.memory_space<vmem>>, vector<1x8xf32>
    %55 = tpu.concatenate %5, %11, %17, %23, %29, %35 in 1 : vector<256x4xf32>, vector<256x4xf32>, vector<256x4xf32>, vector<256x4xf32>, vector<256x4xf32>, vector<256x4xf32> -> vector<256x24xf32>
    %c0_40 = arith.constant 0 : index
    %c0_41 = arith.constant 0 : index
    %c0_42 = arith.constant 0 : index
    %56 = vector.load %arg3[%c0_40, %c0_41, %c0_42] : memref<2x24x8xf32, #tpu.memory_space<vmem>>, vector<1x24x8xf32>
    %57 = vector.shape_cast %56 : vector<1x24x8xf32> to vector<24x8xf32>
    %cst = arith.constant dense<0.000000e+00> : vector<256x8xf32>
    %58 = tpu.matmul %55, %57, %cst {dimension_numbers = #tpu.dot_dimension_numbers<[1], [0], [0], [1], [0, 0, 1, 1], [], []>, precision = #tpu.contract_precision<fp32>} : vector<256x24xf32>, vector<24x8xf32>, vector<256x8xf32> -> vector<256x8xf32>
    %59 = vector.broadcast %54 : vector<1x8xf32> to vector<256x8xf32>
    %60 = arith.addf %58, %59 : vector<256x8xf32>
    %61 = vector.shape_cast %60 : vector<256x8xf32> to vector<16x16x8xf32>
    %c0_43 = arith.constant 0 : index
    %c0_44 = arith.constant 0 : index
    %c0_45 = arith.constant 0 : index
    %c0_46 = arith.constant 0 : index
    %62 = vector.load %arg6[%c0_43, %c0_44, %c0_45, %c0_46] : memref<16x2x16x8xf32, #tpu.memory_space<vmem>>, vector<16x1x16x8xf32>
    %63 = vector.shape_cast %62 : vector<16x1x16x8xf32> to vector<16x16x8xf32>
    %64 = vector.shape_cast %61 : vector<16x16x8xf32> to vector<16x1x16x8xf32>
    tpu.vector_store %arg6[%c0_43, %c0_44, %c0_45, %c0_46], %64 {strides = array<i32>} : memref<16x2x16x8xf32, #tpu.memory_space<vmem>>, vector<16x1x16x8xf32>,
    %65 = tpu.concatenate %23, %29, %35, %41, %47, %53 in 1 : vector<256x4xf32>, vector<256x4xf32>, vector<256x4xf32>, vector<256x4xf32>, vector<256x4xf32>, vector<256x4xf32> -> vector<256x24xf32>
    %c1_47 = arith.constant 1 : index
    %c0_48 = arith.constant 0 : index
    %c0_49 = arith.constant 0 : index
    %66 = vector.load %arg3[%c1_47, %c0_48, %c0_49] : memref<2x24x8xf32, #tpu.memory_space<vmem>>, vector<1x24x8xf32>
    %67 = vector.shape_cast %66 : vector<1x24x8xf32> to vector<24x8xf32>
    %cst_50 = arith.constant dense<0.000000e+00> : vector<256x8xf32>
    %68 = tpu.matmul %65, %67, %cst_50 {dimension_numbers = #tpu.dot_dimension_numbers<[1], [0], [0], [1], [0, 0, 1, 1], [], []>, precision = #tpu.contract_precision<fp32>} : vector<256x24xf32>, vector<24x8xf32>, vector<256x8xf32> -> vector<256x8xf32>
    %69 = vector.broadcast %54 : vector<1x8xf32> to vector<256x8xf32>
    %70 = arith.addf %68, %69 : vector<256x8xf32>
    %71 = vector.shape_cast %70 : vector<256x8xf32> to vector<16x16x8xf32>
    %c0_51 = arith.constant 0 : index
    %c1_52 = arith.constant 1 : index
    %c0_53 = arith.constant 0 : index
    %c0_54 = arith.constant 0 : index
    %72 = vector.load %arg6[%c0_51, %c1_52, %c0_53, %c0_54] : memref<16x2x16x8xf32, #tpu.memory_space<vmem>>, vector<16x1x16x8xf32>
    %73 = vector.shape_cast %72 : vector<16x1x16x8xf32> to vector<16x16x8xf32>
    %74 = vector.shape_cast %71 : vector<16x16x8xf32> to vector<16x1x16x8xf32>
    tpu.vector_store %arg6[%c0_51, %c1_52, %c0_53, %c0_54], %74 {strides = array<i32>} : memref<16x2x16x8xf32, #tpu.memory_space<vmem>>, vector<16x1x16x8xf32>,
    %c0_55 = arith.constant 0 : index
    %c0_56 = arith.constant 0 : index
    %c0_57 = arith.constant 0 : index
    %c0_58 = arith.constant 0 : index
    %75 = vector.load %arg6[%c0_55, %c0_56, %c0_57, %c0_58] : memref<16x2x16x8xf32, #tpu.memory_space<vmem>>, vector<16x2x16x8xf32>
    %76 = vector.shape_cast %75 : vector<16x2x16x8xf32> to vector<32x16x8xf32>
    %c0_59 = arith.constant 0 : index
    %c0_60 = arith.constant 0 : index
    %c0_61 = arith.constant 0 : index
    %c0_62 = arith.constant 0 : index
    %77 = vector.load %arg5[%c0_59, %c0_60, %c0_61, %c0_62] : memref<1x32x16x8xf32, #tpu.memory_space<vmem>>, vector<1x32x16x8xf32>
    %78 = vector.shape_cast %77 : vector<1x32x16x8xf32> to vector<32x16x8xf32>
    %79 = vector.shape_cast %76 : vector<32x16x8xf32> to vector<1x32x16x8xf32>
    tpu.vector_store %arg5[%c0_59, %c0_60, %c0_61, %c0_62], %79 {strides = array<i32>} : memref<1x32x16x8xf32, #tpu.memory_space<vmem>>, vector<1x32x16x8xf32>,
    return
  }
  func.func @transform_0(%arg0: i32, %arg1: i32) -> (i32, i32, i32, i32) {
    %c0_i32 = arith.constant 0 : i32
    %c0_i32_0 = arith.constant 0 : i32
    %c0_i32_1 = arith.constant 0 : i32
    %c0_i32_2 = arith.constant 0 : i32
    return %arg0, %c0_i32, %c0_i32_0, %c0_i32_1 : i32, i32, i32, i32
  }
  func.func @transform_1(%arg0: i32, %arg1: i32) -> (i32, i32, i32) {
    %c0_i32 = arith.constant 0 : i32
    %c0_i32_0 = arith.constant 0 : i32
    %c0_i32_1 = arith.constant 0 : i32
    %c0_i32_2 = arith.constant 0 : i32
    return %c0_i32, %c0_i32_0, %c0_i32_1 : i32, i32, i32
  }
  func.func @transform_2(%arg0: i32, %arg1: i32) -> (i32, i32) {
    %c0_i32 = arith.constant 0 : i32
    %c0_i32_0 = arith.constant 0 : i32
    %c0_i32_1 = arith.constant 0 : i32
    return %c0_i32, %c0_i32_0 : i32, i32
  }
  func.func @transform_3(%arg0: i32, %arg1: i32) -> (i32, i32, i32, i32) {
    %c0_i32 = arith.constant 0 : i32
    %c0_i32_0 = arith.constant 0 : i32
    %c0_i32_1 = arith.constant 0 : i32
    return %arg0, %arg1, %c0_i32, %c0_i32_0 : i32, i32, i32, i32
  }
}

</mosaic_0001>

<bundles_post_ra>
// kernel: tpu_custom_call.1
= control target key start
LH: loop header
LB: loop body
LE: loop exit
PB: predicated region body
PF: predicated region fallthrough
CT: control target
= control target key end

     0   :  { %s7937_s12 = smov 0   ;;  %s7939_s13 = smov 0   ;;  %s10958_s0 = inlined_call_operand.vmem [shape: f32[2,18,18,4], index: 0, kind: input, shape index: {}]   ;;  %s10959_s1 = inlined_call_operand.vmem [shape: f32[2,24,8], index: 1, kind: input, shape index: {}]   ;;  %s10960_s2 = inlined_call_operand.vmem [shape: f32[1,8], index: 2, kind: input, shape index: {}]   ;;  %s10961_s3 = inlined_call_operand.vmem [shape: f32[2,32,16,8], index: 3, kind: output, shape index: {}]  }
   0x1   :  { %s7941_s14 = smov 0  }
   0x2 LB: > { %s25_s15 = sadd.s32 1, %s7906_s13  ;;  %p6145_p0 = scmp.ge.s32.totalorder %s7910_s14, 1  ;;  %s7910_s14 = sphi %s7941_s14, %s13_s14   ;;  %s7906_s13 = sphi %s7939_s13, %s11679_s13   ;;  %s7902_s12 = sphi %s7937_s12, %s11678_s12  }
   0x3   : > { %p27_p1 = scmp.ge.s32.totalorder %s25_s15, 2  ;;  %p151_p2 = scmp.lt.s32.totalorder %s7910_s14, 3 }
   0x5   : > { %s11681_s15 = smov (%p27_p1, %s25_s15), 0  ;;  %p152_p3 = pnand %p6145_p0, %p151_p2 }
   0x7   : > { %155 = sbr.rel (%p152_p3) target bundleno = 1331 (0x533), region = 32 }
   0xe   : > { %p180_p4 = scmp.lt.s32.totalorder %s7902_s12, 1  ;;  %s7912_s20 = smov 4   ;;  %v8009_v13 = vld [vmem:[%s10959_s1] sm:$0xff]  ;;  %v8014_v14 = vld [vmem:[%s10959_s1 + $0x8] sm:$0xff]  ;;  %v8031_v20 = vld [vmem:[%s10959_s1 + $0x18] sm:$0xff]  ;;  %vm1134_vm0 = vcmask 31744  }
   0xf   : > { %s7913_s21 = smov 8   ;;  %s7914_s22 = smov 12   ;;  %v10973_v17 = vand.u32 4294901760, %v8009_v13  ;;  %v10972_v18 = vand.u32 4294901760, %v8014_v14  ;;  %v8036_v21 = vld [vmem:[%s10959_s1 + $0x20] sm:$0xff]  ;;  %v10971_v22 = vand.u32 4294901760, %v8031_v20 }
  0x10   : > { %s11683_s12 = smov (!%p180_p4, %s7902_s12), 1  ;;  %s7915_s23 = smov 16   ;;  %v10970_v23 = vand.u32 4294901760, %v8036_v21  ;;  %v1301_v24 = vld [vmem:[%s10959_s1 + $0x10] sm:$0xff]  ;;  %v6344_v27 = vld [vmem:[%s10959_s1 + $0x28] sm:$0xff]  ;;  %vm1167_vm1 = vcmask 64512  }
  0x11   : > { %s7848_s16 = smul.u32 432, %s11683_s12  ;;  %s7916_s24 = smov 20   ;;  %v8024_v19 = vpack.c.bf16 %v10972_v18, %v10973_v17  ;;  %v8045_v25 = vand.u32 4294901760, %v1301_v24  ;;  %v8062_v28 = vand.u32 4294901760, %v6344_v27  ;;  %vm1200_vm2 = vcmask 97280  }
  0x12   : > { %v8051_v26 = vpack.c.bf16 %v10970_v23, %v10971_v22  ;;  %vm1233_vm3 = vcmask 130048   ;;  %vm1266_vm4 = vcmask 162816   ;;  %vm1308_vm5 = vcmask 195584  }
  0x13   : > { %s7961_s19 = scalar_lea.vmem %s10958_s0, %s7848_s16  ;;  %7417 = vmatprep.subr.bf16.mxu0 %v8024_v19  ;;  %11298 = vst [vmem:[#allocation3_spill] sm:$0xff] %v8045_v25  ;;  %11299 = vst [vmem:[#allocation4_spill] sm:$0xff] %v8062_v28 }
  0x14   : > { %v232_v0 = vld [vmem:[%s7961_s19 + $0x9] sm:$0xff]  ;;  %v231_v1 = vld [vmem:[%s7961_s19 + $0x1] sm:$0xff]  ;;  %v6181_v3 = vld [vmem:[%s7961_s19 + $0x19] sm:$0xff]  ;;  %7419 = vmatpush3.bf16.msra.mxu0 %v8024_v19  ;;  %7441 = vmatprep.subr.bf16.mxu1 %v8051_v26 }
  0x15   : > { %528 = vrot.lane.b32.xlu1 %v232_v0, %s7912_s20  ;;  %526 = vrot.lane.b32.xlu0 %v231_v1, %s7912_s20  ;;  %v263_v2 = vld [vmem:[%s7961_s19 + $0x2] sm:$0xff]  ;;  %v6213_v4 = vld [vmem:[%s7961_s19 + $0x1a] sm:$0xff] }
  0x16   : > { %v6182_v5 = vld [vmem:[%s7961_s19 + $0x21] sm:$0xff]  ;;  %v7976_v6 = vld [vmem:[%s7961_s19 + $0x18] sm:$0xff]  ;;  %v264_v7 = vld [vmem:[%s7961_s19 + $0xa] sm:$0xff]  ;;  %6772 = vmatprep.subr.mxu0 %v8045_v25  ;;  %7443 = vmatpush3.bf16.msra.mxu1 %v8051_v26 }
  0x17   : > { %v7983_v8 = vld [vmem:[%s7961_s19 + $0x30] sm:$0xff]  ;;  %v6214_v9 = vld [vmem:[%s7961_s19 + $0x22] sm:$0xff]  ;;  %v7997_v12 = vld [vmem:[%s7961_s19 + $0x38] sm:$0xff]  ;;  %7096 = vmatprep.subr.mxu1 %v8062_v28 }
  0x18   : > { %v7990_v10 = vld [vmem:[%s7961_s19 + $0x20] sm:$0xff]  ;;  %v6277_v11 = vld [vmem:[%s7961_s19 + $0x31] sm:$0xff]  ;;  %6773 = vmatpush3.msra.mxu0 %v8045_v25  ;;  %v8075_v30 = vld [vmem:[%s7961_s19 + $0x48] sm:$0xff] }
  0x19   : > { %654 = vrot.lane.b32.xlu1 %v263_v2, %s7913_s21  ;;  %3242 = vrot.lane.b32.xlu0 %v6181_v3, %s7912_s20  ;;  %v6309_v15 = vld [vmem:[%s7961_s19 + $0x32] sm:$0xff]  ;;  %v6310_v29 = vld [vmem:[%s7961_s19 + $0x3a] sm:$0xff] }
  0x1a   : > { %v6278_v16 = vld [vmem:[%s7961_s19 + $0x39] sm:$0xff]  ;;  %7097 = vmatpush3.msra.mxu1 %v8062_v28  ;;  %v6279_v31 = vld [vmem:[%s7961_s19 + $0x49] sm:$0xff]  ;;  %v6280_v34 = vld [vmem:[%s7961_s19 + $0x51] sm:$0xff] }
  0x1b   : > { %v8085_v32 = vld [vmem:[%s7961_s19 + $0x50] sm:$0xff]  ;;  %v8109_v36 = vld [vmem:[%s7961_s19 + $0x60] sm:$0xff]  ;;  %v8121_v38 = vld [vmem:[%s7961_s19 + $0x68] sm:$0xff] }
  0x1c   : > { %v6311_v33 = vld [vmem:[%s7961_s19 + $0x4a] sm:$0xff]  ;;  %v6312_v35 = vld [vmem:[%s7961_s19 + $0x52] sm:$0xff]  ;;  %v8118_v37 = vld [vmem:[%s7961_s19 + $0x61] sm:$0xff] }
  0x1d   : > { %3338 = vrot.lane.b32.xlu1 %v6213_v4, %s7913_s21  ;;  %3244 = vrot.lane.b32.xlu0 %v6182_v5, %s7912_s20  ;;  %v8133_v39 = vld [vmem:[%s7961_s19 + $0x62] sm:$0xff]  ;;  %v8152_v47 = vld [vmem:[%s7961_s19 + $0x6a] sm:$0xff] }
  0x1e   : > { %v8136_v40 = vld [vmem:[%s7961_s19 + $0x69] sm:$0xff]  ;;  %v8164_v52 = vld [vmem:[%s7961_s19 + $0x78] sm:$0xff]  ;;  %v199_v57 = vld [vmem:[%s7961_s19] sm:$0xff] }
  0x1f   : > { %v8178_v58 = vld [vmem:[%s7961_s19 + $0x79] sm:$0xff] }
  0x20   : > { %v8181_v59 = vld [vmem:[%s7961_s19 + $0x80] sm:$0xff] }
  0x21   : > { %782 = vrot.lane.b32.xlu1 %v7976_v6, %s7914_s22  ;;  %656 = vrot.lane.b32.xlu0 %v264_v7, %s7913_s21 }
  0x25   : > { %3466 = vrot.lane.b32.xlu1 %v7983_v8, %s7914_s22  ;;  %3340 = vrot.lane.b32.xlu0 %v6214_v9, %s7913_s21 }
  0x29   : > { %910 = vrot.lane.b32.xlu1 %v6181_v3, %s7915_s23  ;;  %784 = vrot.lane.b32.xlu0 %v7990_v10, %s7914_s22 }
  0x2d   : > { %3594 = vrot.lane.b32.xlu1 %v6277_v11, %s7915_s23  ;;  %3468 = vrot.lane.b32.xlu0 %v7997_v12, %s7914_s22 }
  0x31   : > { %912 = vrot.lane.b32.xlu1 %v6182_v5, %s7915_s23  ;;  %530 = vrot.lane.b32.xlu0 %v6181_v3, %s7912_s20 }
  0x35   : > { %3246 = vrot.lane.b32.xlu1 %v6277_v11, %s7912_s20  ;;  %1038 = vrot.lane.b32.xlu0 %v6213_v4, %s7916_s24 }
  0x39   : > { %3722 = vrot.lane.b32.xlu1 %v6309_v15, %s7916_s24  ;;  %3596 = vrot.lane.b32.xlu0 %v6278_v16, %s7915_s23 }
  0x3d   : > { %658 = vrot.lane.b32.xlu1 %v6213_v4, %s7913_s21  ;;  %532 = vrot.lane.b32.xlu0 %v6182_v5, %s7912_s20 }
  0x41   : > { %3248 = vrot.lane.b32.xlu1 %v6278_v16, %s7912_s20  ;;  %1040 = vrot.lane.b32.xlu0 %v6214_v9, %s7916_s24 }
  0x45   : > { %3724 = vrot.lane.b32.xlu1 %v6310_v29, %s7916_s24  ;;  %3342 = vrot.lane.b32.xlu0 %v6309_v15, %s7913_s21 }
  0x49   : > { %786 = vrot.lane.b32.xlu1 %v7983_v8, %s7914_s22  ;;  %660 = vrot.lane.b32.xlu0 %v6214_v9, %s7913_s21 }
  0x4d   : > { %3470 = vrot.lane.b32.xlu1 %v8075_v30, %s7914_s22  ;;  %3344 = vrot.lane.b32.xlu0 %v6310_v29, %s7913_s21 }
  0x51   : > { %914 = vrot.lane.b32.xlu1 %v6277_v11, %s7915_s23  ;;  %788 = vrot.lane.b32.xlu0 %v7997_v12, %s7914_s22 }
  0x55   : > { %3598 = vrot.lane.b32.xlu1 %v6279_v31, %s7915_s23  ;;  %3472 = vrot.lane.b32.xlu0 %v8085_v32, %s7914_s22 }
  0x59   : > { %916 = vrot.lane.b32.xlu1 %v6278_v16, %s7915_s23  ;;  %534 = vrot.lane.b32.xlu0 %v6277_v11, %s7912_s20 }
  0x5d   : > { %3250 = vrot.lane.b32.xlu1 %v6279_v31, %s7912_s20  ;;  %1042 = vrot.lane.b32.xlu0 %v6309_v15, %s7916_s24 }
  0x61   : > { %3726 = vrot.lane.b32.xlu1 %v6311_v33, %s7916_s24  ;;  %3600 = vrot.lane.b32.xlu0 %v6280_v34, %s7915_s23 }
  0x65   : > { %662 = vrot.lane.b32.xlu1 %v6309_v15, %s7913_s21  ;;  %536 = vrot.lane.b32.xlu0 %v6278_v16, %s7912_s20 }
  0x69   : > { %3252 = vrot.lane.b32.xlu1 %v6280_v34, %s7912_s20  ;;  %1044 = vrot.lane.b32.xlu0 %v6310_v29, %s7916_s24 }
  0x6d   : > { %3728 = vrot.lane.b32.xlu1 %v6312_v35, %s7916_s24  ;;  %3346 = vrot.lane.b32.xlu0 %v6311_v33, %s7913_s21 }
  0x71   : > { %790 = vrot.lane.b32.xlu1 %v8075_v30, %s7914_s22  ;;  %664 = vrot.lane.b32.xlu0 %v6310_v29, %s7913_s21 }
  0x75   : > { %3474 = vrot.lane.b32.xlu1 %v8109_v36, %s7914_s22  ;;  %3348 = vrot.lane.b32.xlu0 %v6312_v35, %s7913_s21 }
  0x79   : > { %918 = vrot.lane.b32.xlu1 %v6279_v31, %s7915_s23  ;;  %792 = vrot.lane.b32.xlu0 %v8085_v32, %s7914_s22 }
  0x7d   : > { %3602 = vrot.lane.b32.xlu1 %v8118_v37, %s7915_s23  ;;  %3476 = vrot.lane.b32.xlu0 %v8121_v38, %s7914_s22 }
  0x81   : > { %920 = vrot.lane.b32.xlu1 %v6280_v34, %s7915_s23  ;;  %538 = vrot.lane.b32.xlu0 %v6279_v31, %s7912_s20 }
  0x85   : > { %3254 = vrot.lane.b32.xlu1 %v8118_v37, %s7912_s20  ;;  %1046 = vrot.lane.b32.xlu0 %v6311_v33, %s7916_s24 }
  0x87   : > { %v8138_v41 = vpop.permute.xlu1 %528  ;;  %v527_v42 = vpop.permute.xlu0 %526 }
  0x88   : > { %v1135_v62 = vsel %vm1134_vm0, %v199_v57, %v527_v42  ;;  %v8224_v42 = vld [vmem:[%s7961_s19 + $0x81] sm:$0xff] }
  0x89   : > { %3730 = vrot.lane.b32.xlu1 %v8133_v39, %s7916_s24  ;;  %3604 = vrot.lane.b32.xlu0 %v8136_v40, %s7915_s23 }
  0x8b   : > { %v655_v43 = vpop.permute.xlu1 %654  ;;  %v3243_v44 = vpop.permute.xlu0 %3242 }
  0x8c   : > { %v1168_v63 = vsel %vm1167_vm1, %v1135_v62, %v655_v43  ;;  %v3818_v4 = vsel %vm1134_vm0, %v7976_v6, %v3243_v44 }
  0x8d   : > { %666 = vrot.lane.b32.xlu1 %v6311_v33, %s7913_s21  ;;  %540 = vrot.lane.b32.xlu0 %v6280_v34, %s7912_s20  ;;  %v200_v33 = vld [vmem:[%s7961_s19 + $0x8] sm:$0xff] }
  0x8f   : > { %v3339_v45 = vpop.permute.xlu1 %3338  ;;  %v8146_v46 = vpop.permute.xlu0 %3244 }
  0x90   : > { %v3850_v7 = vsel %vm1167_vm1, %v3818_v4, %v3339_v45 }
  0x91   : > { %3256 = vrot.lane.b32.xlu1 %v8136_v40, %s7912_s20  ;;  %1048 = vrot.lane.b32.xlu0 %v6312_v35, %s7916_s24 }
  0x93   : > { %v783_v48 = vpop.permute.xlu1 %782  ;;  %v657_v49 = vpop.permute.xlu0 %656 }
  0x94   : > { %v1201_v0 = vsel %vm1200_vm2, %v1168_v63, %v783_v48  ;;  %v1136_v48 = vsel %vm1134_vm0, %v200_v33, %v8138_v41 }
  0x95   : > { %3732 = vrot.lane.b32.xlu1 %v8152_v47, %s7916_s24  ;;  %3350 = vrot.lane.b32.xlu0 %v8133_v39, %s7913_s21 }
  0x97   : > { %v3467_v50 = vpop.permute.xlu1 %3466  ;;  %v8158_v51 = vpop.permute.xlu0 %3340 }
  0x98   : > { %v3882_v11 = vsel %vm1200_vm2, %v3850_v7, %v3467_v50 }
  0x99   : > { %794 = vrot.lane.b32.xlu1 %v8109_v36, %s7914_s22  ;;  %668 = vrot.lane.b32.xlu0 %v6312_v35, %s7913_s21 }
  0x9b   : > { %v911_v53 = vpop.permute.xlu1 %910  ;;  %v785_v54 = vpop.permute.xlu0 %784 }
  0x9c   : > { %v1234_v1 = vsel %vm1233_vm3, %v1201_v0, %v911_v53 }
  0x9d   : > { %3478 = vrot.lane.b32.xlu1 %v8164_v52, %s7914_s22  ;;  %3352 = vrot.lane.b32.xlu0 %v8152_v47, %s7913_s21 }
  0x9f   : > { %v3595_v55 = vpop.permute.xlu1 %3594  ;;  %v8170_v56 = vpop.permute.xlu0 %3468 }
  0xa0   : > { %v3914_v16 = vsel %vm1233_vm3, %v3882_v11, %v3595_v55  ;;  %v1169_v55 = vsel %vm1167_vm1, %v1136_v48, %v657_v49  ;;  %v3819_v49 = vsel %vm1134_vm0, %v7990_v10, %v8146_v46 }
  0xa1   : > { %922 = vrot.lane.b32.xlu1 %v8118_v37, %s7915_s23  ;;  %796 = vrot.lane.b32.xlu0 %v8121_v38, %s7914_s22  ;;  %v1202_v57 = vsel %vm1200_vm2, %v1169_v55, %v785_v54  ;;  %v3851_v54 = vsel %vm1167_vm1, %v3819_v49, %v8158_v51  ;;  %v8304_v49 = vld [vmem:[%s7961_s19 + $0x90] sm:$0xff] }
  0xa2   : > { %v3883_v46 = vsel %vm1200_vm2, %v3851_v54, %v8170_v56  ;;  %v8280_v56 = vld [vmem:[%s7961_s19 + $0x82] sm:$0xff] }
  0xa3   : > { %v913_v60 = vpop.permute.xlu1 %912  ;;  %v8183_v61 = vpop.permute.xlu0 %530 }
  0xa4   : > { %v1235_v63 = vsel %vm1233_vm3, %v1202_v57, %v913_v60 }
  0xa5   : > { %3606 = vrot.lane.b32.xlu1 %v8178_v58, %s7915_s23  ;;  %3480 = vrot.lane.b32.xlu0 %v8181_v59, %s7914_s22 }
  0xa7   : > { %v8193_v2 = vpop.permute.xlu1 %3246  ;;  %v1039_v3 = vpop.permute.xlu0 %1038 }
  0xa8   : > { %v1267_v5 = vsel %vm1266_vm4, %v1234_v1, %v1039_v3 }
  0xa9   : > { %v1310_v9 = vsel %vm1308_vm5, %v1267_v5, 0  ;;  %924 = vrot.lane.b32.xlu1 %v8136_v40, %s7915_s23  ;;  %542 = vrot.lane.b32.xlu0 %v8118_v37, %s7912_s20  ;;  %v8221_v37 = vld [vmem:[%s7961_s19 + $0x7a] sm:$0xff] }
  0xaa   : > { %v8205_v15 = vand.u32 4294901760, %v1310_v9 }
  0xab   : > { %v3723_v24 = vpop.permute.xlu1 %3722  ;;  %v3597_v27 = vpop.permute.xlu0 %3596 }
  0xac   : > { %11300 = vst [vmem:[#allocation5_spill] sm:$0xff] %v8205_v15  ;;  %v8209_v29 = vsub.f32 %v1310_v9, %v8205_v15  ;;  %v3946_v31 = vsel %vm1266_vm4, %v3914_v16, %v3723_v24  ;;  %v3915_v9 = vsel %vm1233_vm3, %v3883_v46, %v3597_v27  ;;  %v8318_v46 = vld [vmem:[%s7961_s19 + $0x98] sm:$0xff] }
  0xad   : > { %v3983_v34 = vsel %vm1308_vm5, %v3946_v31, 0  ;;  %3258 = vrot.lane.b32.xlu1 %v8178_v58, %s7912_s20  ;;  %1050 = vrot.lane.b32.xlu0 %v8133_v39, %s7916_s24 }
  0xae   : > { %11301 = vst [vmem:[#allocation6_spill] sm:$0xff] %v8209_v29  ;;  %v8218_v35 = vand.u32 4294901760, %v3983_v34  ;;  %v10969_v43 = vand.u32 4294901760, %v8209_v29 }
  0xaf   : > { %v8227_v44 = vpop.permute.xlu1 %658  ;;  %v8229_v45 = vpop.permute.xlu0 %532 }
  0xb0   : > { %11302 = vst [vmem:[#allocation7_spill] sm:$0xff] %v8218_v35  ;;  %v8234_v50 = vsub.f32 %v3983_v34, %v8218_v35  ;;  %v1476_v53 = vsub.f32 %v8209_v29, %v10969_v43 }
  0xb1   : > { %3734 = vrot.lane.b32.xlu1 %v8221_v37, %s7916_s24  ;;  %3608 = vrot.lane.b32.xlu0 %v8224_v42, %s7915_s23 }
  0xb2   : > { %11303 = vst [vmem:[#allocation8_spill] sm:$0xff] %v8234_v50  ;;  %v1477_v62 = vand.u32 4294901760, %v1476_v53  ;;  %v10968_v41 = vand.u32 4294901760, %v8234_v50 }
  0xb3   : > { %v8247_v0 = vpop.permute.xlu1 %3248  ;;  %v1041_v1 = vpop.permute.xlu0 %1040 }
  0xb4   : > { %v1268_v3 = vsel %vm1266_vm4, %v1235_v63, %v1041_v1  ;;  %6774 = vmatprep.mubr.f32.mxu0 %v1477_v62  ;;  %v4149_v4 = vsub.f32 %v8234_v50, %v10968_v41 }
  0xb5   : > { %v1313_v5 = vsel %vm1308_vm5, %v1268_v3, 0  ;;  %670 = vrot.lane.b32.xlu1 %v8133_v39, %s7913_s21  ;;  %544 = vrot.lane.b32.xlu0 %v8136_v40, %s7912_s20 }
  0xb6   : > { %v8265_v60 = vand.u32 4294901760, %v1313_v5  ;;  %v4150_v7 = vand.u32 4294901760, %v4149_v4 }
  0xb7   : > { %v3725_v11 = vpop.permute.xlu1 %3724  ;;  %v3343_v16 = vpop.permute.xlu0 %3342 }
  0xb8   : > { %11304 = vst [vmem:[#allocation9_spill] sm:$0xff] %v8265_v60  ;;  %v8269_v51 = vsub.f32 %v1313_v5, %v8265_v60  ;;  %v3947_v24 = vsel %vm1266_vm4, %v3915_v9, %v3725_v11  ;;  %7098 = vmatprep.mubr.f32.mxu1 %v4150_v7  ;;  %v1137_v11 = vsel %vm1134_vm0, %v7976_v6, %v8183_v61 }
  0xb9   : > { %v3986_v39 = vsel %vm1308_vm5, %v3947_v24, 0  ;;  %3260 = vrot.lane.b32.xlu1 %v8224_v42, %s7912_s20  ;;  %1052 = vrot.lane.b32.xlu0 %v8152_v47, %s7916_s24  ;;  %v1170_v24 = vsel %vm1167_vm1, %v1137_v11, %v8227_v44  ;;  %v3820_v6 = vsel %vm1134_vm0, %v7983_v8, %v8193_v2 }
  0xba   : > { %11305 = vst [vmem:[#allocation10_spill] sm:$0xff] %v8269_v51  ;;  %v8277_v40 = vand.u32 4294901760, %v3986_v39  ;;  %v10967_v27 = vand.u32 4294901760, %v8269_v51  ;;  %v3852_v44 = vsel %vm1167_vm1, %v3820_v6, %v3343_v16 }
  0xbb   : > { %v787_v31 = vpop.permute.xlu1 %786  ;;  %v661_v33 = vpop.permute.xlu0 %660 }
  0xbc   : > { %11306 = vst [vmem:[#allocation11_spill] sm:$0xff] %v8277_v40  ;;  %v8284_v34 = vsub.f32 %v3986_v39, %v8277_v40  ;;  %v1486_v48 = vsub.f32 %v8269_v51, %v10967_v27  ;;  %v1203_v39 = vsel %vm1200_vm2, %v1170_v24, %v787_v31 }
  0xbd   : > { %3736 = vrot.lane.b32.xlu1 %v8280_v56, %s7916_s24  ;;  %3354 = vrot.lane.b32.xlu0 %v8221_v37, %s7913_s21 }
  0xbe   : > { %11307 = vst [vmem:[#allocation12_spill] sm:$0xff] %v8284_v34  ;;  %v1487_v53 = vand.u32 4294901760, %v1486_v48  ;;  %v10962_v55 = vand.u32 4294901760, %v8284_v34 }
  0xbf   : > { %v3471_v57 = vpop.permute.xlu1 %3470  ;;  %v8294_v62 = vpop.permute.xlu0 %3344 }
  0xc0   : > { %6775 = vmatmul.mubr.f32.vlgmr.msra.gmra.mrb[0].mxu0 %v1487_v53  ;;  %v4159_v63 = vsub.f32 %v8284_v34, %v10962_v55  ;;  %v3884_v31 = vsel %vm1200_vm2, %v3852_v44, %v3471_v57  ;;  %v8361_v57 = vld [vmem:[%s7961_s19 + $0x92] sm:$0xff]  ;;  %v1138_v44 = vsel %vm1134_vm0, %v7990_v10, %v8229_v45 }
  0xc1   : > { %798 = vrot.lane.b32.xlu1 %v8164_v52, %s7914_s22  ;;  %672 = vrot.lane.b32.xlu0 %v8152_v47, %s7913_s21  ;;  %v8315_v47 = vld [vmem:[%s7961_s19 + $0x91] sm:$0xff] }
  0xc2   : > { %v4160_v1 = vand.u32 4294901760, %v4159_v63 }
  0xc3   : > { %v915_v3 = vpop.permute.xlu1 %914  ;;  %v789_v4 = vpop.permute.xlu0 %788 }
  0xc4   : > { %7099 = vmatmul.mubr.f32.vlgmr.msra.gmra.mrb[0].mxu1 %v4160_v1  ;;  %v1236_v48 = vsel %vm1233_vm3, %v1203_v39, %v915_v3 }
  0xc5   : > { %3482 = vrot.lane.b32.xlu1 %v8304_v49, %s7914_s22  ;;  %3356 = vrot.lane.b32.xlu0 %v8280_v56, %s7913_s21 }
  0xc7   : > { %v3599_v54 = vpop.permute.xlu1 %3598  ;;  %v3473_v5 = vpop.permute.xlu0 %3472 }
  0xc8   : > { %v3916_v2 = vsel %vm1233_vm3, %v3884_v31, %v3599_v54  ;;  %v8364_v54 = vld [vmem:[%s7961_s19 + $0x99] sm:$0xff] }
  0xc9   : > { %926 = vrot.lane.b32.xlu1 %v8178_v58, %s7915_s23  ;;  %800 = vrot.lane.b32.xlu0 %v8181_v59, %s7914_s22 }
  0xcb   : > { %v917_v7 = vpop.permute.xlu1 %916  ;;  %v8320_v9 = vpop.permute.xlu0 %534 }
  0xcc   : > { %v1139_v27 = vsel %vm1134_vm0, %v7983_v8, %v8320_v9 }
  0xcd   : > { %3610 = vrot.lane.b32.xlu1 %v8315_v47, %s7915_s23  ;;  %3484 = vrot.lane.b32.xlu0 %v8318_v46, %s7914_s22 }
  0xcf   : > { %v8333_v53 = vpop.permute.xlu1 %3250  ;;  %v1043_v63 = vpop.permute.xlu0 %1042 }
  0xd0   : > { %v1269_v61 = vsel %vm1266_vm4, %v1236_v48, %v1043_v63  ;;  %v3822_v8 = vsel %vm1134_vm0, %v8075_v30, %v8333_v53 }
  0xd1   : > { %v1316_v1 = vsel %vm1308_vm5, %v1269_v61, 0  ;;  %928 = vrot.lane.b32.xlu1 %v8224_v42, %s7915_s23  ;;  %546 = vrot.lane.b32.xlu0 %v8178_v58, %s7912_s20 }
  0xd2   : > { %v8346_v3 = vand.u32 4294901760, %v1316_v1 }
  0xd3   : > { %v3727_v11 = vpop.permute.xlu1 %3726  ;;  %v3601_v24 = vpop.permute.xlu0 %3600 }
  0xd4   : > { %11308 = vst [vmem:[#allocation13_spill] sm:$0xff] %v8346_v3  ;;  %v8350_v39 = vsub.f32 %v1316_v1, %v8346_v3  ;;  %v3948_v16 = vsel %vm1266_vm4, %v3916_v2, %v3727_v11  ;;  %v1171_v2 = vsel %vm1167_vm1, %v1138_v44, %v661_v33  ;;  %v3821_v33 = vsel %vm1134_vm0, %v7997_v12, %v8247_v0 }
  0xd5   : > { %v3989_v48 = vsel %vm1308_vm5, %v3948_v16, 0  ;;  %3262 = vrot.lane.b32.xlu1 %v8315_v47, %s7912_s20  ;;  %1054 = vrot.lane.b32.xlu0 %v8221_v37, %s7916_s24  ;;  %v1204_v11 = vsel %vm1200_vm2, %v1171_v2, %v789_v4  ;;  %v3853_v4 = vsel %vm1167_vm1, %v3821_v33, %v8294_v62 }
  0xd6   : > { %11309 = vst [vmem:[#allocation14_spill] sm:$0xff] %v8350_v39  ;;  %v8358_v58 = vand.u32 4294901760, %v3989_v48  ;;  %v10963_v63 = vand.u32 4294901760, %v8350_v39  ;;  %v1237_v45 = vsel %vm1233_vm3, %v1204_v11, %v917_v7  ;;  %v3885_v0 = vsel %vm1200_vm2, %v3853_v4, %v3473_v5  ;;  %v8420_v5 = vld [vmem:[%s7961_s19 + $0x9a] sm:$0xff] }
  0xd7   : > { %v8367_v6 = vpop.permute.xlu1 %662  ;;  %v8369_v61 = vpop.permute.xlu0 %536  ;;  %v3917_v2 = vsel %vm1233_vm3, %v3885_v0, %v3601_v24 }
  0xd8   : > { %11310 = vst [vmem:[#allocation15_spill] sm:$0xff] %v8358_v58  ;;  %v8375_v1 = vsub.f32 %v3989_v48, %v8358_v58  ;;  %v1496_v31 = vsub.f32 %v8350_v39, %v10963_v63  ;;  %v1172_v41 = vsel %vm1167_vm1, %v1139_v27, %v8367_v6 }
  0xd9   : > { %3738 = vrot.lane.b32.xlu1 %v8361_v57, %s7916_s24  ;;  %3612 = vrot.lane.b32.xlu0 %v8364_v54, %s7915_s23 }
  0xda   : > { %11311 = vst [vmem:[#allocation16_spill] sm:$0xff] %v8375_v1  ;;  %v1497_v16 = vand.u32 4294901760, %v1496_v31  ;;  %v10966_v10 = vand.u32 4294901760, %v8375_v1 }
  0xdb   : > { %v8388_v48 = vpop.permute.xlu1 %3252  ;;  %v1045_v55 = vpop.permute.xlu0 %1044 }
  0xdc   : > { %v1270_v44 = vsel %vm1266_vm4, %v1237_v45, %v1045_v55  ;;  %6777 = vmatprep.mubr.f32.mxu0 %v1497_v16  ;;  %v4169_v63 = vsub.f32 %v8375_v1, %v10966_v10 }
  0xdd   : > { %v1319_v31 = vsel %vm1308_vm5, %v1270_v44, 0  ;;  %674 = vrot.lane.b32.xlu1 %v8221_v37, %s7913_s21  ;;  %548 = vrot.lane.b32.xlu0 %v8224_v42, %s7912_s20 }
  0xde   : > { %v8405_v55 = vand.u32 4294901760, %v1319_v31  ;;  %v4170_v7 = vand.u32 4294901760, %v4169_v63 }
  0xdf   : > { %v3729_v11 = vpop.permute.xlu1 %3728  ;;  %v3347_v16 = vpop.permute.xlu0 %3346 }
  0xe0   : > { %11312 = vst [vmem:[#allocation17_spill] sm:$0xff] %v8405_v55  ;;  %v8409_v62 = vsub.f32 %v1319_v31, %v8405_v55  ;;  %v3949_v45 = vsel %vm1266_vm4, %v3917_v2, %v3729_v11  ;;  %7101 = vmatprep.mubr.f32.mxu1 %v4170_v7  ;;  %v3854_v27 = vsel %vm1167_vm1, %v3822_v8, %v3347_v16 }
  0xe1   : > { %v3992_v37 = vsel %vm1308_vm5, %v3949_v45, 0  ;;  %3264 = vrot.lane.b32.xlu1 %v8364_v54, %s7912_s20  ;;  %1056 = vrot.lane.b32.xlu0 %v8280_v56, %s7916_s24 }
  0xe2   : > { %11313 = vst [vmem:[#allocation18_spill] sm:$0xff] %v8409_v62  ;;  %v8417_v42 = vand.u32 4294901760, %v3992_v37  ;;  %v10964_v24 = vand.u32 4294901760, %v8409_v62 }
  0xe3   : > { %v791_v63 = vpop.permute.xlu1 %790  ;;  %v665_v33 = vpop.permute.xlu0 %664 }
  0xe4   : > { %11314 = vst [vmem:[#allocation19_spill] sm:$0xff] %v8417_v42  ;;  %v8424_v44 = vsub.f32 %v3992_v37, %v8417_v42  ;;  %v1506_v4 = vsub.f32 %v8409_v62, %v10964_v24  ;;  %v8444_v37 = vld [vmem:[%s7961_s19 + $0xa8] sm:$0xff]  ;;  %v1205_v43 = vsel %vm1200_vm2, %v1172_v41, %v791_v63 }
  0xe5   : > { %3740 = vrot.lane.b32.xlu1 %v8420_v5, %s7916_s24  ;;  %3358 = vrot.lane.b32.xlu0 %v8361_v57, %s7913_s21 }
  0xe6   : > { %11315 = vst [vmem:[#allocation20_spill] sm:$0xff] %v8424_v44  ;;  %v1507_v31 = vand.u32 4294901760, %v1506_v4  ;;  %v10965_v0 = vand.u32 4294901760, %v8424_v44 }
  0xe7   : > { %v3475_v7 = vpop.permute.xlu1 %3474  ;;  %v8434_v2 = vpop.permute.xlu0 %3348 }
  0xe8   : > { %6778 = vmatmul.mubr.f32.gmra.mrb[2].mxu0 %v1507_v31  ;;  %v4179_v11 = vsub.f32 %v8424_v44, %v10965_v0 }
  0xe9   : > { %802 = vrot.lane.b32.xlu1 %v8304_v49, %s7914_s22  ;;  %676 = vrot.lane.b32.xlu0 %v8280_v56, %s7913_s21  ;;  %v8455_v56 = vld [vmem:[%s7961_s19 + $0xa9] sm:$0xff] }
  0xea   : > { %v4180_v45 = vand.u32 4294901760, %v4179_v11  ;;  %v8458_v11 = vld [vmem:[%s7961_s19 + $0xb0] sm:$0xff] }
  0xeb   : > { %v919_v4 = vpop.permute.xlu1 %918  ;;  %v793_v24 = vpop.permute.xlu0 %792 }
  0xec   : > { %7102 = vmatmul.mubr.f32.gmra.mrb[2].mxu1 %v4180_v45  ;;  %v1238_v23 = vsel %vm1233_vm3, %v1205_v43, %v919_v4  ;;  %v3886_v43 = vsel %vm1200_vm2, %v3854_v27, %v3475_v7  ;;  %v8501_v7 = vld [vmem:[%s7961_s19 + $0xaa] sm:$0xff] }
  0xed   : > { %3486 = vrot.lane.b32.xlu1 %v8444_v37, %s7914_s22  ;;  %3360 = vrot.lane.b32.xlu0 %v8420_v5, %s7913_s21 }
  0xef   : > { %v3603_v31 = vpop.permute.xlu1 %3602  ;;  %v3477_v0 = vpop.permute.xlu0 %3476 }
  0xf0   : > { %v3918_v53 = vsel %vm1233_vm3, %v3886_v43, %v3603_v31  ;;  %v8504_v31 = vld [vmem:[%s7961_s19 + $0xb1] sm:$0xff] }
  0xf1   : > { %930 = vrot.lane.b32.xlu1 %v8315_v47, %s7915_s23  ;;  %804 = vrot.lane.b32.xlu0 %v8318_v46, %s7914_s22 }
  0xf3   : > { %v921_v10 = vpop.permute.xlu1 %920  ;;  %v8460_v45 = vpop.permute.xlu0 %538 }
  0xf5   : > { %3614 = vrot.lane.b32.xlu1 %v8455_v56, %s7915_s23  ;;  %3488 = vrot.lane.b32.xlu0 %v8458_v11, %s7914_s22 }
  0xf7   : > { %v8473_v22 = vpop.permute.xlu1 %3254  ;;  %v1047_v18 = vpop.permute.xlu0 %1046 }
  0xf8   : > { %v1271_v9 = vsel %vm1266_vm4, %v1238_v23, %v1047_v18 }
  0xf9   : > { %v1322_v6 = vsel %vm1308_vm5, %v1271_v9, 0  ;;  %932 = vrot.lane.b32.xlu1 %v8364_v54, %s7915_s23  ;;  %550 = vrot.lane.b32.xlu0 %v8315_v47, %s7912_s20 }
  0xfa   : > { %v8486_v41 = vand.u32 4294901760, %v1322_v6 }
  0xfb   : > { %v3731_v63 = vpop.permute.xlu1 %3730  ;;  %v3605_v18 = vpop.permute.xlu0 %3604 }
  0xfc   : > { %11316 = vst [vmem:[#allocation21_spill] sm:$0xff] %v8486_v41  ;;  %v8490_v23 = vsub.f32 %v1322_v6, %v8486_v41  ;;  %v3950_v16 = vsel %vm1266_vm4, %v3918_v53, %v3731_v63  ;;  %v1140_v6 = vsel %vm1134_vm0, %v7997_v12, %v8369_v61 }
  0xfd   : > { %v3995_v4 = vsel %vm1308_vm5, %v3950_v16, 0  ;;  %3266 = vrot.lane.b32.xlu1 %v8455_v56, %s7912_s20  ;;  %1058 = vrot.lane.b32.xlu0 %v8361_v57, %s7916_s24  ;;  %v1173_v63 = vsel %vm1167_vm1, %v1140_v6, %v665_v33  ;;  %v3823_v33 = vsel %vm1134_vm0, %v8085_v32, %v8388_v48 }
  0xfe   : > { %11317 = vst [vmem:[#allocation22_spill] sm:$0xff] %v8490_v23  ;;  %v8498_v47 = vand.u32 4294901760, %v3995_v4  ;;  %v10976_v8 = vand.u32 4294901760, %v8490_v23  ;;  %v1206_v16 = vsel %vm1200_vm2, %v1173_v63, %v793_v24  ;;  %v3855_v24 = vsel %vm1167_vm1, %v3823_v33, %v8434_v2 }
  0xff   : > { %v8507_v9 = vpop.permute.xlu1 %666  ;;  %v8509_v27 = vpop.permute.xlu0 %540  ;;  %v1239_v61 = vsel %vm1233_vm3, %v1206_v16, %v921_v10  ;;  %v3887_v10 = vsel %vm1200_vm2, %v3855_v24, %v3477_v0  ;;  %v8560_v0 = vld [vmem:[%s7961_s19 + $0xb2] sm:$0xff] }
 0x100   : > { %11318 = vst [vmem:[#allocation23_spill] sm:$0xff] %v8498_v47  ;;  %v8515_v43 = vsub.f32 %v3995_v4, %v8498_v47  ;;  %v1516_v53 = vsub.f32 %v8490_v23, %v10976_v8 }
 0x101   : > { %3742 = vrot.lane.b32.xlu1 %v8501_v7, %s7916_s24  ;;  %3616 = vrot.lane.b32.xlu0 %v8504_v31, %s7915_s23 }
 0x102   : > { %11319 = vst [vmem:[#allocation24_spill] sm:$0xff] %v8515_v43  ;;  %v1517_v17 = vand.u32 4294901760, %v1516_v53  ;;  %v10979_v12 = vand.u32 4294901760, %v8515_v43 }
 0x103   : > { %v8528_v4 = vpop.permute.xlu1 %3256  ;;  %v1049_v44 = vpop.permute.xlu0 %1048 }
 0x104   : > { %v1272_v6 = vsel %vm1266_vm4, %v1239_v61, %v1049_v44  ;;  %6780 = vmatprep.mubr.f32.mxu0 %v1517_v17  ;;  %v4189_v8 = vsub.f32 %v8515_v43, %v10979_v12  ;;  %v3919_v44 = vsel %vm1233_vm3, %v3887_v10, %v3605_v18 }
 0x105   : > { %v1325_v53 = vsel %vm1308_vm5, %v1272_v6, 0  ;;  %678 = vrot.lane.b32.xlu1 %v8361_v57, %s7913_s21  ;;  %552 = vrot.lane.b32.xlu0 %v8364_v54, %s7912_s20 }
 0x106   : > { %v8545_v48 = vand.u32 4294901760, %v1325_v53  ;;  %v4190_v17 = vand.u32 4294901760, %v4189_v8 }
 0x107   : > { %v3733_v63 = vpop.permute.xlu1 %3732  ;;  %v3351_v16 = vpop.permute.xlu0 %3350 }
 0x108   : > { %11320 = vst [vmem:[#allocation25_spill] sm:$0xff] %v8545_v48  ;;  %v8549_v2 = vsub.f32 %v1325_v53, %v8545_v48  ;;  %v3951_v61 = vsel %vm1266_vm4, %v3919_v44, %v3733_v63  ;;  %7104 = vmatprep.mubr.f32.mxu1 %v4190_v17 }
 0x109   : > { %v3998_v57 = vsel %vm1308_vm5, %v3951_v61, 0  ;;  %3268 = vrot.lane.b32.xlu1 %v8504_v31, %s7912_s20  ;;  %1060 = vrot.lane.b32.xlu0 %v8420_v5, %s7916_s24 }
 0x10a   : > { %11321 = vst [vmem:[#allocation26_spill] sm:$0xff] %v8549_v2  ;;  %v8557_v54 = vand.u32 4294901760, %v3998_v57  ;;  %v10977_v18 = vand.u32 4294901760, %v8549_v2 }
 0x10b   : > { %v795_v8 = vpop.permute.xlu1 %794  ;;  %v669_v33 = vpop.permute.xlu0 %668 }
 0x10c   : > { %11322 = vst [vmem:[#allocation27_spill] sm:$0xff] %v8557_v54  ;;  %v8564_v6 = vsub.f32 %v3998_v57, %v8557_v54  ;;  %v1526_v24 = vsub.f32 %v8549_v2, %v10977_v18  ;;  %v8584_v57 = vld [vmem:[%s7961_s19 + $0xc0] sm:$0xff] }
 0x10d   : > { %3744 = vrot.lane.b32.xlu1 %v8560_v0, %s7916_s24  ;;  %3362 = vrot.lane.b32.xlu0 %v8501_v7, %s7913_s21 }
 0x10e   : > { %11323 = vst [vmem:[#allocation28_spill] sm:$0xff] %v8564_v6  ;;  %v1527_v53 = vand.u32 4294901760, %v1526_v24  ;;  %v10978_v10 = vand.u32 4294901760, %v8564_v6 }
 0x10f   : > { %v3479_v17 = vpop.permute.xlu1 %3478  ;;  %v8574_v44 = vpop.permute.xlu0 %3352 }
 0x110   : > { %6781 = vmatmul.mubr.f32.gmra.mrb[4].mxu0 %v1527_v53  ;;  %v4199_v63 = vsub.f32 %v8564_v6, %v10978_v10  ;;  %v1141_v6 = vsel %vm1134_vm0, %v8075_v30, %v8460_v45  ;;  %v3824_v30 = vsel %vm1134_vm0, %v8109_v36, %v8473_v22 }
 0x111   : > { %806 = vrot.lane.b32.xlu1 %v8444_v37, %s7914_s22  ;;  %680 = vrot.lane.b32.xlu0 %v8420_v5, %s7913_s21  ;;  %v8595_v5 = vld [vmem:[%s7961_s19 + $0xc1] sm:$0xff]  ;;  %v1174_v2 = vsel %vm1167_vm1, %v1141_v6, %v8507_v9  ;;  %v3856_v9 = vsel %vm1167_vm1, %v3824_v30, %v3351_v16 }
 0x112   : > { %v4200_v61 = vand.u32 4294901760, %v4199_v63  ;;  %v8598_v63 = vld [vmem:[%s7961_s19 + $0xc8] sm:$0xff]  ;;  %v1207_v43 = vsel %vm1200_vm2, %v1174_v2, %v795_v8 }
 0x113   : > { %v923_v24 = vpop.permute.xlu1 %922  ;;  %v797_v18 = vpop.permute.xlu0 %796 }
 0x114   : > { %7105 = vmatmul.mubr.f32.gmra.mrb[4].mxu1 %v4200_v61  ;;  %v1240_v23 = vsel %vm1233_vm3, %v1207_v43, %v923_v24  ;;  %v3888_v43 = vsel %vm1200_vm2, %v3856_v9, %v3479_v17  ;;  %v8641_v17 = vld [vmem:[%s7961_s19 + $0xc2] sm:$0xff] }
 0x115   : > { %3490 = vrot.lane.b32.xlu1 %v8584_v57, %s7914_s22  ;;  %3364 = vrot.lane.b32.xlu0 %v8560_v0, %s7913_s21 }
 0x117   : > { %v3607_v53 = vpop.permute.xlu1 %3606  ;;  %v3481_v10 = vpop.permute.xlu0 %3480 }
 0x118   : > { %v3920_v22 = vsel %vm1233_vm3, %v3888_v43, %v3607_v53  ;;  %v8644_v53 = vld [vmem:[%s7961_s19 + $0xc9] sm:$0xff] }
 0x119   : > { %934 = vrot.lane.b32.xlu1 %v8455_v56, %s7915_s23  ;;  %808 = vrot.lane.b32.xlu0 %v8458_v11, %s7914_s22 }
 0x11b   : > { %v925_v12 = vpop.permute.xlu1 %924  ;;  %v8600_v61 = vpop.permute.xlu0 %542 }
 0x11d   : > { %3618 = vrot.lane.b32.xlu1 %v8595_v5, %s7915_s23  ;;  %3492 = vrot.lane.b32.xlu0 %v8598_v63, %s7914_s22 }
 0x11f   : > { %v8613_v62 = vpop.permute.xlu1 %3258  ;;  %v1051_v1 = vpop.permute.xlu0 %1050 }
 0x120   : > { %v1273_v45 = vsel %vm1266_vm4, %v1240_v23, %v1051_v1 }
 0x121   : > { %v1328_v6 = vsel %vm1308_vm5, %v1273_v45, 0  ;;  %936 = vrot.lane.b32.xlu1 %v8504_v31, %s7915_s23  ;;  %554 = vrot.lane.b32.xlu0 %v8455_v56, %s7912_s20 }
 0x122   : > { %v8626_v2 = vand.u32 4294901760, %v1328_v6 }
 0x123   : > { %v3735_v8 = vpop.permute.xlu1 %3734  ;;  %v3609_v1 = vpop.permute.xlu0 %3608 }
 0x124   : > { %11324 = vst [vmem:[#allocation29_spill] sm:$0xff] %v8626_v2  ;;  %v8630_v23 = vsub.f32 %v1328_v6, %v8626_v2  ;;  %v3952_v16 = vsel %vm1266_vm4, %v3920_v22, %v3735_v8  ;;  %v1142_v6 = vsel %vm1134_vm0, %v8085_v32, %v8509_v27 }
 0x125   : > { %v4001_v24 = vsel %vm1308_vm5, %v3952_v16, 0  ;;  %3270 = vrot.lane.b32.xlu1 %v8595_v5, %s7912_s20  ;;  %1062 = vrot.lane.b32.xlu0 %v8501_v7, %s7916_s24  ;;  %v1175_v8 = vsel %vm1167_vm1, %v1142_v6, %v669_v33  ;;  %v3825_v33 = vsel %vm1134_vm0, %v8121_v38, %v8528_v4 }
 0x126   : > { %11325 = vst [vmem:[#allocation30_spill] sm:$0xff] %v8630_v23  ;;  %v8638_v56 = vand.u32 4294901760, %v4001_v24  ;;  %v10996_v30 = vand.u32 4294901760, %v8630_v23  ;;  %v1208_v16 = vsel %vm1200_vm2, %v1175_v8, %v797_v18  ;;  %v3857_v18 = vsel %vm1167_vm1, %v3825_v33, %v8574_v44 }
 0x127   : > { %v8647_v45 = vpop.permute.xlu1 %670  ;;  %v8649_v9 = vpop.permute.xlu0 %544  ;;  %v1241_v27 = vsel %vm1233_vm3, %v1208_v16, %v925_v12  ;;  %v3889_v12 = vsel %vm1200_vm2, %v3857_v18, %v3481_v10  ;;  %v8700_v10 = vld [vmem:[%s7961_s19 + $0xca] sm:$0xff] }
 0x128   : > { %11326 = vst [vmem:[#allocation31_spill] sm:$0xff] %v8638_v56  ;;  %v8655_v43 = vsub.f32 %v4001_v24, %v8638_v56  ;;  %v1536_v22 = vsub.f32 %v8630_v23, %v10996_v30  ;;  %v3921_v4 = vsel %vm1233_vm3, %v3889_v12, %v3609_v1 }
 0x129   : > { %3746 = vrot.lane.b32.xlu1 %v8641_v17, %s7916_s24  ;;  %3620 = vrot.lane.b32.xlu0 %v8644_v53, %s7915_s23 }
 0x12a   : > { %11327 = vst [vmem:[#allocation32_spill] sm:$0xff] %v8655_v43  ;;  %v1537_v39 = vand.u32 4294901760, %v1536_v22  ;;  %v10999_v32 = vand.u32 4294901760, %v8655_v43 }
 0x12b   : > { %v8668_v24 = vpop.permute.xlu1 %3260  ;;  %v1053_v34 = vpop.permute.xlu0 %1052 }
 0x12c   : > { %v1274_v6 = vsel %vm1266_vm4, %v1241_v27, %v1053_v34  ;;  %6783 = vmatprep.mubr.f32.mxu0 %v1537_v39  ;;  %v4209_v30 = vsub.f32 %v8655_v43, %v10999_v32 }
 0x12d   : > { %v1331_v22 = vsel %vm1308_vm5, %v1274_v6, 0  ;;  %682 = vrot.lane.b32.xlu1 %v8501_v7, %s7913_s21  ;;  %556 = vrot.lane.b32.xlu0 %v8504_v31, %s7912_s20 }
 0x12e   : > { %v8685_v34 = vand.u32 4294901760, %v1331_v22  ;;  %v4210_v39 = vand.u32 4294901760, %v4209_v30 }
 0x12f   : > { %v3737_v8 = vpop.permute.xlu1 %3736  ;;  %v3355_v16 = vpop.permute.xlu0 %3354 }
 0x130   : > { %11328 = vst [vmem:[#allocation33_spill] sm:$0xff] %v8685_v34  ;;  %v8689_v44 = vsub.f32 %v1331_v22, %v8685_v34  ;;  %v3953_v27 = vsel %vm1266_vm4, %v3921_v4, %v3737_v8  ;;  %7107 = vmatprep.mubr.f32.mxu1 %v4210_v39 }
 0x131   : > { %v4004_v7 = vsel %vm1308_vm5, %v3953_v27, 0  ;;  %3272 = vrot.lane.b32.xlu1 %v8644_v53, %s7912_s20  ;;  %1064 = vrot.lane.b32.xlu0 %v8560_v0, %s7916_s24 }
 0x132   : > { %11329 = vst [vmem:[#allocation34_spill] sm:$0xff] %v8689_v44  ;;  %v8697_v31 = vand.u32 4294901760, %v4004_v7  ;;  %v10997_v1 = vand.u32 4294901760, %v8689_v44 }
 0x133   : > { %v799_v30 = vpop.permute.xlu1 %798  ;;  %v673_v33 = vpop.permute.xlu0 %672 }
 0x134   : > { %11330 = vst [vmem:[#allocation35_spill] sm:$0xff] %v8697_v31  ;;  %v8704_v6 = vsub.f32 %v4004_v7, %v8697_v31  ;;  %v1546_v18 = vsub.f32 %v8689_v44, %v10997_v1  ;;  %v8724_v7 = vld [vmem:[%s7961_s19 + $0xd8] sm:$0xff]  ;;  %v9770_v31 = vld [vmem:[%s7961_s19 + $0x188] sm:$0xff] }
 0x135   : > { %3748 = vrot.lane.b32.xlu1 %v8700_v10, %s7916_s24  ;;  %3366 = vrot.lane.b32.xlu0 %v8641_v17, %s7913_s21 }
 0x136   : > { %11331 = vst [vmem:[#allocation36_spill] sm:$0xff] %v8704_v6  ;;  %v1547_v22 = vand.u32 4294901760, %v1546_v18  ;;  %v10998_v12 = vand.u32 4294901760, %v8704_v6 }
 0x137   : > { %v3483_v39 = vpop.permute.xlu1 %3482  ;;  %v8714_v4 = vpop.permute.xlu0 %3356 }
 0x138   : > { %6784 = vmatmul.mubr.f32.gmra.mrb[6].mxu0 %v1547_v22  ;;  %v4219_v8 = vsub.f32 %v8704_v6, %v10998_v12  ;;  %v1143_v6 = vsel %vm1134_vm0, %v8109_v36, %v8600_v61  ;;  %v3826_v36 = vsel %vm1134_vm0, %v8164_v52, %v8613_v62 }
 0x139   : > { %810 = vrot.lane.b32.xlu1 %v8584_v57, %s7914_s22  ;;  %684 = vrot.lane.b32.xlu0 %v8560_v0, %s7913_s21  ;;  %v8735_v0 = vld [vmem:[%s7961_s19 + $0xd9] sm:$0xff]  ;;  %v1176_v44 = vsel %vm1167_vm1, %v1143_v6, %v8647_v45  ;;  %v3858_v45 = vsel %vm1167_vm1, %v3826_v36, %v3355_v16 }
 0x13a   : > { %v4220_v27 = vand.u32 4294901760, %v4219_v8  ;;  %v8738_v8 = vld [vmem:[%s7961_s19 + $0xe0] sm:$0xff]  ;;  %v1209_v43 = vsel %vm1200_vm2, %v1176_v44, %v799_v30 }
 0x13b   : > { %v927_v18 = vpop.permute.xlu1 %926  ;;  %v801_v1 = vpop.permute.xlu0 %800 }
 0x13c   : > { %7108 = vmatmul.mubr.f32.gmra.mrb[6].mxu1 %v4220_v27  ;;  %v1242_v23 = vsel %vm1233_vm3, %v1209_v43, %v927_v18  ;;  %v3890_v43 = vsel %vm1200_vm2, %v3858_v45, %v3483_v39  ;;  %v8781_v39 = vld [vmem:[%s7961_s19 + $0xda] sm:$0xff] }
 0x13d   : > { %3494 = vrot.lane.b32.xlu1 %v8724_v7, %s7914_s22  ;;  %3368 = vrot.lane.b32.xlu0 %v8700_v10, %s7913_s21 }
 0x13f   : > { %v3611_v22 = vpop.permute.xlu1 %3610  ;;  %v3485_v12 = vpop.permute.xlu0 %3484 }
 0x140   : > { %v3922_v62 = vsel %vm1233_vm3, %v3890_v43, %v3611_v22  ;;  %v8784_v22 = vld [vmem:[%s7961_s19 + $0xe1] sm:$0xff] }
 0x141   : > { %938 = vrot.lane.b32.xlu1 %v8595_v5, %s7915_s23  ;;  %812 = vrot.lane.b32.xlu0 %v8598_v63, %s7914_s22 }
 0x143   : > { %v929_v32 = vpop.permute.xlu1 %928  ;;  %v8740_v27 = vpop.permute.xlu0 %546 }
 0x145   : > { %3622 = vrot.lane.b32.xlu1 %v8735_v0, %s7915_s23  ;;  %3496 = vrot.lane.b32.xlu0 %v8738_v8, %s7914_s22 }
 0x147   : > { %v8753_v51 = vpop.permute.xlu1 %3262  ;;  %v1055_v50 = vpop.permute.xlu0 %1054 }
 0x148   : > { %v1275_v61 = vsel %vm1266_vm4, %v1242_v23, %v1055_v50 }
 0x149   : > { %v1334_v6 = vsel %vm1308_vm5, %v1275_v61, 0  ;;  %940 = vrot.lane.b32.xlu1 %v8644_v53, %s7915_s23  ;;  %558 = vrot.lane.b32.xlu0 %v8595_v5, %s7912_s20 }
 0x14a   : > { %v8766_v44 = vand.u32 4294901760, %v1334_v6 }
 0x14b   : > { %v3739_v30 = vpop.permute.xlu1 %3738  ;;  %v3613_v50 = vpop.permute.xlu0 %3612 }
 0x14c   : > { %11332 = vst [vmem:[#allocation37_spill] sm:$0xff] %v8766_v44  ;;  %v8770_v23 = vsub.f32 %v1334_v6, %v8766_v44  ;;  %v3954_v16 = vsel %vm1266_vm4, %v3922_v62, %v3739_v30  ;;  %v1144_v6 = vsel %vm1134_vm0, %v8121_v38, %v8649_v9 }
 0x14d   : > { %v4007_v18 = vsel %vm1308_vm5, %v3954_v16, 0  ;;  %3274 = vrot.lane.b32.xlu1 %v8735_v0, %s7912_s20  ;;  %1066 = vrot.lane.b32.xlu0 %v8641_v17, %s7916_s24  ;;  %v1177_v30 = vsel %vm1167_vm1, %v1144_v6, %v673_v33  ;;  %v3827_v33 = vsel %vm1134_vm0, %v8181_v59, %v8668_v24 }
 0x14e   : > { %11333 = vst [vmem:[#allocation38_spill] sm:$0xff] %v8770_v23  ;;  %v8778_v5 = vand.u32 4294901760, %v4007_v18  ;;  %v11016_v36 = vand.u32 4294901760, %v8770_v23  ;;  %v1210_v16 = vsel %vm1200_vm2, %v1177_v30, %v801_v1  ;;  %v3859_v1 = vsel %vm1167_vm1, %v3827_v33, %v8714_v4 }
 0x14f   : > { %v8787_v61 = vpop.permute.xlu1 %674  ;;  %v8789_v45 = vpop.permute.xlu0 %548  ;;  %v1243_v9 = vsel %vm1233_vm3, %v1210_v16, %v929_v32  ;;  %v3891_v32 = vsel %vm1200_vm2, %v3859_v1, %v3485_v12  ;;  %v8840_v12 = vld [vmem:[%s7961_s19 + $0xe2] sm:$0xff] }
 0x150   : > { %11334 = vst [vmem:[#allocation39_spill] sm:$0xff] %v8778_v5  ;;  %v8795_v43 = vsub.f32 %v4007_v18, %v8778_v5  ;;  %v1556_v62 = vsub.f32 %v8770_v23, %v11016_v36 }
 0x151   : > { %3750 = vrot.lane.b32.xlu1 %v8781_v39, %s7916_s24  ;;  %3624 = vrot.lane.b32.xlu0 %v8784_v22, %s7915_s23 }
 0x152   : > { %11335 = vst [vmem:[#allocation40_spill] sm:$0xff] %v8795_v43  ;;  %v1557_v29 = vand.u32 4294901760, %v1556_v62  ;;  %v11019_v38 = vand.u32 4294901760, %v8795_v43 }
 0x153   : > { %v8808_v18 = vpop.permute.xlu1 %3264  ;;  %v1057_v5 = vpop.permute.xlu0 %1056 }
 0x154   : > { %v1276_v6 = vsel %vm1266_vm4, %v1243_v9, %v1057_v5  ;;  %6786 = vmatprep.mubr.f32.mxu0 %v1557_v29  ;;  %v4229_v36 = vsub.f32 %v8795_v43, %v11019_v38  ;;  %v3923_v5 = vsel %vm1233_vm3, %v3891_v32, %v3613_v50 }
 0x155   : > { %v1337_v62 = vsel %vm1308_vm5, %v1276_v6, 0  ;;  %686 = vrot.lane.b32.xlu1 %v8641_v17, %s7913_s21  ;;  %560 = vrot.lane.b32.xlu0 %v8644_v53, %s7912_s20 }
 0x156   : > { %v8825_v24 = vand.u32 4294901760, %v1337_v62  ;;  %v4230_v29 = vand.u32 4294901760, %v4229_v36 }
 0x157   : > { %v3741_v30 = vpop.permute.xlu1 %3740  ;;  %v3359_v16 = vpop.permute.xlu0 %3358 }
 0x158   : > { %11336 = vst [vmem:[#allocation41_spill] sm:$0xff] %v8825_v24  ;;  %v8829_v4 = vsub.f32 %v1337_v62, %v8825_v24  ;;  %v3955_v9 = vsel %vm1266_vm4, %v3923_v5, %v3741_v30  ;;  %7110 = vmatprep.mubr.f32.mxu1 %v4230_v29 }
 0x159   : > { %v4010_v17 = vsel %vm1308_vm5, %v3955_v9, 0  ;;  %3276 = vrot.lane.b32.xlu1 %v8784_v22, %s7912_s20  ;;  %1068 = vrot.lane.b32.xlu0 %v8700_v10, %s7916_s24 }
 0x15a   : > { %11337 = vst [vmem:[#allocation42_spill] sm:$0xff] %v8829_v4  ;;  %v8837_v53 = vand.u32 4294901760, %v4010_v17  ;;  %v11017_v50 = vand.u32 4294901760, %v8829_v4 }
 0x15b   : > { %v803_v36 = vpop.permute.xlu1 %802  ;;  %v677_v33 = vpop.permute.xlu0 %676 }
 0x15c   : > { %11338 = vst [vmem:[#allocation43_spill] sm:$0xff] %v8837_v53  ;;  %v8844_v6 = vsub.f32 %v4010_v17, %v8837_v53  ;;  %v1566_v1 = vsub.f32 %v8829_v4, %v11017_v50  ;;  %v8864_v17 = vld [vmem:[%s7961_s19 + $0xf0] sm:$0xff] }
 0x15d   : > { %3752 = vrot.lane.b32.xlu1 %v8840_v12, %s7916_s24  ;;  %3370 = vrot.lane.b32.xlu0 %v8781_v39, %s7913_s21 }
 0x15e   : > { %11339 = vst [vmem:[#allocation44_spill] sm:$0xff] %v8844_v6  ;;  %v1567_v62 = vand.u32 4294901760, %v1566_v1  ;;  %v11018_v32 = vand.u32 4294901760, %v8844_v6 }
 0x15f   : > { %v3487_v29 = vpop.permute.xlu1 %3486  ;;  %v8854_v5 = vpop.permute.xlu0 %3360 }
 0x160   : > { %6787 = vmatmul.mubr.f32.gmra.mrb[8].mxu0 %v1567_v62  ;;  %v4239_v30 = vsub.f32 %v8844_v6, %v11018_v32  ;;  %v1145_v6 = vsel %vm1134_vm0, %v8164_v52, %v8740_v27  ;;  %v3828_v52 = vsel %vm1134_vm0, %v8304_v49, %v8753_v51 }
 0x161   : > { %814 = vrot.lane.b32.xlu1 %v8724_v7, %s7914_s22  ;;  %688 = vrot.lane.b32.xlu0 %v8700_v10, %s7913_s21  ;;  %v8875_v10 = vld [vmem:[%s7961_s19 + $0xf1] sm:$0xff]  ;;  %v1178_v4 = vsel %vm1167_vm1, %v1145_v6, %v8787_v61  ;;  %v3860_v61 = vsel %vm1167_vm1, %v3828_v52, %v3359_v16 }
 0x162   : > { %v4240_v9 = vand.u32 4294901760, %v4239_v30  ;;  %v8878_v30 = vld [vmem:[%s7961_s19 + $0xf8] sm:$0xff]  ;;  %v1211_v43 = vsel %vm1200_vm2, %v1178_v4, %v803_v36 }
 0x163   : > { %v931_v1 = vpop.permute.xlu1 %930  ;;  %v805_v50 = vpop.permute.xlu0 %804 }
 0x164   : > { %7111 = vmatmul.mubr.f32.gmra.mrb[8].mxu1 %v4240_v9  ;;  %v1244_v23 = vsel %vm1233_vm3, %v1211_v43, %v931_v1  ;;  %v3892_v43 = vsel %vm1200_vm2, %v3860_v61, %v3487_v29  ;;  %v8921_v29 = vld [vmem:[%s7961_s19 + $0xf2] sm:$0xff] }
 0x165   : > { %3498 = vrot.lane.b32.xlu1 %v8864_v17, %s7914_s22  ;;  %3372 = vrot.lane.b32.xlu0 %v8840_v12, %s7913_s21 }
 0x167   : > { %v3615_v62 = vpop.permute.xlu1 %3614  ;;  %v3489_v32 = vpop.permute.xlu0 %3488 }
 0x168   : > { %v3924_v51 = vsel %vm1233_vm3, %v3892_v43, %v3615_v62  ;;  %v8924_v62 = vld [vmem:[%s7961_s19 + $0xf9] sm:$0xff] }
 0x169   : > { %942 = vrot.lane.b32.xlu1 %v8735_v0, %s7915_s23  ;;  %816 = vrot.lane.b32.xlu0 %v8738_v8, %s7914_s22 }
 0x16b   : > { %v933_v38 = vpop.permute.xlu1 %932  ;;  %v8880_v9 = vpop.permute.xlu0 %550 }
 0x16d   : > { %3626 = vrot.lane.b32.xlu1 %v8875_v10, %s7915_s23  ;;  %3500 = vrot.lane.b32.xlu0 %v8878_v30, %s7914_s22 }
 0x16f   : > { %v8893_v53 = vpop.permute.xlu1 %3266  ;;  %v1059_v24 = vpop.permute.xlu0 %1058 }
 0x170   : > { %v1277_v27 = vsel %vm1266_vm4, %v1244_v23, %v1059_v24 }
 0x171   : > { %v1340_v6 = vsel %vm1308_vm5, %v1277_v27, 0  ;;  %944 = vrot.lane.b32.xlu1 %v8784_v22, %s7915_s23  ;;  %562 = vrot.lane.b32.xlu0 %v8735_v0, %s7912_s20 }
 0x172   : > { %v8906_v4 = vand.u32 4294901760, %v1340_v6 }
 0x173   : > { %v3743_v36 = vpop.permute.xlu1 %3742  ;;  %v3617_v23 = vpop.permute.xlu0 %3616 }
 0x174   : > { %11340 = vst [vmem:[#allocation45_spill] sm:$0xff] %v8906_v4  ;;  %v8910_v24 = vsub.f32 %v1340_v6, %v8906_v4  ;;  %v3956_v16 = vsel %vm1266_vm4, %v3924_v51, %v3743_v36  ;;  %v1146_v6 = vsel %vm1134_vm0, %v8181_v59, %v8789_v45 }
 0x175   : > { %v4013_v1 = vsel %vm1308_vm5, %v3956_v16, 0  ;;  %3278 = vrot.lane.b32.xlu1 %v8875_v10, %s7912_s20  ;;  %1070 = vrot.lane.b32.xlu0 %v8781_v39, %s7916_s24  ;;  %v1179_v36 = vsel %vm1167_vm1, %v1146_v6, %v677_v33  ;;  %v3829_v33 = vsel %vm1134_vm0, %v8318_v46, %v8808_v18 }
 0x176   : > { %11341 = vst [vmem:[#allocation46_spill] sm:$0xff] %v8910_v24  ;;  %v8918_v0 = vand.u32 4294901760, %v4013_v1  ;;  %v11036_v52 = vand.u32 4294901760, %v8910_v24  ;;  %v1212_v16 = vsel %vm1200_vm2, %v1179_v36, %v805_v50  ;;  %v3861_v50 = vsel %vm1167_vm1, %v3829_v33, %v8854_v5 }
 0x177   : > { %v8927_v27 = vpop.permute.xlu1 %678  ;;  %v8929_v61 = vpop.permute.xlu0 %552  ;;  %v1245_v45 = vsel %vm1233_vm3, %v1212_v16, %v933_v38  ;;  %v3893_v38 = vsel %vm1200_vm2, %v3861_v50, %v3489_v32  ;;  %v8980_v32 = vld [vmem:[%s7961_s19 + $0xfa] sm:$0xff] }
 0x178   : > { %11342 = vst [vmem:[#allocation47_spill] sm:$0xff] %v8918_v0  ;;  %v8935_v43 = vsub.f32 %v4013_v1, %v8918_v0  ;;  %v1576_v51 = vsub.f32 %v8910_v24, %v11036_v52 }
 0x179   : > { %3754 = vrot.lane.b32.xlu1 %v8921_v29, %s7916_s24  ;;  %3628 = vrot.lane.b32.xlu0 %v8924_v62, %s7915_s23 }
 0x17a   : > { %11343 = vst [vmem:[#allocation48_spill] sm:$0xff] %v8935_v43  ;;  %v1577_v4 = vand.u32 4294901760, %v1576_v51  ;;  %v11039_v59 = vand.u32 4294901760, %v8935_v43 }
 0x17b   : > { %v8948_v1 = vpop.permute.xlu1 %3268  ;;  %v1061_v0 = vpop.permute.xlu0 %1060 }
 0x17c   : > { %v1278_v6 = vsel %vm1266_vm4, %v1245_v45, %v1061_v0  ;;  %6789 = vmatprep.mubr.f32.mxu0 %v1577_v4  ;;  %v4249_v52 = vsub.f32 %v8935_v43, %v11039_v59  ;;  %v3925_v0 = vsel %vm1233_vm3, %v3893_v38, %v3617_v23 }
 0x17d   : > { %v1343_v51 = vsel %vm1308_vm5, %v1278_v6, 0  ;;  %690 = vrot.lane.b32.xlu1 %v8781_v39, %s7913_s21  ;;  %564 = vrot.lane.b32.xlu0 %v8784_v22, %s7912_s20 }
 0x17e   : > { %v8965_v18 = vand.u32 4294901760, %v1343_v51  ;;  %v4250_v4 = vand.u32 4294901760, %v4249_v52 }
 0x17f   : > { %v3745_v36 = vpop.permute.xlu1 %3744  ;;  %v3363_v16 = vpop.permute.xlu0 %3362 }
 0x180   : > { %11344 = vst [vmem:[#allocation49_spill] sm:$0xff] %v8965_v18  ;;  %v8969_v5 = vsub.f32 %v1343_v51, %v8965_v18  ;;  %v3957_v45 = vsel %vm1266_vm4, %v3925_v0, %v3745_v36  ;;  %7113 = vmatprep.mubr.f32.mxu1 %v4250_v4 }
 0x181   : > { %v4016_v39 = vsel %vm1308_vm5, %v3957_v45, 0  ;;  %3280 = vrot.lane.b32.xlu1 %v8924_v62, %s7912_s20  ;;  %1072 = vrot.lane.b32.xlu0 %v8840_v12, %s7916_s24 }
 0x182   : > { %11345 = vst [vmem:[#allocation50_spill] sm:$0xff] %v8969_v5  ;;  %v8977_v22 = vand.u32 4294901760, %v4016_v39  ;;  %v11037_v23 = vand.u32 4294901760, %v8969_v5 }
 0x183   : > { %v807_v52 = vpop.permute.xlu1 %806  ;;  %v681_v33 = vpop.permute.xlu0 %680 }
 0x184   : > { %11346 = vst [vmem:[#allocation51_spill] sm:$0xff] %v8977_v22  ;;  %v8984_v6 = vsub.f32 %v4016_v39, %v8977_v22  ;;  %v1586_v50 = vsub.f32 %v8969_v5, %v11037_v23  ;;  %v9004_v39 = vld [vmem:[%s7961_s19 + $0x108] sm:$0xff] }
 0x185   : > { %3756 = vrot.lane.b32.xlu1 %v8980_v32, %s7916_s24  ;;  %3374 = vrot.lane.b32.xlu0 %v8921_v29, %s7913_s21 }
 0x186   : > { %11347 = vst [vmem:[#allocation52_spill] sm:$0xff] %v8984_v6  ;;  %v1587_v51 = vand.u32 4294901760, %v1586_v50  ;;  %v11038_v38 = vand.u32 4294901760, %v8984_v6 }
 0x187   : > { %v3491_v4 = vpop.permute.xlu1 %3490  ;;  %v8994_v0 = vpop.permute.xlu0 %3364 }
 0x188   : > { %6790 = vmatmul.mubr.f32.gmra.mrb[10].mxu0 %v1587_v51  ;;  %v4259_v36 = vsub.f32 %v8984_v6, %v11038_v38  ;;  %v1147_v6 = vsel %vm1134_vm0, %v8304_v49, %v8880_v9  ;;  %v3830_v49 = vsel %vm1134_vm0, %v8444_v37, %v8893_v53 }
 0x189   : > { %818 = vrot.lane.b32.xlu1 %v8864_v17, %s7914_s22  ;;  %692 = vrot.lane.b32.xlu0 %v8840_v12, %s7913_s21  ;;  %v9015_v12 = vld [vmem:[%s7961_s19 + $0x109] sm:$0xff]  ;;  %v1180_v5 = vsel %vm1167_vm1, %v1147_v6, %v8927_v27  ;;  %v3862_v27 = vsel %vm1167_vm1, %v3830_v49, %v3363_v16 }
 0x18a   : > { %v4260_v45 = vand.u32 4294901760, %v4259_v36  ;;  %v9018_v36 = vld [vmem:[%s7961_s19 + $0x110] sm:$0xff]  ;;  %v1213_v43 = vsel %vm1200_vm2, %v1180_v5, %v807_v52 }
 0x18b   : > { %v935_v50 = vpop.permute.xlu1 %934  ;;  %v809_v23 = vpop.permute.xlu0 %808 }
 0x18c   : > { %7114 = vmatmul.mubr.f32.gmra.mrb[10].mxu1 %v4260_v45  ;;  %v1246_v24 = vsel %vm1233_vm3, %v1213_v43, %v935_v50  ;;  %v3894_v43 = vsel %vm1200_vm2, %v3862_v27, %v3491_v4  ;;  %v9061_v4 = vld [vmem:[%s7961_s19 + $0x10a] sm:$0xff] }
 0x18d   : > { %3502 = vrot.lane.b32.xlu1 %v9004_v39, %s7914_s22  ;;  %3376 = vrot.lane.b32.xlu0 %v8980_v32, %s7913_s21 }
 0x18f   : > { %v3619_v51 = vpop.permute.xlu1 %3618  ;;  %v3493_v38 = vpop.permute.xlu0 %3492 }
 0x190   : > { %v3926_v53 = vsel %vm1233_vm3, %v3894_v43, %v3619_v51  ;;  %v9064_v51 = vld [vmem:[%s7961_s19 + $0x111] sm:$0xff] }
 0x191   : > { %946 = vrot.lane.b32.xlu1 %v8875_v10, %s7915_s23  ;;  %820 = vrot.lane.b32.xlu0 %v8878_v30, %s7914_s22 }
 0x193   : > { %v937_v59 = vpop.permute.xlu1 %936  ;;  %v9020_v45 = vpop.permute.xlu0 %554 }
 0x195   : > { %3630 = vrot.lane.b32.xlu1 %v9015_v12, %s7915_s23  ;;  %3504 = vrot.lane.b32.xlu0 %v9018_v36, %s7914_s22 }
 0x197   : > { %v9033_v22 = vpop.permute.xlu1 %3270  ;;  %v1063_v18 = vpop.permute.xlu0 %1062 }
 0x198   : > { %v1279_v9 = vsel %vm1266_vm4, %v1246_v24, %v1063_v18 }
 0x199   : > { %v1346_v6 = vsel %vm1308_vm5, %v1279_v9, 0  ;;  %948 = vrot.lane.b32.xlu1 %v8924_v62, %s7915_s23  ;;  %566 = vrot.lane.b32.xlu0 %v8875_v10, %s7912_s20 }
 0x19a   : > { %v9046_v5 = vand.u32 4294901760, %v1346_v6 }
 0x19b   : > { %v3747_v52 = vpop.permute.xlu1 %3746  ;;  %v3621_v24 = vpop.permute.xlu0 %3620 }
 0x19c   : > { %11348 = vst [vmem:[#allocation53_spill] sm:$0xff] %v9046_v5  ;;  %v9050_v18 = vsub.f32 %v1346_v6, %v9046_v5  ;;  %v3958_v16 = vsel %vm1266_vm4, %v3926_v53, %v3747_v52  ;;  %v1148_v6 = vsel %vm1134_vm0, %v8318_v46, %v8929_v61 }
 0x19d   : > { %v4019_v50 = vsel %vm1308_vm5, %v3958_v16, 0  ;;  %3282 = vrot.lane.b32.xlu1 %v9015_v12, %s7912_s20  ;;  %1074 = vrot.lane.b32.xlu0 %v8921_v29, %s7916_s24  ;;  %v1181_v52 = vsel %vm1167_vm1, %v1148_v6, %v681_v33  ;;  %v3831_v33 = vsel %vm1134_vm0, %v8458_v11, %v8948_v1 }
 0x19e   : > { %11349 = vst [vmem:[#allocation54_spill] sm:$0xff] %v9050_v18  ;;  %v9058_v10 = vand.u32 4294901760, %v4019_v50  ;;  %v11056_v49 = vand.u32 4294901760, %v9050_v18  ;;  %v1214_v16 = vsel %vm1200_vm2, %v1181_v52, %v809_v23  ;;  %v3863_v23 = vsel %vm1167_vm1, %v3831_v33, %v8994_v0 }
 0x19f   : > { %v9067_v9 = vpop.permute.xlu1 %682  ;;  %v9069_v27 = vpop.permute.xlu0 %556  ;;  %v1247_v61 = vsel %vm1233_vm3, %v1214_v16, %v937_v59  ;;  %v3895_v59 = vsel %vm1200_vm2, %v3863_v23, %v3493_v38  ;;  %v9120_v38 = vld [vmem:[%s7961_s19 + $0x112] sm:$0xff] }
 0x1a0   : > { %11350 = vst [vmem:[#allocation55_spill] sm:$0xff] %v9058_v10  ;;  %v9075_v43 = vsub.f32 %v4019_v50, %v9058_v10  ;;  %v1596_v53 = vsub.f32 %v9050_v18, %v11056_v49 }
 0x1a1   : > { %3758 = vrot.lane.b32.xlu1 %v9061_v4, %s7916_s24  ;;  %3632 = vrot.lane.b32.xlu0 %v9064_v51, %s7915_s23 }
 0x1a2   : > { %11351 = vst [vmem:[#allocation56_spill] sm:$0xff] %v9075_v43  ;;  %v1597_v5 = vand.u32 4294901760, %v1596_v53  ;;  %v11059_v46 = vand.u32 4294901760, %v9075_v43 }
 0x1a3   : > { %v9088_v50 = vpop.permute.xlu1 %3272  ;;  %v1065_v10 = vpop.permute.xlu0 %1064 }
 0x1a4   : > { %v1280_v6 = vsel %vm1266_vm4, %v1247_v61, %v1065_v10  ;;  %6792 = vmatprep.mubr.f32.mxu0 %v1597_v5  ;;  %v4269_v49 = vsub.f32 %v9075_v43, %v11059_v46  ;;  %v3927_v10 = vsel %vm1233_vm3, %v3895_v59, %v3621_v24 }
 0x1a5   : > { %v1349_v53 = vsel %vm1308_vm5, %v1280_v6, 0  ;;  %694 = vrot.lane.b32.xlu1 %v8921_v29, %s7913_s21  ;;  %568 = vrot.lane.b32.xlu0 %v8924_v62, %s7912_s20 }
 0x1a6   : > { %v9105_v1 = vand.u32 4294901760, %v1349_v53  ;;  %v4270_v5 = vand.u32 4294901760, %v4269_v49 }
 0x1a7   : > { %v3749_v52 = vpop.permute.xlu1 %3748  ;;  %v3367_v16 = vpop.permute.xlu0 %3366 }
 0x1a8   : > { %11352 = vst [vmem:[#allocation57_spill] sm:$0xff] %v9105_v1  ;;  %v9109_v0 = vsub.f32 %v1349_v53, %v9105_v1  ;;  %v3959_v61 = vsel %vm1266_vm4, %v3927_v10, %v3749_v52  ;;  %7116 = vmatprep.mubr.f32.mxu1 %v4270_v5 }
 0x1a9   : > { %v4022_v29 = vsel %vm1308_vm5, %v3959_v61, 0  ;;  %3284 = vrot.lane.b32.xlu1 %v9064_v51, %s7912_s20  ;;  %1076 = vrot.lane.b32.xlu0 %v8980_v32, %s7916_s24 }
 0x1aa   : > { %11353 = vst [vmem:[#allocation58_spill] sm:$0xff] %v9109_v0  ;;  %v9117_v62 = vand.u32 4294901760, %v4022_v29  ;;  %v11057_v24 = vand.u32 4294901760, %v9109_v0 }
 0x1ab   : > { %v811_v49 = vpop.permute.xlu1 %810  ;;  %v685_v33 = vpop.permute.xlu0 %684 }
 0x1ac   : > { %11354 = vst [vmem:[#allocation59_spill] sm:$0xff] %v9117_v62  ;;  %v9124_v6 = vsub.f32 %v4022_v29, %v9117_v62  ;;  %v1606_v23 = vsub.f32 %v9109_v0, %v11057_v24  ;;  %v9144_v29 = vld [vmem:[%s7961_s19 + $0x120] sm:$0xff] }
 0x1ad   : > { %3760 = vrot.lane.b32.xlu1 %v9120_v38, %s7916_s24  ;;  %3378 = vrot.lane.b32.xlu0 %v9061_v4, %s7913_s21 }
 0x1ae   : > { %11355 = vst [vmem:[#allocation60_spill] sm:$0xff] %v9124_v6  ;;  %v1607_v53 = vand.u32 4294901760, %v1606_v23  ;;  %v11058_v59 = vand.u32 4294901760, %v9124_v6 }
 0x1af   : > { %v3495_v5 = vpop.permute.xlu1 %3494  ;;  %v9134_v10 = vpop.permute.xlu0 %3368 }
 0x1b0   : > { %6793 = vmatmul.mubr.f32.gmra.mrb[12].mxu0 %v1607_v53  ;;  %v4279_v52 = vsub.f32 %v9124_v6, %v11058_v59  ;;  %v1149_v6 = vsel %vm1134_vm0, %v8444_v37, %v9020_v45  ;;  %v3832_v37 = vsel %vm1134_vm0, %v8584_v57, %v9033_v22 }
 0x1b1   : > { %822 = vrot.lane.b32.xlu1 %v9004_v39, %s7914_s22  ;;  %696 = vrot.lane.b32.xlu0 %v8980_v32, %s7913_s21  ;;  %v9155_v32 = vld [vmem:[%s7961_s19 + $0x121] sm:$0xff]  ;;  %v1182_v0 = vsel %vm1167_vm1, %v1149_v6, %v9067_v9  ;;  %v3864_v9 = vsel %vm1167_vm1, %v3832_v37, %v3367_v16 }
 0x1b2   : > { %v4280_v61 = vand.u32 4294901760, %v4279_v52  ;;  %v9158_v52 = vld [vmem:[%s7961_s19 + $0x128] sm:$0xff]  ;;  %v1215_v43 = vsel %vm1200_vm2, %v1182_v0, %v811_v49 }
 0x1b3   : > { %v939_v23 = vpop.permute.xlu1 %938  ;;  %v813_v24 = vpop.permute.xlu0 %812 }
 0x1b4   : > { %7117 = vmatmul.mubr.f32.gmra.mrb[12].mxu1 %v4280_v61  ;;  %v1248_v18 = vsel %vm1233_vm3, %v1215_v43, %v939_v23  ;;  %v3896_v43 = vsel %vm1200_vm2, %v3864_v9, %v3495_v5  ;;  %v9201_v5 = vld [vmem:[%s7961_s19 + $0x122] sm:$0xff] }
 0x1b5   : > { %3506 = vrot.lane.b32.xlu1 %v9144_v29, %s7914_s22  ;;  %3380 = vrot.lane.b32.xlu0 %v9120_v38, %s7913_s21 }
 0x1b7   : > { %v3623_v53 = vpop.permute.xlu1 %3622  ;;  %v3497_v59 = vpop.permute.xlu0 %3496 }
 0x1b8   : > { %v3928_v22 = vsel %vm1233_vm3, %v3896_v43, %v3623_v53  ;;  %v9204_v53 = vld [vmem:[%s7961_s19 + $0x129] sm:$0xff] }
 0x1b9   : > { %950 = vrot.lane.b32.xlu1 %v9015_v12, %s7915_s23  ;;  %824 = vrot.lane.b32.xlu0 %v9018_v36, %s7914_s22 }
 0x1bb   : > { %v941_v46 = vpop.permute.xlu1 %940  ;;  %v9160_v61 = vpop.permute.xlu0 %558 }
 0x1bd   : > { %3634 = vrot.lane.b32.xlu1 %v9155_v32, %s7915_s23  ;;  %3508 = vrot.lane.b32.xlu0 %v9158_v52, %s7914_s22 }
 0x1bf   : > { %v9173_v62 = vpop.permute.xlu1 %3274  ;;  %v1067_v1 = vpop.permute.xlu0 %1066 }
 0x1c0   : > { %v1281_v45 = vsel %vm1266_vm4, %v1248_v18, %v1067_v1 }
 0x1c1   : > { %v1352_v6 = vsel %vm1308_vm5, %v1281_v45, 0  ;;  %952 = vrot.lane.b32.xlu1 %v9064_v51, %s7915_s23  ;;  %570 = vrot.lane.b32.xlu0 %v9015_v12, %s7912_s20 }
 0x1c2   : > { %v9186_v0 = vand.u32 4294901760, %v1352_v6 }
 0x1c3   : > { %v3751_v49 = vpop.permute.xlu1 %3750  ;;  %v3625_v18 = vpop.permute.xlu0 %3624 }
 0x1c4   : > { %11356 = vst [vmem:[#allocation61_spill] sm:$0xff] %v9186_v0  ;;  %v9190_v1 = vsub.f32 %v1352_v6, %v9186_v0  ;;  %v3960_v16 = vsel %vm1266_vm4, %v3928_v22, %v3751_v49  ;;  %v1150_v6 = vsel %vm1134_vm0, %v8458_v11, %v9069_v27 }
 0x1c5   : > { %v4025_v23 = vsel %vm1308_vm5, %v3960_v16, 0  ;;  %3286 = vrot.lane.b32.xlu1 %v9155_v32, %s7912_s20  ;;  %1078 = vrot.lane.b32.xlu0 %v9061_v4, %s7916_s24  ;;  %v1183_v49 = vsel %vm1167_vm1, %v1150_v6, %v685_v33  ;;  %v3833_v33 = vsel %vm1134_vm0, %v8598_v63, %v9088_v50 }
 0x1c6   : > { %11357 = vst [vmem:[#allocation62_spill] sm:$0xff] %v9190_v1  ;;  %v9198_v12 = vand.u32 4294901760, %v4025_v23  ;;  %v11076_v37 = vand.u32 4294901760, %v9190_v1  ;;  %v1216_v16 = vsel %vm1200_vm2, %v1183_v49, %v813_v24  ;;  %v3865_v24 = vsel %vm1167_vm1, %v3833_v33, %v9134_v10 }
 0x1c7   : > { %v9207_v45 = vpop.permute.xlu1 %686  ;;  %v9209_v9 = vpop.permute.xlu0 %560  ;;  %v1249_v27 = vsel %vm1233_vm3, %v1216_v16, %v941_v46  ;;  %v3897_v46 = vsel %vm1200_vm2, %v3865_v24, %v3497_v59  ;;  %v9260_v59 = vld [vmem:[%s7961_s19 + $0x12a] sm:$0xff] }
 0x1c8   : > { %11358 = vst [vmem:[#allocation63_spill] sm:$0xff] %v9198_v12  ;;  %v9215_v43 = vsub.f32 %v4025_v23, %v9198_v12  ;;  %v1616_v22 = vsub.f32 %v9190_v1, %v11076_v37 }
 0x1c9   : > { %3762 = vrot.lane.b32.xlu1 %v9201_v5, %s7916_s24  ;;  %3636 = vrot.lane.b32.xlu0 %v9204_v53, %s7915_s23 }
 0x1ca   : > { %11359 = vst [vmem:[#allocation64_spill] sm:$0xff] %v9215_v43  ;;  %v1617_v0 = vand.u32 4294901760, %v1616_v22  ;;  %v11079_v11 = vand.u32 4294901760, %v9215_v43 }
 0x1cb   : > { %v9228_v23 = vpop.permute.xlu1 %3276  ;;  %v1069_v12 = vpop.permute.xlu0 %1068 }
 0x1cc   : > { %v1282_v6 = vsel %vm1266_vm4, %v1249_v27, %v1069_v12  ;;  %6795 = vmatprep.mubr.f32.mxu0 %v1617_v0  ;;  %v4289_v37 = vsub.f32 %v9215_v43, %v11079_v11  ;;  %v3929_v12 = vsel %vm1233_vm3, %v3897_v46, %v3625_v18 }
 0x1cd   : > { %v1355_v22 = vsel %vm1308_vm5, %v1282_v6, 0  ;;  %698 = vrot.lane.b32.xlu1 %v9061_v4, %s7913_s21  ;;  %572 = vrot.lane.b32.xlu0 %v9064_v51, %s7912_s20 }
 0x1ce   : > { %v9245_v50 = vand.u32 4294901760, %v1355_v22  ;;  %v4290_v0 = vand.u32 4294901760, %v4289_v37 }
 0x1cf   : > { %v3753_v49 = vpop.permute.xlu1 %3752  ;;  %v3371_v16 = vpop.permute.xlu0 %3370 }
 0x1d0   : > { %11360 = vst [vmem:[#allocation65_spill] sm:$0xff] %v9245_v50  ;;  %v9249_v10 = vsub.f32 %v1355_v22, %v9245_v50  ;;  %v3961_v27 = vsel %vm1266_vm4, %v3929_v12, %v3753_v49  ;;  %7119 = vmatprep.mubr.f32.mxu1 %v4290_v0 }
 0x1d1   : > { %v4028_v4 = vsel %vm1308_vm5, %v3961_v27, 0  ;;  %3288 = vrot.lane.b32.xlu1 %v9204_v53, %s7912_s20  ;;  %1080 = vrot.lane.b32.xlu0 %v9120_v38, %s7916_s24 }
 0x1d2   : > { %11361 = vst [vmem:[#allocation66_spill] sm:$0xff] %v9249_v10  ;;  %v9257_v51 = vand.u32 4294901760, %v4028_v4  ;;  %v11077_v18 = vand.u32 4294901760, %v9249_v10 }
 0x1d3   : > { %v815_v37 = vpop.permute.xlu1 %814  ;;  %v689_v33 = vpop.permute.xlu0 %688 }
 0x1d4   : > { %11362 = vst [vmem:[#allocation67_spill] sm:$0xff] %v9257_v51  ;;  %v9264_v6 = vsub.f32 %v4028_v4, %v9257_v51  ;;  %v1626_v24 = vsub.f32 %v9249_v10, %v11077_v18  ;;  %v9284_v4 = vld [vmem:[%s7961_s19 + $0x138] sm:$0xff] }
 0x1d5   : > { %3764 = vrot.lane.b32.xlu1 %v9260_v59, %s7916_s24  ;;  %3382 = vrot.lane.b32.xlu0 %v9201_v5, %s7913_s21 }
 0x1d6   : > { %11363 = vst [vmem:[#allocation68_spill] sm:$0xff] %v9264_v6  ;;  %v1627_v22 = vand.u32 4294901760, %v1626_v24  ;;  %v11078_v46 = vand.u32 4294901760, %v9264_v6 }
 0x1d7   : > { %v3499_v0 = vpop.permute.xlu1 %3498  ;;  %v9274_v12 = vpop.permute.xlu0 %3372 }
 0x1d8   : > { %6796 = vmatmul.mubr.f32.gmra.mrb[14].mxu0 %v1627_v22  ;;  %v4299_v49 = vsub.f32 %v9264_v6, %v11078_v46  ;;  %v1151_v6 = vsel %vm1134_vm0, %v8584_v57, %v9160_v61  ;;  %v3834_v57 = vsel %vm1134_vm0, %v8724_v7, %v9173_v62 }
 0x1d9   : > { %826 = vrot.lane.b32.xlu1 %v9144_v29, %s7914_s22  ;;  %700 = vrot.lane.b32.xlu0 %v9120_v38, %s7913_s21  ;;  %v9295_v38 = vld [vmem:[%s7961_s19 + $0x139] sm:$0xff]  ;;  %v1184_v10 = vsel %vm1167_vm1, %v1151_v6, %v9207_v45  ;;  %v3866_v45 = vsel %vm1167_vm1, %v3834_v57, %v3371_v16 }
 0x1da   : > { %v4300_v27 = vand.u32 4294901760, %v4299_v49  ;;  %v9298_v49 = vld [vmem:[%s7961_s19 + $0x140] sm:$0xff]  ;;  %v1217_v43 = vsel %vm1200_vm2, %v1184_v10, %v815_v37 }
 0x1db   : > { %v943_v24 = vpop.permute.xlu1 %942  ;;  %v817_v18 = vpop.permute.xlu0 %816 }
 0x1dc   : > { %7120 = vmatmul.mubr.f32.gmra.mrb[14].mxu1 %v4300_v27  ;;  %v1250_v1 = vsel %vm1233_vm3, %v1217_v43, %v943_v24  ;;  %v3898_v43 = vsel %vm1200_vm2, %v3866_v45, %v3499_v0  ;;  %v9341_v0 = vld [vmem:[%s7961_s19 + $0x13a] sm:$0xff] }
 0x1dd   : > { %3510 = vrot.lane.b32.xlu1 %v9284_v4, %s7914_s22  ;;  %3384 = vrot.lane.b32.xlu0 %v9260_v59, %s7913_s21 }
 0x1df   : > { %v3627_v22 = vpop.permute.xlu1 %3626  ;;  %v3501_v46 = vpop.permute.xlu0 %3500 }
 0x1e0   : > { %v3930_v62 = vsel %vm1233_vm3, %v3898_v43, %v3627_v22  ;;  %v9344_v22 = vld [vmem:[%s7961_s19 + $0x141] sm:$0xff] }
 0x1e1   : > { %954 = vrot.lane.b32.xlu1 %v9155_v32, %s7915_s23  ;;  %828 = vrot.lane.b32.xlu0 %v9158_v52, %s7914_s22 }
 0x1e3   : > { %v945_v11 = vpop.permute.xlu1 %944  ;;  %v9300_v27 = vpop.permute.xlu0 %562 }
 0x1e5   : > { %3638 = vrot.lane.b32.xlu1 %v9295_v38, %s7915_s23  ;;  %3512 = vrot.lane.b32.xlu0 %v9298_v49, %s7914_s22 }
 0x1e7   : > { %v9313_v51 = vpop.permute.xlu1 %3278  ;;  %v1071_v50 = vpop.permute.xlu0 %1070 }
 0x1e8   : > { %v1283_v61 = vsel %vm1266_vm4, %v1250_v1, %v1071_v50 }
 0x1e9   : > { %v1358_v6 = vsel %vm1308_vm5, %v1283_v61, 0  ;;  %956 = vrot.lane.b32.xlu1 %v9204_v53, %s7915_s23  ;;  %574 = vrot.lane.b32.xlu0 %v9155_v32, %s7912_s20 }
 0x1ea   : > { %v9326_v10 = vand.u32 4294901760, %v1358_v6 }
 0x1eb   : > { %v3755_v37 = vpop.permute.xlu1 %3754  ;;  %v3629_v1 = vpop.permute.xlu0 %3628 }
 0x1ec   : > { %11364 = vst [vmem:[#allocation69_spill] sm:$0xff] %v9326_v10  ;;  %v9330_v50 = vsub.f32 %v1358_v6, %v9326_v10  ;;  %v3962_v16 = vsel %vm1266_vm4, %v3930_v62, %v3755_v37  ;;  %v1152_v6 = vsel %vm1134_vm0, %v8598_v63, %v9209_v9 }
 0x1ed   : > { %v4031_v24 = vsel %vm1308_vm5, %v3962_v16, 0  ;;  %3290 = vrot.lane.b32.xlu1 %v9295_v38, %s7912_s20  ;;  %1082 = vrot.lane.b32.xlu0 %v9201_v5, %s7916_s24  ;;  %v1185_v37 = vsel %vm1167_vm1, %v1152_v6, %v689_v33  ;;  %v3835_v33 = vsel %vm1134_vm0, %v8738_v8, %v9228_v23 }
 0x1ee   : > { %11365 = vst [vmem:[#allocation70_spill] sm:$0xff] %v9330_v50  ;;  %v9338_v32 = vand.u32 4294901760, %v4031_v24  ;;  %v11096_v57 = vand.u32 4294901760, %v9330_v50  ;;  %v1218_v16 = vsel %vm1200_vm2, %v1185_v37, %v817_v18  ;;  %v3867_v18 = vsel %vm1167_vm1, %v3835_v33, %v9274_v12 }
 0x1ef   : > { %v9347_v61 = vpop.permute.xlu1 %690  ;;  %v9349_v45 = vpop.permute.xlu0 %564  ;;  %v1251_v9 = vsel %vm1233_vm3, %v1218_v16, %v945_v11  ;;  %v3899_v11 = vsel %vm1200_vm2, %v3867_v18, %v3501_v46  ;;  %v9400_v46 = vld [vmem:[%s7961_s19 + $0x142] sm:$0xff] }
 0x1f0   : > { %11366 = vst [vmem:[#allocation71_spill] sm:$0xff] %v9338_v32  ;;  %v9355_v43 = vsub.f32 %v4031_v24, %v9338_v32  ;;  %v1636_v62 = vsub.f32 %v9330_v50, %v11096_v57 }
 0x1f1   : > { %3766 = vrot.lane.b32.xlu1 %v9341_v0, %s7916_s24  ;;  %3640 = vrot.lane.b32.xlu0 %v9344_v22, %s7915_s23 }
 0x1f2   : > { %11367 = vst [vmem:[#allocation72_spill] sm:$0xff] %v9355_v43  ;;  %v1637_v10 = vand.u32 4294901760, %v1636_v62  ;;  %v11099_v63 = vand.u32 4294901760, %v9355_v43 }
 0x1f3   : > { %v9368_v24 = vpop.permute.xlu1 %3280  ;;  %v1073_v32 = vpop.permute.xlu0 %1072 }
 0x1f4   : > { %v1284_v6 = vsel %vm1266_vm4, %v1251_v9, %v1073_v32  ;;  %6798 = vmatprep.mubr.f32.mxu0 %v1637_v10  ;;  %v4309_v57 = vsub.f32 %v9355_v43, %v11099_v63  ;;  %v3931_v32 = vsel %vm1233_vm3, %v3899_v11, %v3629_v1 }
 0x1f5   : > { %v1361_v62 = vsel %vm1308_vm5, %v1284_v6, 0  ;;  %702 = vrot.lane.b32.xlu1 %v9201_v5, %s7913_s21  ;;  %576 = vrot.lane.b32.xlu0 %v9204_v53, %s7912_s20 }
 0x1f6   : > { %v9385_v23 = vand.u32 4294901760, %v1361_v62  ;;  %v4310_v10 = vand.u32 4294901760, %v4309_v57 }
 0x1f7   : > { %v3757_v37 = vpop.permute.xlu1 %3756  ;;  %v3375_v16 = vpop.permute.xlu0 %3374 }
 0x1f8   : > { %11368 = vst [vmem:[#allocation73_spill] sm:$0xff] %v9385_v23  ;;  %v9389_v12 = vsub.f32 %v1361_v62, %v9385_v23  ;;  %v3963_v9 = vsel %vm1266_vm4, %v3931_v32, %v3757_v37  ;;  %7122 = vmatprep.mubr.f32.mxu1 %v4310_v10 }
 0x1f9   : > { %v4034_v5 = vsel %vm1308_vm5, %v3963_v9, 0  ;;  %3292 = vrot.lane.b32.xlu1 %v9344_v22, %s7912_s20  ;;  %1084 = vrot.lane.b32.xlu0 %v9260_v59, %s7916_s24 }
 0x1fa   : > { %11369 = vst [vmem:[#allocation74_spill] sm:$0xff] %v9389_v12  ;;  %v9397_v53 = vand.u32 4294901760, %v4034_v5  ;;  %v11097_v1 = vand.u32 4294901760, %v9389_v12 }
 0x1fb   : > { %v819_v57 = vpop.permute.xlu1 %818  ;;  %v693_v33 = vpop.permute.xlu0 %692 }
 0x1fc   : > { %11370 = vst [vmem:[#allocation75_spill] sm:$0xff] %v9397_v53  ;;  %v9404_v6 = vsub.f32 %v4034_v5, %v9397_v53  ;;  %v1646_v18 = vsub.f32 %v9389_v12, %v11097_v1  ;;  %v9424_v5 = vld [vmem:[%s7961_s19 + $0x150] sm:$0xff] }
 0x1fd   : > { %3768 = vrot.lane.b32.xlu1 %v9400_v46, %s7916_s24  ;;  %3386 = vrot.lane.b32.xlu0 %v9341_v0, %s7913_s21 }
 0x1fe   : > { %11371 = vst [vmem:[#allocation76_spill] sm:$0xff] %v9404_v6  ;;  %v1647_v62 = vand.u32 4294901760, %v1646_v18  ;;  %v11098_v11 = vand.u32 4294901760, %v9404_v6 }
 0x1ff   : > { %v3503_v10 = vpop.permute.xlu1 %3502  ;;  %v9414_v32 = vpop.permute.xlu0 %3376 }
 0x200   : > { %6799 = vmatmul.mubr.f32.gmra.mrb[16].mxu0 %v1647_v62  ;;  %v4319_v37 = vsub.f32 %v9404_v6, %v11098_v11  ;;  %v1153_v6 = vsel %vm1134_vm0, %v8724_v7, %v9300_v27  ;;  %v3836_v7 = vsel %vm1134_vm0, %v8864_v17, %v9313_v51 }
 0x201   : > { %830 = vrot.lane.b32.xlu1 %v9284_v4, %s7914_s22  ;;  %704 = vrot.lane.b32.xlu0 %v9260_v59, %s7913_s21  ;;  %v9435_v59 = vld [vmem:[%s7961_s19 + $0x151] sm:$0xff]  ;;  %v1186_v12 = vsel %vm1167_vm1, %v1153_v6, %v9347_v61  ;;  %v3868_v61 = vsel %vm1167_vm1, %v3836_v7, %v3375_v16 }
 0x202   : > { %v4320_v9 = vand.u32 4294901760, %v4319_v37  ;;  %v9438_v37 = vld [vmem:[%s7961_s19 + $0x158] sm:$0xff]  ;;  %v1219_v43 = vsel %vm1200_vm2, %v1186_v12, %v819_v57 }
 0x203   : > { %v947_v18 = vpop.permute.xlu1 %946  ;;  %v821_v1 = vpop.permute.xlu0 %820 }
 0x204   : > { %7123 = vmatmul.mubr.f32.gmra.mrb[16].mxu1 %v4320_v9  ;;  %v1252_v50 = vsel %vm1233_vm3, %v1219_v43, %v947_v18  ;;  %v3900_v43 = vsel %vm1200_vm2, %v3868_v61, %v3503_v10  ;;  %v9481_v10 = vld [vmem:[%s7961_s19 + $0x152] sm:$0xff] }
 0x205   : > { %3514 = vrot.lane.b32.xlu1 %v9424_v5, %s7914_s22  ;;  %3388 = vrot.lane.b32.xlu0 %v9400_v46, %s7913_s21 }
 0x207   : > { %v3631_v62 = vpop.permute.xlu1 %3630  ;;  %v3505_v11 = vpop.permute.xlu0 %3504 }
 0x208   : > { %v3932_v51 = vsel %vm1233_vm3, %v3900_v43, %v3631_v62  ;;  %v9484_v62 = vld [vmem:[%s7961_s19 + $0x159] sm:$0xff] }
 0x209   : > { %958 = vrot.lane.b32.xlu1 %v9295_v38, %s7915_s23  ;;  %832 = vrot.lane.b32.xlu0 %v9298_v49, %s7914_s22 }
 0x20b   : > { %v949_v63 = vpop.permute.xlu1 %948  ;;  %v9440_v9 = vpop.permute.xlu0 %566 }
 0x20d   : > { %3642 = vrot.lane.b32.xlu1 %v9435_v59, %s7915_s23  ;;  %3516 = vrot.lane.b32.xlu0 %v9438_v37, %s7914_s22 }
 0x20f   : > { %v9453_v53 = vpop.permute.xlu1 %3282  ;;  %v1075_v23 = vpop.permute.xlu0 %1074 }
 0x210   : > { %v1285_v27 = vsel %vm1266_vm4, %v1252_v50, %v1075_v23 }
 0x211   : > { %v1364_v6 = vsel %vm1308_vm5, %v1285_v27, 0  ;;  %960 = vrot.lane.b32.xlu1 %v9344_v22, %s7915_s23  ;;  %578 = vrot.lane.b32.xlu0 %v9295_v38, %s7912_s20 }
 0x212   : > { %v9466_v12 = vand.u32 4294901760, %v1364_v6 }
 0x213   : > { %v3759_v57 = vpop.permute.xlu1 %3758  ;;  %v3633_v50 = vpop.permute.xlu0 %3632 }
 0x214   : > { %11372 = vst [vmem:[#allocation77_spill] sm:$0xff] %v9466_v12  ;;  %v9470_v23 = vsub.f32 %v1364_v6, %v9466_v12  ;;  %v3964_v16 = vsel %vm1266_vm4, %v3932_v51, %v3759_v57  ;;  %v1154_v6 = vsel %vm1134_vm0, %v8738_v8, %v9349_v45 }
 0x215   : > { %v4037_v18 = vsel %vm1308_vm5, %v3964_v16, 0  ;;  %3294 = vrot.lane.b32.xlu1 %v9435_v59, %s7912_s20  ;;  %1086 = vrot.lane.b32.xlu0 %v9341_v0, %s7916_s24  ;;  %v1187_v57 = vsel %vm1167_vm1, %v1154_v6, %v693_v33  ;;  %v3837_v33 = vsel %vm1134_vm0, %v8878_v30, %v9368_v24 }
 0x216   : > { %11373 = vst [vmem:[#allocation78_spill] sm:$0xff] %v9470_v23  ;;  %v9478_v38 = vand.u32 4294901760, %v4037_v18  ;;  %v11116_v7 = vand.u32 4294901760, %v9470_v23  ;;  %v1220_v16 = vsel %vm1200_vm2, %v1187_v57, %v821_v1  ;;  %v3869_v1 = vsel %vm1167_vm1, %v3837_v33, %v9414_v32 }
 0x217   : > { %v9487_v27 = vpop.permute.xlu1 %694  ;;  %v9489_v61 = vpop.permute.xlu0 %568  ;;  %v1253_v45 = vsel %vm1233_vm3, %v1220_v16, %v949_v63  ;;  %v3901_v63 = vsel %vm1200_vm2, %v3869_v1, %v3505_v11  ;;  %v9540_v11 = vld [vmem:[%s7961_s19 + $0x15a] sm:$0xff] }
 0x218   : > { %11374 = vst [vmem:[#allocation79_spill] sm:$0xff] %v9478_v38  ;;  %v9495_v43 = vsub.f32 %v4037_v18, %v9478_v38  ;;  %v1656_v51 = vsub.f32 %v9470_v23, %v11116_v7 }
 0x219   : > { %3770 = vrot.lane.b32.xlu1 %v9481_v10, %s7916_s24  ;;  %3644 = vrot.lane.b32.xlu0 %v9484_v62, %s7915_s23 }
 0x21a   : > { %11375 = vst [vmem:[#allocation80_spill] sm:$0xff] %v9495_v43  ;;  %v1657_v12 = vand.u32 4294901760, %v1656_v51  ;;  %v11119_v8 = vand.u32 4294901760, %v9495_v43 }
 0x21b   : > { %v9508_v18 = vpop.permute.xlu1 %3284  ;;  %v1077_v38 = vpop.permute.xlu0 %1076 }
 0x21c   : > { %v1286_v6 = vsel %vm1266_vm4, %v1253_v45, %v1077_v38  ;;  %6801 = vmatprep.mubr.f32.mxu0 %v1657_v12  ;;  %v4329_v7 = vsub.f32 %v9495_v43, %v11119_v8  ;;  %v3933_v38 = vsel %vm1233_vm3, %v3901_v63, %v3633_v50 }
 0x21d   : > { %v1367_v51 = vsel %vm1308_vm5, %v1286_v6, 0  ;;  %706 = vrot.lane.b32.xlu1 %v9341_v0, %s7913_s21  ;;  %580 = vrot.lane.b32.xlu0 %v9344_v22, %s7912_s20 }
 0x21e   : > { %v9525_v24 = vand.u32 4294901760, %v1367_v51  ;;  %v4330_v12 = vand.u32 4294901760, %v4329_v7 }
 0x21f   : > { %v3761_v57 = vpop.permute.xlu1 %3760  ;;  %v3379_v16 = vpop.permute.xlu0 %3378 }
 0x220   : > { %11376 = vst [vmem:[#allocation81_spill] sm:$0xff] %v9525_v24  ;;  %v9529_v32 = vsub.f32 %v1367_v51, %v9525_v24  ;;  %v3965_v45 = vsel %vm1266_vm4, %v3933_v38, %v3761_v57  ;;  %7125 = vmatprep.mubr.f32.mxu1 %v4330_v12 }
 0x221   : > { %v4040_v0 = vsel %vm1308_vm5, %v3965_v45, 0  ;;  %3296 = vrot.lane.b32.xlu1 %v9484_v62, %s7912_s20  ;;  %1088 = vrot.lane.b32.xlu0 %v9400_v46, %s7916_s24 }
 0x222   : > { %11377 = vst [vmem:[#allocation82_spill] sm:$0xff] %v9529_v32  ;;  %v9537_v22 = vand.u32 4294901760, %v4040_v0  ;;  %v11117_v50 = vand.u32 4294901760, %v9529_v32 }
 0x223   : > { %v823_v7 = vpop.permute.xlu1 %822  ;;  %v697_v33 = vpop.permute.xlu0 %696 }
 0x224   : > { %11378 = vst [vmem:[#allocation83_spill] sm:$0xff] %v9537_v22  ;;  %v9544_v6 = vsub.f32 %v4040_v0, %v9537_v22  ;;  %v1666_v1 = vsub.f32 %v9529_v32, %v11117_v50  ;;  %v9564_v0 = vld [vmem:[%s7961_s19 + $0x168] sm:$0xff] }
 0x225   : > { %3772 = vrot.lane.b32.xlu1 %v9540_v11, %s7916_s24  ;;  %3390 = vrot.lane.b32.xlu0 %v9481_v10, %s7913_s21 }
 0x226   : > { %11379 = vst [vmem:[#allocation84_spill] sm:$0xff] %v9544_v6  ;;  %v1667_v51 = vand.u32 4294901760, %v1666_v1  ;;  %v11118_v63 = vand.u32 4294901760, %v9544_v6 }
 0x227   : > { %v3507_v12 = vpop.permute.xlu1 %3506  ;;  %v9554_v38 = vpop.permute.xlu0 %3380 }
 0x228   : > { %6802 = vmatmul.mubr.f32.gmra.mrb[18].mxu0 %v1667_v51  ;;  %v4339_v57 = vsub.f32 %v9544_v6, %v11118_v63  ;;  %v1155_v6 = vsel %vm1134_vm0, %v8864_v17, %v9440_v9  ;;  %v3838_v17 = vsel %vm1134_vm0, %v9004_v39, %v9453_v53 }
 0x229   : > { %834 = vrot.lane.b32.xlu1 %v9424_v5, %s7914_s22  ;;  %708 = vrot.lane.b32.xlu0 %v9400_v46, %s7913_s21  ;;  %v9575_v46 = vld [vmem:[%s7961_s19 + $0x169] sm:$0xff]  ;;  %v1188_v32 = vsel %vm1167_vm1, %v1155_v6, %v9487_v27  ;;  %v3870_v27 = vsel %vm1167_vm1, %v3838_v17, %v3379_v16 }
 0x22a   : > { %v4340_v45 = vand.u32 4294901760, %v4339_v57  ;;  %v9578_v57 = vld [vmem:[%s7961_s19 + $0x170] sm:$0xff]  ;;  %v1221_v43 = vsel %vm1200_vm2, %v1188_v32, %v823_v7 }
 0x22b   : > { %v951_v1 = vpop.permute.xlu1 %950  ;;  %v825_v50 = vpop.permute.xlu0 %824 }
 0x22c   : > { %7126 = vmatmul.mubr.f32.gmra.mrb[18].mxu1 %v4340_v45  ;;  %v1254_v23 = vsel %vm1233_vm3, %v1221_v43, %v951_v1  ;;  %v3902_v43 = vsel %vm1200_vm2, %v3870_v27, %v3507_v12  ;;  %v9621_v12 = vld [vmem:[%s7961_s19 + $0x16a] sm:$0xff] }
 0x22d   : > { %3518 = vrot.lane.b32.xlu1 %v9564_v0, %s7914_s22  ;;  %3392 = vrot.lane.b32.xlu0 %v9540_v11, %s7913_s21 }
 0x22f   : > { %v3635_v51 = vpop.permute.xlu1 %3634  ;;  %v3509_v63 = vpop.permute.xlu0 %3508 }
 0x230   : > { %v3934_v53 = vsel %vm1233_vm3, %v3902_v43, %v3635_v51  ;;  %v9624_v51 = vld [vmem:[%s7961_s19 + $0x171] sm:$0xff] }
 0x231   : > { %962 = vrot.lane.b32.xlu1 %v9435_v59, %s7915_s23  ;;  %836 = vrot.lane.b32.xlu0 %v9438_v37, %s7914_s22 }
 0x233   : > { %v953_v8 = vpop.permute.xlu1 %952  ;;  %v9580_v45 = vpop.permute.xlu0 %570 }
 0x235   : > { %3646 = vrot.lane.b32.xlu1 %v9575_v46, %s7915_s23  ;;  %3520 = vrot.lane.b32.xlu0 %v9578_v57, %s7914_s22 }
 0x237   : > { %v9593_v22 = vpop.permute.xlu1 %3286  ;;  %v1079_v24 = vpop.permute.xlu0 %1078 }
 0x238   : > { %v1287_v9 = vsel %vm1266_vm4, %v1254_v23, %v1079_v24 }
 0x239   : > { %v1370_v6 = vsel %vm1308_vm5, %v1287_v9, 0  ;;  %964 = vrot.lane.b32.xlu1 %v9484_v62, %s7915_s23  ;;  %582 = vrot.lane.b32.xlu0 %v9435_v59, %s7912_s20 }
 0x23a   : > { %v9606_v32 = vand.u32 4294901760, %v1370_v6 }
 0x23b   : > { %v3763_v7 = vpop.permute.xlu1 %3762  ;;  %v3637_v23 = vpop.permute.xlu0 %3636 }
 0x23c   : > { %11380 = vst [vmem:[#allocation85_spill] sm:$0xff] %v9606_v32  ;;  %v9610_v24 = vsub.f32 %v1370_v6, %v9606_v32  ;;  %v3966_v16 = vsel %vm1266_vm4, %v3934_v53, %v3763_v7  ;;  %v1156_v6 = vsel %vm1134_vm0, %v8878_v30, %v9489_v61 }
 0x23d   : > { %v4043_v1 = vsel %vm1308_vm5, %v3966_v16, 0  ;;  %3298 = vrot.lane.b32.xlu1 %v9575_v46, %s7912_s20  ;;  %1090 = vrot.lane.b32.xlu0 %v9481_v10, %s7916_s24  ;;  %v1189_v7 = vsel %vm1167_vm1, %v1156_v6, %v697_v33  ;;  %v3839_v33 = vsel %vm1134_vm0, %v9018_v36, %v9508_v18 }
 0x23e   : > { %11381 = vst [vmem:[#allocation86_spill] sm:$0xff] %v9610_v24  ;;  %v9618_v59 = vand.u32 4294901760, %v4043_v1  ;;  %v11136_v17 = vand.u32 4294901760, %v9610_v24  ;;  %v1222_v16 = vsel %vm1200_vm2, %v1189_v7, %v825_v50  ;;  %v3871_v50 = vsel %vm1167_vm1, %v3839_v33, %v9554_v38 }
 0x23f   : > { %v9627_v9 = vpop.permute.xlu1 %698  ;;  %v9629_v27 = vpop.permute.xlu0 %572  ;;  %v1255_v61 = vsel %vm1233_vm3, %v1222_v16, %v953_v8  ;;  %v3903_v36 = vsel %vm1200_vm2, %v3871_v50, %v3509_v63  ;;  %v9682_v63 = vld [vmem:[%s7961_s19 + $0x172] sm:$0xff] }
 0x240   : > { %11382 = vst [vmem:[#allocation87_spill] sm:$0xff] %v9618_v59  ;;  %v9635_v43 = vsub.f32 %v4043_v1, %v9618_v59  ;;  %v1676_v53 = vsub.f32 %v9610_v24, %v11136_v17 }
 0x241   : > { %3774 = vrot.lane.b32.xlu1 %v9621_v12, %s7916_s24  ;;  %3648 = vrot.lane.b32.xlu0 %v9624_v51, %s7915_s23 }
 0x242   : > { %11383 = vst [vmem:[#allocation88_spill] sm:$0xff] %v9635_v43  ;;  %v1677_v32 = vand.u32 4294901760, %v1676_v53  ;;  %v11139_v30 = vand.u32 4294901760, %v9635_v43 }
 0x243   : > { %v9648_v1 = vpop.permute.xlu1 %3288  ;;  %v1081_v59 = vpop.permute.xlu0 %1080 }
 0x244   : > { %v1288_v6 = vsel %vm1266_vm4, %v1255_v61, %v1081_v59  ;;  %6804 = vmatprep.mubr.f32.mxu0 %v1677_v32  ;;  %v4349_v17 = vsub.f32 %v9635_v43, %v11139_v30  ;;  %v3935_v32 = vsel %vm1233_vm3, %v3903_v36, %v3637_v23 }
 0x245   : > { %v1373_v53 = vsel %vm1308_vm5, %v1288_v6, 0  ;;  %710 = vrot.lane.b32.xlu1 %v9481_v10, %s7913_s21  ;;  %584 = vrot.lane.b32.xlu0 %v9484_v62, %s7912_s20 }
 0x246   : > { %v9665_v8 = vand.u32 4294901760, %v1373_v53  ;;  %v4350_v18 = vand.u32 4294901760, %v4349_v17 }
 0x247   : > { %v3765_v59 = vpop.permute.xlu1 %3764  ;;  %v9668_v7 = vpop.permute.xlu0 %3382 }
 0x248   : > { %11384 = vst [vmem:[#allocation89_spill] sm:$0xff] %v9665_v8  ;;  %v9671_v38 = vsub.f32 %v1373_v53, %v9665_v8  ;;  %v3967_v16 = vsel %vm1266_vm4, %v3935_v32, %v3765_v59  ;;  %7128 = vmatprep.mubr.f32.mxu1 %v4350_v18  ;;  %v7878_v59 = vld [vmem:[%s10959_s1] sm:$0xff] }
 0x249   : > { %v4046_v10 = vsel %vm1308_vm5, %v3967_v16, 0  ;;  %3300 = vrot.lane.b32.xlu1 %v9624_v51, %s7912_s20  ;;  %1092 = vrot.lane.b32.xlu0 %v9540_v11, %s7916_s24  ;;  %v11388_v16 = vand.u32 4294901760, %v8009_v13  ;;  %v7880_v13 = vld [vmem:[%s10959_s1 + $0x18] sm:$0xff] }
 0x24a   : > { %11385 = vst [vmem:[#allocation90_spill] sm:$0xff] %v9671_v38  ;;  %v9679_v62 = vand.u32 4294901760, %v4046_v10  ;;  %v11138_v23 = vand.u32 4294901760, %v9671_v38 }
 0x24b   : > { %v827_v17 = vpop.permute.xlu1 %826  ;;  %v9685_v61 = vpop.permute.xlu0 %700 }
 0x24c   : > { %11386 = vst [vmem:[#allocation91_spill] sm:$0xff] %v9679_v62  ;;  %v9688_v33 = vsub.f32 %v4046_v10, %v9679_v62  ;;  %v1686_v6 = vsub.f32 %v9671_v38, %v11138_v23  ;;  %v9708_v10 = vsub.f32 %v7878_v59, %v11388_v16  ;;  %v11392_v59 = vand.u32 4294901760, %v8031_v20 }
 0x24d   : > { %3776 = vrot.lane.b32.xlu1 %v9682_v63, %s7916_s24  ;;  %3394 = vrot.lane.b32.xlu0 %v9621_v12, %s7913_s21  ;;  %v11394_v23 = vand.u32 4294901760, %v8036_v21 }
 0x24e   : > { %11387 = vst [vmem:[#allocation92_spill] sm:$0xff] %v9688_v33  ;;  %v1687_v50 = vand.u32 4294901760, %v1686_v6  ;;  %v11137_v53 = vand.u32 4294901760, %v9688_v33  ;;  %11389 = vst [vmem:[#allocation93_spill] sm:$0xff] %v9708_v10  ;;  %v7879_v6 = vld [vmem:[%s10959_s1 + $0x8] sm:$0xff]  ;;  %v9726_v16 = vsub.f32 %v7880_v13, %v11392_v59 }
 0x24f   : > { %v3511_v36 = vpop.permute.xlu1 %3510  ;;  %v9698_v18 = vpop.permute.xlu0 %3384 }
 0x250   : > { %6805 = vmatmul.mubr.f32.gmra.mrb[20].mxu0 %v1687_v50  ;;  %v4359_v32 = vsub.f32 %v9688_v33, %v11137_v53  ;;  %v11390_v50 = vand.u32 4294901760, %v8014_v14  ;;  %11393 = vst [vmem:[#allocation95_spill] sm:$0xff] %v9726_v16  ;;  %v9736_v14 = vld [vmem:[%s7961_s19 + $0x180] sm:$0xff]  ;;  %v11156_v13 = vand.u32 4294901760, %v9726_v16 }
 0x251   : > { %838 = vrot.lane.b32.xlu1 %v9564_v0, %s7914_s22  ;;  %712 = vrot.lane.b32.xlu0 %v9540_v11, %s7913_s21  ;;  %v7881_v11 = vld [vmem:[%s10959_s1 + $0x20] sm:$0xff] }
 0x252   : > { %v9719_v53 = vsub.f32 %v7879_v6, %v11390_v50  ;;  %v9733_v30 = vsub.f32 %v7881_v11, %v11394_v23  ;;  %v4360_v33 = vand.u32 4294901760, %v4359_v32  ;;  %v11144_v6 = vand.u32 4294901760, %v9708_v10 }
 0x253   : > { %v955_v50 = vpop.permute.xlu1 %954  ;;  %v9739_v38 = vpop.permute.xlu0 %828 }
 0x254   : > { %11391 = vst [vmem:[#allocation94_spill] sm:$0xff] %v9719_v53  ;;  %11395 = vst [vmem:[#allocation96_spill] sm:$0xff] %v9733_v30  ;;  %v11153_v20 = vand.u32 4294901760, %v9719_v53  ;;  %v11159_v59 = vand.u32 4294901760, %v9733_v30  ;;  %7129 = vmatmul.mubr.f32.gmra.mrb[20].mxu1 %v4360_v33  ;;  %v1797_v21 = vsub.f32 %v9708_v10, %v11144_v6  ;;  %v4470_v33 = vsub.f32 %v9726_v16, %v11156_v13  ;;  %v9767_v13 = vld [vmem:[%s7961_s19 + $0x181] sm:$0xff] }
 0x255   : > { %3522 = vrot.lane.b32.xlu1 %v9736_v14, %s7914_s22  ;;  %3396 = vrot.lane.b32.xlu0 %v9682_v63, %s7913_s21 }
 0x256   : > { %v1804_v23 = vsub.f32 %v9719_v53, %v11153_v20  ;;  %v4477_v32 = vsub.f32 %v9733_v30, %v11159_v59  ;;  %v1798_v11 = vand.u32 4294901760, %v1797_v21  ;;  %v4471_v62 = vand.u32 4294901760, %v4470_v33 }
 0x257   : > { %v3639_v6 = vpop.permute.xlu1 %3638  ;;  %v9760_v43 = vpop.permute.xlu0 %3512 }
 0x258   : > { %v1805_v24 = vand.u32 4294901760, %v1804_v23  ;;  %v4478_v8 = vand.u32 4294901760, %v4477_v32  ;;  %v1157_v23 = vsel %vm1134_vm0, %v9004_v39, %v9580_v45 }
 0x259   : > { %966 = vrot.lane.b32.xlu1 %v9575_v46, %s7915_s23  ;;  %840 = vrot.lane.b32.xlu0 %v9578_v57, %s7914_s22  ;;  %v1190_v33 = vsel %vm1167_vm1, %v1157_v23, %v9627_v9 }
 0x25a   : > { %v7420_v20 = vpack.c.bf16 %v1805_v24, %v1798_v11  ;;  %v7444_v44 = vpack.c.bf16 %v4478_v8, %v4471_v62  ;;  %v1223_v24 = vsel %vm1200_vm2, %v1190_v33, %v827_v17 }
 0x25b   : > { %v957_v59 = vpop.permute.xlu1 %956  ;;  %v9772_v21 = vpop.permute.xlu0 %574  ;;  %v1256_v8 = vsel %vm1233_vm3, %v1223_v24, %v955_v50 }
 0x25c   : > { %7421 = vmatprep.subr.bf16.mxu0 %v7420_v20  ;;  %7445 = vmatprep.subr.bf16.mxu1 %v7444_v44 }
 0x25d   : > { %7423 = vmatpush3.bf16.msra.mxu0 %v7420_v20  ;;  %7447 = vmatpush3.bf16.msra.mxu1 %v7444_v44  ;;  %v3840_v44 = vsel %vm1134_vm0, %v9144_v29, %v9593_v22 }
 0x25e   : > { %3650 = vrot.lane.b32.xlu1 %v9767_v13, %s7915_s23  ;;  %3524 = vrot.lane.b32.xlu0 %v9770_v31, %s7914_s22  ;;  %v3872_v45 = vsel %vm1167_vm1, %v3840_v44, %v9668_v7 }
 0x25f   : > { %v9785_v62 = vpop.permute.xlu1 %3290  ;;  %v1083_v32 = vpop.permute.xlu0 %1082  ;;  %v3904_v17 = vsel %vm1200_vm2, %v3872_v45, %v3511_v36  ;;  %v9814_v36 = vld [vmem:[%s7961_s19 + $0x182] sm:$0xff] }
 0x260   : > { %v1289_v39 = vsel %vm1266_vm4, %v1256_v8, %v1083_v32  ;;  %v3936_v29 = vsel %vm1233_vm3, %v3904_v17, %v3639_v6  ;;  %v9817_v6 = vld [vmem:[%s7961_s19 + $0x189] sm:$0xff] }
 0x261   : > { %v1376_v9 = vsel %vm1308_vm5, %v1289_v39, 0  ;;  %v7882_v32 = vld [vmem:[%s7961_s19 + $0x110] sm:$0xff] }
 0x262   : > { %968 = vrot.lane.b32.xlu1 %v9624_v51, %s7915_s23  ;;  %586 = vrot.lane.b32.xlu0 %v9575_v46, %s7912_s20  ;;  %v9799_v50 = vand.u32 4294901760, %v1376_v9  ;;  %v1158_v44 = vsel %vm1134_vm0, %v7882_v32, %v9629_v27 }
 0x263   : > { %v3767_v22 = vpop.permute.xlu1 %3766  ;;  %v3641_v20 = vpop.permute.xlu0 %3640 }
 0x264   : > { %11396 = vst [vmem:[#allocation97_spill] sm:$0xff] %v9799_v50  ;;  %v9803_v7 = vsub.f32 %v1376_v9, %v9799_v50  ;;  %v3968_v11 = vsel %vm1266_vm4, %v3936_v29, %v3767_v22  ;;  %v1191_v9 = vsel %vm1167_vm1, %v1158_v44, %v9685_v61  ;;  %v3841_v61 = vsel %vm1134_vm0, %v9158_v52, %v9648_v1 }
 0x265   : > { %v4049_v23 = vsel %vm1308_vm5, %v3968_v11, 0  ;;  %v1224_v17 = vsel %vm1200_vm2, %v1191_v9, %v9739_v38  ;;  %v3873_v38 = vsel %vm1167_vm1, %v3841_v61, %v9698_v18 }
 0x266   : > { %11397 = vst [vmem:[#allocation98_spill] sm:$0xff] %v9803_v7  ;;  %3302 = vrot.lane.b32.xlu1 %v9767_v13, %s7912_s20  ;;  %1094 = vrot.lane.b32.xlu0 %v9621_v12, %s7916_s24  ;;  %v9811_v46 = vand.u32 4294901760, %v4049_v23  ;;  %v11162_v33 = vand.u32 4294901760, %v9803_v7  ;;  %v1257_v22 = vsel %vm1233_vm3, %v1224_v17, %v957_v59  ;;  %v3905_v52 = vsel %vm1200_vm2, %v3873_v38, %v9760_v43  ;;  %v9878_v43 = vld [vmem:[%s7961_s19 + $0x18a] sm:$0xff] }
 0x267   : > { %v9820_v24 = vpop.permute.xlu1 %702  ;;  %v9822_v8 = vpop.permute.xlu0 %576  ;;  %v3937_v9 = vsel %vm1233_vm3, %v3905_v52, %v3641_v20  ;;  %v7883_v38 = vld [vmem:[%s10959_s1 + $0x28] sm:$0xff]  ;;  %v7884_v52 = vld [vmem:[%s10959_s1 + $0x10] sm:$0xff] }
 0x268   : > { %11398 = vst [vmem:[#allocation99_spill] sm:$0xff] %v9811_v46  ;;  %v9828_v39 = vsub.f32 %v4049_v23, %v9811_v46  ;;  %v1696_v45 = vsub.f32 %v9803_v7, %v11162_v33 }
 0x26a   : > { %11399 = vst [vmem:[#allocation100_spill] sm:$0xff] %v9828_v39  ;;  %3778 = vrot.lane.b32.xlu1 %v9814_v36, %s7916_s24  ;;  %3652 = vrot.lane.b32.xlu0 %v9817_v6, %s7915_s23  ;;  %v1697_v27 = vand.u32 4294901760, %v1696_v45  ;;  %v11161_v29 = vand.u32 4294901760, %v9828_v39 }
 0x26b   : > { %v9843_v11 = vpop.permute.xlu1 %3292  ;;  %v1085_v23 = vpop.permute.xlu0 %1084 }
 0x26c   : > { %v1290_v32 = vsel %vm1266_vm4, %v1257_v22, %v1085_v23  ;;  %6807 = vmatprep.mubr.f32.mxu0 %v1697_v27  ;;  %v4369_v44 = vsub.f32 %v9828_v39, %v11161_v29 }
 0x26d   : > { %v1379_v45 = vsel %vm1308_vm5, %v1290_v32, 0 }
 0x26e   : > { %714 = vrot.lane.b32.xlu1 %v9621_v12, %s7913_s21  ;;  %588 = vrot.lane.b32.xlu0 %v9624_v51, %s7912_s20  ;;  %v9861_v1 = vand.u32 4294901760, %v1379_v45  ;;  %v4370_v59 = vand.u32 4294901760, %v4369_v44 }
 0x26f   : > { %v3769_v17 = vpop.permute.xlu1 %3768  ;;  %v9864_v27 = vpop.permute.xlu0 %3386 }
 0x270   : > { %11400 = vst [vmem:[#allocation101_spill] sm:$0xff] %v9861_v1  ;;  %v9867_v18 = vsub.f32 %v1379_v45, %v9861_v1  ;;  %v3969_v22 = vsel %vm1266_vm4, %v3937_v9, %v3769_v17  ;;  %7131 = vmatprep.mubr.f32.mxu1 %v4370_v59  ;;  %v9897_v45 = vsub.f32 %v7883_v38, %v8062_v28 }
 0x271   : > { %v4052_v12 = vsel %vm1308_vm5, %v3969_v22, 0  ;;  %v9903_v59 = vsub.f32 %v7884_v52, %v8045_v25 }
 0x272   : > { %11401 = vst [vmem:[#allocation102_spill] sm:$0xff] %v9867_v18  ;;  %3304 = vrot.lane.b32.xlu1 %v9817_v6, %s7912_s20  ;;  %1096 = vrot.lane.b32.xlu0 %v9682_v63, %s7916_s24  ;;  %v9875_v51 = vand.u32 4294901760, %v4052_v12  ;;  %v11160_v20 = vand.u32 4294901760, %v9867_v18 }
 0x273   : > { %v831_v23 = vpop.permute.xlu1 %830  ;;  %v9881_v61 = vpop.permute.xlu0 %704  ;;  %v9912_v38 = vand.u32 4294901760, %v9903_v59 }
 0x274   : > { %11402 = vst [vmem:[#allocation103_spill] sm:$0xff] %v9875_v51  ;;  %v9884_v32 = vsub.f32 %v4052_v12, %v9875_v51  ;;  %v1706_v44 = vsub.f32 %v9867_v18, %v11160_v20  ;;  %v9909_v20 = vand.u32 4294901760, %v9897_v45  ;;  %v6275_v18 = vld [vmem:[%s7961_s19 + $0x198] sm:$0xff] }
 0x275   : > { %11405 = vst [vmem:[#allocation106_spill] sm:$0xff] %v9912_v38  ;;  %v1811_v52 = vsub.f32 %v9903_v59, %v9912_v38 }
 0x276   : > { %11403 = vst [vmem:[#allocation104_spill] sm:$0xff] %v9884_v32  ;;  %3780 = vrot.lane.b32.xlu1 %v9878_v43, %s7916_s24  ;;  %3398 = vrot.lane.b32.xlu0 %v9814_v36, %s7913_s21  ;;  %v1707_v9 = vand.u32 4294901760, %v1706_v44  ;;  %v11169_v17 = vand.u32 4294901760, %v9884_v32  ;;  %11404 = vst [vmem:[#allocation105_spill] sm:$0xff] %v9909_v20  ;;  %v4484_v44 = vsub.f32 %v9897_v45, %v9909_v20 }
 0x277   : > { %v3515_v22 = vpop.permute.xlu1 %3514  ;;  %v9906_v12 = vpop.permute.xlu0 %3388 }
 0x278   : > { %6808 = vmatmul.mubr.f32.gmra.mrb[22].mxu0 %v1707_v9  ;;  %v4379_v29 = vsub.f32 %v9884_v32, %v11169_v17  ;;  %v4485_v7 = vand.u32 4294901760, %v4484_v44  ;;  %v1812_v17 = vand.u32 4294901760, %v1811_v52  ;;  %v7885_v52 = vld [vmem:[%s7961_s19 + $0x120] sm:$0xff] }
 0x279   : > { %v1159_v38 = vsel %vm1134_vm0, %v7885_v52, %v9772_v21  ;;  %v3842_v21 = vsel %vm1134_vm0, %v9284_v4, %v9785_v62  ;;  %v6339_v62 = vld [vmem:[%s7961_s19 + $0x19a] sm:$0xff] }
 0x27a   : > { %842 = vrot.lane.b32.xlu1 %v9736_v14, %s7914_s22  ;;  %716 = vrot.lane.b32.xlu0 %v9682_v63, %s7913_s21  ;;  %v4380_v33 = vand.u32 4294901760, %v4379_v29  ;;  %v6307_v29 = vld [vmem:[%s7961_s19 + $0x199] sm:$0xff] }
 0x27b   : > { %v959_v9 = vpop.permute.xlu1 %958  ;;  %v833_v39 = vpop.permute.xlu0 %832  ;;  %7150 = vmatprep.subr.mxu1 %v4485_v7  ;;  %6826 = vmatprep.subr.mxu0 %v1812_v17 }
 0x27c   : > { %7132 = vmatmul.mubr.f32.gmra.mrb[22].mxu1 %v4380_v33  ;;  %6827 = vmatpush3.msra.mxu0 %v1812_v17  ;;  %v6276_v33 = vld [vmem:[%s7961_s19 + $0x1a0] sm:$0xff]  ;;  %v1192_v17 = vsel %vm1167_vm1, %v1159_v38, %v9820_v24  ;;  %v3874_v24 = vsel %vm1167_vm1, %v3842_v21, %v9864_v27 }
 0x27d   : > { %7151 = vmatpush3.msra.mxu1 %v4485_v7 }
 0x27e   : > { %3526 = vrot.lane.b32.xlu1 %v6275_v18, %s7914_s22  ;;  %3400 = vrot.lane.b32.xlu0 %v9878_v43, %s7913_s21 }
 0x27f   : > { %v3643_v63 = vpop.permute.xlu1 %3642  ;;  %v9929_v20 = vpop.permute.xlu0 %3516 }
 0x282   : > { %970 = vrot.lane.b32.xlu1 %v9767_v13, %s7915_s23  ;;  %844 = vrot.lane.b32.xlu0 %v9770_v31, %s7914_s22  ;;  %v1225_v13 = vsel %vm1200_vm2, %v1192_v17, %v831_v23  ;;  %v3906_v23 = vsel %vm1200_vm2, %v3874_v24, %v3515_v22  ;;  %v6340_v22 = vld [vmem:[%s7961_s19 + $0x1a2] sm:$0xff] }
 0x283   : > { %v961_v44 = vpop.permute.xlu1 %960  ;;  %v9937_v18 = vpop.permute.xlu0 %578  ;;  %v1258_v7 = vsel %vm1233_vm3, %v1225_v13, %v959_v9 }
 0x286   : > { %3654 = vrot.lane.b32.xlu1 %v6307_v29, %s7915_s23  ;;  %3528 = vrot.lane.b32.xlu0 %v6276_v33, %s7914_s22  ;;  %v6308_v29 = vld [vmem:[%s7961_s19 + $0x1a1] sm:$0xff]  ;;  %s6347_s22 = sshll.u32 %s11683_s12, 9 }
 0x287   : > { %v9948_v32 = vpop.permute.xlu1 %3294  ;;  %v1087_v28 = vpop.permute.xlu0 %1086  ;;  %s10705_s4 = scalar_lea.vmem %s10961_s3, %s6347_s22 }
 0x288   : > { %v1291_v52 = vsel %vm1266_vm4, %v1258_v7, %v1087_v28  ;;  %v3938_v28 = vsel %vm1233_vm3, %v3906_v23, %v3643_v63 }
 0x289   : > { %v1382_v38 = vsel %vm1308_vm5, %v1291_v52, 0  ;;  %v7886_v52 = vld [vmem:[%s7961_s19 + $0x128] sm:$0xff] }
 0x28a   : > { %1098 = vrot.lane.b32.xlu1 %v9814_v36, %s7916_s24  ;;  %972 = vrot.lane.b32.xlu0 %v9817_v6, %s7915_s23  ;;  %v9962_v9 = vand.u32 4294901760, %v1382_v38  ;;  %v1160_v24 = vsel %vm1134_vm0, %v7886_v52, %v9822_v8  ;;  %v10000_v8 = vpack.c.bf16 %v9733_v30, %v9726_v16 }
 0x28b   : > { %v3771_v33 = vpop.permute.xlu1 %3770  ;;  %v3645_v27 = vpop.permute.xlu0 %3644 }
 0x28c   : > { %11406 = vst [vmem:[#allocation107_spill] sm:$0xff] %v9962_v9  ;;  %v9968_v17 = vsub.f32 %v1382_v38, %v9962_v9  ;;  %v3970_v13 = vsel %vm1266_vm4, %v3938_v28, %v3771_v33  ;;  %7449 = vmatprep.subr.bf16.mxu1 %v10000_v8 }
 0x28d   : > { %v4055_v36 = vsel %vm1308_vm5, %v3970_v13, 0 }
 0x28e   : > { %11407 = vst [vmem:[#allocation108_spill] sm:$0xff] %v9968_v17  ;;  %3782 = vrot.lane.b32.xlu1 %v6339_v62, %s7916_s24  ;;  %3656 = vrot.lane.b32.xlu0 %v6308_v29, %s7915_s23  ;;  %v9974_v6 = vand.u32 4294901760, %v4055_v36  ;;  %v11179_v7 = vand.u32 4294901760, %v9968_v17  ;;  %v1193_v62 = vsel %vm1167_vm1, %v1160_v24, %v9881_v61  ;;  %v9996_v29 = vpack.c.bf16 %v9719_v53, %v9708_v10 }
 0x28f   : > { %v707_v21 = vpop.permute.xlu1 %706  ;;  %v9978_v63 = vpop.permute.xlu0 %580  ;;  %v1226_v28 = vsel %vm1200_vm2, %v1193_v62, %v833_v39 }
 0x290   : > { %11408 = vst [vmem:[#allocation109_spill] sm:$0xff] %v9974_v6  ;;  %v9984_v38 = vsub.f32 %v4055_v36, %v9974_v6  ;;  %v1716_v23 = vsub.f32 %v9968_v17, %v11179_v7  ;;  %v1259_v61 = vsel %vm1233_vm3, %v1226_v28, %v961_v44  ;;  %7425 = vmatprep.subr.bf16.mxu0 %v9996_v29 }
 0x292   : > { %11409 = vst [vmem:[#allocation110_spill] sm:$0xff] %v9984_v38  ;;  %3784 = vrot.lane.b32.xlu1 %v6340_v22, %s7916_s24  ;;  %1100 = vrot.lane.b32.xlu0 %v9878_v43, %s7916_s24  ;;  %v1717_v33 = vand.u32 4294901760, %v1716_v23  ;;  %v11178_v13 = vand.u32 4294901760, %v9984_v38  ;;  %v3843_v43 = vsel %vm1134_vm0, %v9298_v49, %v9843_v11 }
 0x293   : > { %v10005_v36 = vpop.permute.xlu1 %3296  ;;  %v1089_v22 = vpop.permute.xlu0 %1088  ;;  %v3875_v44 = vsel %vm1167_vm1, %v3843_v43, %v9906_v12 }
 0x294   : > { %v1292_v52 = vsel %vm1266_vm4, %v1259_v61, %v1089_v22  ;;  %6810 = vmatprep.mubr.f32.mxu0 %v1717_v33  ;;  %v4389_v39 = vsub.f32 %v9984_v38, %v11178_v13  ;;  %v3907_v23 = vsel %vm1200_vm2, %v3875_v44, %v9929_v20 }
 0x295   : > { %v1385_v24 = vsel %vm1308_vm5, %v1292_v52, 0  ;;  %v3939_v49 = vsel %vm1233_vm3, %v3907_v23, %v3645_v27 }
 0x296   : > { %v10021_v62 = vand.u32 4294901760, %v1385_v24  ;;  %v4390_v28 = vand.u32 4294901760, %v4389_v39 }
 0x297   : > { %v3773_v11 = vpop.permute.xlu1 %3772  ;;  %v3391_v61 = vpop.permute.xlu0 %3390 }
 0x298   : > { %11410 = vst [vmem:[#allocation111_spill] sm:$0xff] %v10021_v62  ;;  %v10025_v33 = vsub.f32 %v1385_v24, %v10021_v62  ;;  %v3971_v22 = vsel %vm1266_vm4, %v3939_v49, %v3773_v11  ;;  %7134 = vmatprep.mubr.f32.mxu1 %v4390_v28 }
 0x299   : > { %v4058_v12 = vsel %vm1308_vm5, %v3971_v22, 0 }
 0x29a   : > { %11411 = vst [vmem:[#allocation112_spill] sm:$0xff] %v10025_v33  ;;  %v10029_v43 = vand.u32 4294901760, %v4058_v12  ;;  %v11185_v52 = vand.u32 4294901760, %v10025_v33 }
 0x29b   : > { %v835_v20 = vpop.permute.xlu1 %834  ;;  %v709_v44 = vpop.permute.xlu0 %708 }
 0x29c   : > { %11412 = vst [vmem:[#allocation113_spill] sm:$0xff] %v10029_v43  ;;  %v10033_v39 = vsub.f32 %v4058_v12, %v10029_v43  ;;  %v1726_v27 = vsub.f32 %v10025_v33, %v11185_v52 }
 0x29e   : > { %11413 = vst [vmem:[#allocation114_spill] sm:$0xff] %v10033_v39  ;;  %v1727_v24 = vand.u32 4294901760, %v1726_v27  ;;  %v11188_v23 = vand.u32 4294901760, %v10033_v39  ;;  %v1161_v27 = vsel %vm1134_vm0, %v9284_v4, %v9937_v18 }
 0x29f   : > { %v3519_v49 = vpop.permute.xlu1 %3518  ;;  %v3393_v28 = vpop.permute.xlu0 %3392  ;;  %v1194_v52 = vsel %vm1167_vm1, %v1161_v27, %v707_v21 }
 0x2a0   : > { %6811 = vmatmul.mubr.f32.gmra.mrb[24].mxu0 %v1727_v24  ;;  %v4399_v11 = vsub.f32 %v10033_v39, %v11188_v23  ;;  %v1227_v24 = vsel %vm1200_vm2, %v1194_v52, %v835_v20 }
 0x2a2   : > { %v4400_v22 = vand.u32 4294901760, %v4399_v11 }
 0x2a3   : > { %v963_v13 = vpop.permute.xlu1 %962  ;;  %v837_v7 = vpop.permute.xlu0 %836 }
 0x2a4   : > { %7135 = vmatmul.mubr.f32.gmra.mrb[24].mxu1 %v4400_v22  ;;  %v1260_v33 = vsel %vm1233_vm3, %v1227_v24, %v963_v13  ;;  %v3844_v22 = vsel %vm1134_vm0, %v9424_v5, %v9948_v32 }
 0x2a5   : > { %v3876_v16 = vsel %vm1167_vm1, %v3844_v22, %v3391_v61 }
 0x2a6   : > { %v3908_v18 = vsel %vm1200_vm2, %v3876_v16, %v3519_v49  ;;  %v7887_v16 = vld [vmem:[%s7961_s19 + $0x140] sm:$0xff] }
 0x2a7   : > { %v3647_v12 = vpop.permute.xlu1 %3646  ;;  %v3521_v38 = vpop.permute.xlu0 %3520  ;;  %v1162_v49 = vsel %vm1134_vm0, %v7887_v16, %v9978_v63  ;;  %v3845_v63 = vsel %vm1134_vm0, %v9438_v37, %v10005_v36 }
 0x2a8   : > { %v3940_v13 = vsel %vm1233_vm3, %v3908_v18, %v3647_v12 }
 0x2ab   : > { %v965_v17 = vpop.permute.xlu1 %964  ;;  %v10042_v30 = vpop.permute.xlu0 %582 }
 0x2af   : > { %v10050_v23 = vpop.permute.xlu1 %3298  ;;  %v1091_v11 = vpop.permute.xlu0 %1090 }
 0x2b0   : > { %v1293_v39 = vsel %vm1266_vm4, %v1260_v33, %v1091_v11 }
 0x2b1   : > { %v1388_v4 = vsel %vm1308_vm5, %v1293_v39, 0 }
 0x2b2   : > { %v10059_v21 = vand.u32 4294901760, %v1388_v4 }
 0x2b3   : > { %v3775_v52 = vpop.permute.xlu1 %3774  ;;  %v3649_v20 = vpop.permute.xlu0 %3648 }
 0x2b4   : > { %11414 = vst [vmem:[#allocation115_spill] sm:$0xff] %v10059_v21  ;;  %v10063_v27 = vsub.f32 %v1388_v4, %v10059_v21  ;;  %v3972_v32 = vsel %vm1266_vm4, %v3940_v13, %v3775_v52  ;;  %v1195_v4 = vsel %vm1167_vm1, %v1162_v49, %v709_v44 }
 0x2b5   : > { %v4061_v24 = vsel %vm1308_vm5, %v3972_v32, 0  ;;  %v1228_v18 = vsel %vm1200_vm2, %v1195_v4, %v837_v7  ;;  %v3877_v7 = vsel %vm1167_vm1, %v3845_v63, %v3393_v28 }
 0x2b6   : > { %11415 = vst [vmem:[#allocation116_spill] sm:$0xff] %v10063_v27  ;;  %v10067_v33 = vand.u32 4294901760, %v4061_v24  ;;  %v11195_v61 = vand.u32 4294901760, %v10063_v27  ;;  %v1261_v32 = vsel %vm1233_vm3, %v1228_v18, %v965_v17  ;;  %v3909_v17 = vsel %vm1200_vm2, %v3877_v7, %v3521_v38 }
 0x2b7   : > { %v711_v39 = vpop.permute.xlu1 %710  ;;  %v10070_v11 = vpop.permute.xlu0 %584  ;;  %v3941_v4 = vsel %vm1233_vm3, %v3909_v17, %v3649_v20 }
 0x2b8   : > { %11416 = vst [vmem:[#allocation117_spill] sm:$0xff] %v10067_v33  ;;  %v10076_v12 = vsub.f32 %v4061_v24, %v10067_v33  ;;  %v1736_v22 = vsub.f32 %v10063_v27, %v11195_v61 }
 0x2ba   : > { %11417 = vst [vmem:[#allocation118_spill] sm:$0xff] %v10076_v12  ;;  %v1737_v13 = vand.u32 4294901760, %v1736_v22  ;;  %v11194_v52 = vand.u32 4294901760, %v10076_v12 }
 0x2bb   : > { %v10085_v53 = vpop.permute.xlu1 %3300  ;;  %v1093_v10 = vpop.permute.xlu0 %1092 }
 0x2bc   : > { %v1294_v24 = vsel %vm1266_vm4, %v1261_v32, %v1093_v10  ;;  %6813 = vmatprep.mubr.f32.mxu0 %v1737_v13  ;;  %v4409_v44 = vsub.f32 %v10076_v12, %v11194_v52 }
 0x2bd   : > { %v1391_v16 = vsel %vm1308_vm5, %v1294_v24, 0 }
 0x2be   : > { %v10097_v49 = vand.u32 4294901760, %v1391_v16  ;;  %v4410_v22 = vand.u32 4294901760, %v4409_v44 }
 0x2bf   : > { %v3777_v18 = vpop.permute.xlu1 %3776  ;;  %v3395_v36 = vpop.permute.xlu0 %3394 }
 0x2c0   : > { %11418 = vst [vmem:[#allocation119_spill] sm:$0xff] %v10097_v49  ;;  %v10101_v10 = vsub.f32 %v1391_v16, %v10097_v49  ;;  %v3973_v13 = vsel %vm1266_vm4, %v3941_v4, %v3777_v18  ;;  %7137 = vmatprep.mubr.f32.mxu1 %v4410_v22 }
 0x2c1   : > { %v4064_v32 = vsel %vm1308_vm5, %v3973_v13, 0 }
 0x2c2   : > { %11419 = vst [vmem:[#allocation120_spill] sm:$0xff] %v10101_v10  ;;  %v10105_v28 = vand.u32 4294901760, %v4064_v32  ;;  %v11200_v63 = vand.u32 4294901760, %v10101_v10 }
 0x2c3   : > { %v839_v38 = vpop.permute.xlu1 %838  ;;  %v713_v24 = vpop.permute.xlu0 %712 }
 0x2c4   : > { %11420 = vst [vmem:[#allocation121_spill] sm:$0xff] %v10105_v28  ;;  %v10109_v44 = vsub.f32 %v4064_v32, %v10105_v28  ;;  %v1746_v20 = vsub.f32 %v10101_v10, %v11200_v63 }
 0x2c6   : > { %11421 = vst [vmem:[#allocation122_spill] sm:$0xff] %v10109_v44  ;;  %v1747_v7 = vand.u32 4294901760, %v1746_v20  ;;  %v11203_v16 = vand.u32 4294901760, %v10109_v44  ;;  %v1163_v20 = vsel %vm1134_vm0, %v9424_v5, %v10042_v30 }
 0x2c7   : > { %v3523_v17 = vpop.permute.xlu1 %3522  ;;  %v3397_v22 = vpop.permute.xlu0 %3396  ;;  %v1196_v63 = vsel %vm1167_vm1, %v1163_v20, %v711_v39 }
 0x2c8   : > { %6814 = vmatmul.mubr.f32.gmra.mrb[26].mxu0 %v1747_v7  ;;  %v4419_v4 = vsub.f32 %v10109_v44, %v11203_v16  ;;  %v1229_v7 = vsel %vm1200_vm2, %v1196_v63, %v839_v38 }
 0x2ca   : > { %v4420_v18 = vand.u32 4294901760, %v4419_v4 }
 0x2cb   : > { %v967_v13 = vpop.permute.xlu1 %966  ;;  %v841_v52 = vpop.permute.xlu0 %840 }
 0x2cc   : > { %7138 = vmatmul.mubr.f32.gmra.mrb[26].mxu1 %v4420_v18  ;;  %v1262_v10 = vsel %vm1233_vm3, %v1229_v7, %v967_v13  ;;  %v3846_v18 = vsel %vm1134_vm0, %v9564_v0, %v10050_v23 }
 0x2cd   : > { %v3878_v25 = vsel %vm1167_vm1, %v3846_v18, %v3395_v36 }
 0x2ce   : > { %v3910_v5 = vsel %vm1200_vm2, %v3878_v25, %v3523_v17  ;;  %v1164_v25 = vsel %vm1134_vm0, %v9438_v37, %v10070_v11  ;;  %v3847_v37 = vsel %vm1134_vm0, %v9578_v57, %v10085_v53 }
 0x2d0   : > { %v3651_v32 = vpop.permute.xlu1 %3650  ;;  %v3525_v61 = vpop.permute.xlu0 %3524 }
 0x2d1   : > { %v3942_v39 = vsel %vm1233_vm3, %v3910_v5, %v3651_v32  ;;  %v1197_v32 = vsel %vm1167_vm1, %v1164_v25, %v713_v24 }
 0x2d4   : > { %v969_v12 = vpop.permute.xlu1 %968  ;;  %v10118_v27 = vpop.permute.xlu0 %586 }
 0x2d8   : > { %v10126_v16 = vpop.permute.xlu1 %3302  ;;  %v1095_v4 = vpop.permute.xlu0 %1094 }
 0x2d9   : > { %v1295_v44 = vsel %vm1266_vm4, %v1262_v10, %v1095_v4  ;;  %v1230_v4 = vsel %vm1200_vm2, %v1197_v32, %v841_v52  ;;  %v3879_v52 = vsel %vm1167_vm1, %v3847_v37, %v3397_v22 }
 0x2da   : > { %v1394_v28 = vsel %vm1308_vm5, %v1295_v44, 0  ;;  %v3911_v25 = vsel %vm1200_vm2, %v3879_v52, %v3525_v61 }
 0x2db   : > { %v10135_v30 = vand.u32 4294901760, %v1394_v28 }
 0x2dc   : > { %v3779_v63 = vpop.permute.xlu1 %3778  ;;  %v3653_v38 = vpop.permute.xlu0 %3652 }
 0x2dd   : > { %11422 = vst [vmem:[#allocation123_spill] sm:$0xff] %v10135_v30  ;;  %v10139_v13 = vsub.f32 %v1394_v28, %v10135_v30  ;;  %v3974_v20 = vsel %vm1266_vm4, %v3942_v39, %v3779_v63  ;;  %v1263_v39 = vsel %vm1233_vm3, %v1230_v4, %v969_v12  ;;  %v3943_v32 = vsel %vm1233_vm3, %v3911_v25, %v3653_v38 }
 0x2de   : > { %v4067_v23 = vsel %vm1308_vm5, %v3974_v20, 0 }
 0x2df   : > { %11423 = vst [vmem:[#allocation124_spill] sm:$0xff] %v10139_v13  ;;  %v10143_v10 = vand.u32 4294901760, %v4067_v23  ;;  %v11211_v36 = vand.u32 4294901760, %v10139_v13 }
 0x2e0   : > { %v715_v44 = vpop.permute.xlu1 %714  ;;  %v589_v7 = vpop.permute.xlu0 %588 }
 0x2e1   : > { %11424 = vst [vmem:[#allocation125_spill] sm:$0xff] %v10143_v10  ;;  %v10150_v17 = vsub.f32 %v4067_v23, %v10143_v10  ;;  %v1756_v28 = vsub.f32 %v10139_v13, %v11211_v36 }
 0x2e3   : > { %11425 = vst [vmem:[#allocation126_spill] sm:$0xff] %v10150_v17  ;;  %v1757_v18 = vand.u32 4294901760, %v1756_v28  ;;  %v11210_v5 = vand.u32 4294901760, %v10150_v17 }
 0x2e4   : > { %v3305_v63 = vpop.permute.xlu1 %3304  ;;  %v1097_v20 = vpop.permute.xlu0 %1096 }
 0x2e5   : > { %v1296_v11 = vsel %vm1266_vm4, %v1263_v39, %v1097_v20  ;;  %6816 = vmatprep.mubr.f32.mxu0 %v1757_v18  ;;  %v4429_v24 = vsub.f32 %v10150_v17, %v11210_v5 }
 0x2e6   : > { %v1397_v23 = vsel %vm1308_vm5, %v1296_v11, 0 }
 0x2e7   : > { %v10169_v12 = vand.u32 4294901760, %v1397_v23  ;;  %v4430_v28 = vand.u32 4294901760, %v4429_v24 }
 0x2e8   : > { %v3781_v4 = vpop.permute.xlu1 %3780  ;;  %v3399_v53 = vpop.permute.xlu0 %3398 }
 0x2e9   : > { %11426 = vst [vmem:[#allocation127_spill] sm:$0xff] %v10169_v12  ;;  %v10173_v39 = vsub.f32 %v1397_v23, %v10169_v12  ;;  %v3975_v18 = vsel %vm1266_vm4, %v3943_v32, %v3781_v4  ;;  %7140 = vmatprep.mubr.f32.mxu1 %v4430_v28 }
 0x2ea   : > { %v4070_v20 = vsel %vm1308_vm5, %v3975_v18, 0 }
 0x2eb   : > { %11427 = vst [vmem:[#allocation128_spill] sm:$0xff] %v10173_v39  ;;  %v10177_v22 = vand.u32 4294901760, %v4070_v20  ;;  %v11212_v37 = vand.u32 4294901760, %v10173_v39 }
 0x2ec   : > { %v843_v61 = vpop.permute.xlu1 %842  ;;  %v717_v11 = vpop.permute.xlu0 %716 }
 0x2ed   : > { %11428 = vst [vmem:[#allocation129_spill] sm:$0xff] %v10177_v22  ;;  %v10181_v24 = vsub.f32 %v4070_v20, %v10177_v22  ;;  %v1766_v38 = vsub.f32 %v10173_v39, %v11212_v37  ;;  %v1165_v37 = vsel %vm1134_vm0, %v9564_v0, %v10118_v27 }
 0x2ef   : > { %11429 = vst [vmem:[#allocation130_spill] sm:$0xff] %v10181_v24  ;;  %v1767_v52 = vand.u32 4294901760, %v1766_v38  ;;  %v11219_v23 = vand.u32 4294901760, %v10181_v24  ;;  %v1198_v38 = vsel %vm1167_vm1, %v1165_v37, %v715_v44 }
 0x2f0   : > { %v3527_v25 = vpop.permute.xlu1 %3526  ;;  %v3401_v28 = vpop.permute.xlu0 %3400  ;;  %v1231_v39 = vsel %vm1200_vm2, %v1198_v38, %v843_v61  ;;  %v1166_v61 = vsel %vm1134_vm0, %v9578_v57, %v589_v7 }
 0x2f1   : > { %6817 = vmatmul.mubr.f32.gmra.mrb[28].mxu0 %v1767_v52  ;;  %v4439_v32 = vsub.f32 %v10181_v24, %v11219_v23 }
 0x2f3   : > { %v4440_v4 = vand.u32 4294901760, %v4439_v32  ;;  %v3848_v32 = vsel %vm1134_vm0, %v9736_v14, %v10126_v16  ;;  %v3849_v14 = vsel %vm1134_vm0, %v9770_v31, %v3305_v63 }
 0x2f4   : > { %v971_v18 = vpop.permute.xlu1 %970  ;;  %v845_v5 = vpop.permute.xlu0 %844  ;;  %v3880_v23 = vsel %vm1167_vm1, %v3848_v32, %v3399_v53  ;;  %v1199_v53 = vsel %vm1167_vm1, %v1166_v61, %v717_v11 }
 0x2f5   : > { %7141 = vmatmul.mubr.f32.gmra.mrb[28].mxu1 %v4440_v4  ;;  %v1264_v52 = vsel %vm1233_vm3, %v1231_v39, %v971_v18  ;;  %v3912_v0 = vsel %vm1200_vm2, %v3880_v23, %v3527_v25  ;;  %v3881_v23 = vsel %vm1167_vm1, %v3849_v14, %v3401_v28  ;;  %v1232_v18 = vsel %vm1200_vm2, %v1199_v53, %v845_v5 }
 0x2f8   : > { %v3655_v20 = vpop.permute.xlu1 %3654  ;;  %v3529_v36 = vpop.permute.xlu0 %3528 }
 0x2f9   : > { %v3944_v44 = vsel %vm1233_vm3, %v3912_v0, %v3655_v20  ;;  %v3913_v20 = vsel %vm1200_vm2, %v3881_v23, %v3529_v36 }
 0x2fc   : > { %v1099_v17 = vpop.permute.xlu1 %1098  ;;  %v973_v13 = vpop.permute.xlu0 %972 }
 0x2fd   : > { %v1297_v4 = vsel %vm1266_vm4, %v1264_v52, %v1099_v17  ;;  %v1265_v31 = vsel %vm1233_vm3, %v1232_v18, %v973_v13 }
 0x2fe   : > { %v1400_v24 = vsel %vm1308_vm5, %v1297_v4, 0 }
 0x2ff   : > { %v10203_v27 = vand.u32 4294901760, %v1400_v24 }
 0x300   : > { %v3783_v37 = vpop.permute.xlu1 %3782  ;;  %v3657_v39 = vpop.permute.xlu0 %3656 }
 0x301   : > { %11430 = vst [vmem:[#allocation131_spill] sm:$0xff] %v10203_v27  ;;  %v10211_v16 = vsub.f32 %v1400_v24, %v10203_v27  ;;  %v3976_v17 = vsel %vm1266_vm4, %v3944_v44, %v3783_v37  ;;  %v3945_v7 = vsel %vm1233_vm3, %v3913_v20, %v3657_v39 }
 0x302   : > { %v4073_v25 = vsel %vm1308_vm5, %v3976_v17, 0 }
 0x303   : > { %v10219_v38 = vand.u32 4294901760, %v4073_v25  ;;  %v11225_v57 = vand.u32 4294901760, %v10211_v16 }
 0x304   : > { %v3785_v63 = vpop.permute.xlu1 %3784  ;;  %v1101_v24 = vpop.permute.xlu0 %1100 }
 0x305   : > { %11431 = vst [vmem:[#allocation132_spill] sm:$0xff] %v10219_v38  ;;  %v10225_v11 = vsub.f32 %v4073_v25, %v10219_v38  ;;  %v3977_v28 = vsel %vm1266_vm4, %v3945_v7, %v3785_v63  ;;  %v1298_v52 = vsel %vm1266_vm4, %v1265_v31, %v1101_v24  ;;  %v1776_v36 = vsub.f32 %v10211_v16, %v11225_v57  ;;  %v11440_v31 = vld [vmem:[#allocation43_spill] sm:$0xff]  ;;  %v11441_v7 = vld [vmem:[#allocation45_spill] sm:$0xff] }
 0x306   : > { %v4076_v5 = vsel %vm1308_vm5, %v3977_v28, 0  ;;  %v1403_v32 = vsel %vm1308_vm5, %v1298_v52, 0  ;;  %v11442_v63 = vld [vmem:[#allocation47_spill] sm:$0xff]  ;;  %v11443_v24 = vld [vmem:[#allocation49_spill] sm:$0xff] }
 0x307   : > { %v10234_v13 = vand.u32 4294901760, %v4076_v5  ;;  %v10236_v4 = vand.u32 4294901760, %v1403_v32  ;;  %v1777_v0 = vand.u32 4294901760, %v1776_v36  ;;  %v11224_v44 = vand.u32 4294901760, %v10225_v11  ;;  %v11444_v28 = vld [vmem:[#allocation51_spill] sm:$0xff]  ;;  %v11445_v52 = vld [vmem:[#allocation53_spill] sm:$0xff] }
 0x308   : > { %v11446_v36 = vld [vmem:[#allocation55_spill] sm:$0xff]  ;;  %v11459_v57 = vld [vmem:[#allocation81_spill] sm:$0xff] }
 0x309   : > { %11432 = vst [vmem:[#allocation133_spill] sm:$0xff] %v10234_v13  ;;  %11433 = vst [vmem:[#allocation134_spill] sm:$0xff] %v10236_v4  ;;  %v10240_v37 = vsub.f32 %v4076_v5, %v10234_v13  ;;  %v10243_v39 = vsub.f32 %v1403_v32, %v10236_v4  ;;  %6819 = vmatprep.mubr.f32.mxu0 %v1777_v0  ;;  %v4449_v61 = vsub.f32 %v10225_v11, %v11224_v44  ;;  %v11447_v5 = vld [vmem:[#allocation57_spill] sm:$0xff]  ;;  %v11448_v32 = vld [vmem:[#allocation59_spill] sm:$0xff] }
 0x30a   : > { %v11449_v0 = vld [vmem:[#allocation61_spill] sm:$0xff]  ;;  %v11458_v44 = vld [vmem:[#allocation79_spill] sm:$0xff] }
 0x30b   : > { %11434 = vst [vmem:[#allocation135_spill] sm:$0xff] %v10240_v37  ;;  %11435 = vst [vmem:[#allocation136_spill] sm:$0xff] %v10243_v39  ;;  %v4450_v14 = vand.u32 4294901760, %v4449_v61  ;;  %v11223_v17 = vand.u32 4294901760, %v10243_v39  ;;  %v11222_v53 = vand.u32 4294901760, %v10240_v37  ;;  %v11450_v61 = vld [vmem:[#allocation63_spill] sm:$0xff] }
 0x30d   : > { %7143 = vmatprep.mubr.f32.mxu1 %v4450_v14  ;;  %v1786_v23 = vsub.f32 %v10243_v39, %v11223_v17  ;;  %v4459_v25 = vsub.f32 %v10240_v37, %v11222_v53  ;;  %v11451_v14 = vld [vmem:[#allocation65_spill] sm:$0xff]  ;;  %v11456_v53 = vld [vmem:[#allocation75_spill] sm:$0xff] }
 0x30e   : > { %v11457_v17 = vld [vmem:[#allocation77_spill] sm:$0xff] }
 0x30f   : > { %v1787_v18 = vand.u32 4294901760, %v1786_v23  ;;  %v4460_v20 = vand.u32 4294901760, %v4459_v25  ;;  %v11452_v23 = vld [vmem:[#allocation67_spill] sm:$0xff]  ;;  %v11453_v25 = vld [vmem:[#allocation69_spill] sm:$0xff] }
 0x311   : > { %6820 = vmatmul.mubr.f32.gmra.mrb[30].mxu0 %v1787_v18  ;;  %7144 = vmatmul.mubr.f32.gmra.mrb[30].mxu1 %v4460_v20  ;;  %v11454_v18 = vld [vmem:[#allocation71_spill] sm:$0xff]  ;;  %v11455_v20 = vld [vmem:[#allocation73_spill] sm:$0xff] }
 0x312   : > { %6828 = vmatprep.mubr.f32.mxu0 %v8205_v15  ;;  %7152 = vmatprep.mubr.f32.mxu1 %v8218_v35  ;;  %v11530_v35 = vld [vmem:[#allocation120_spill] sm:$0xff]  ;;  %v11531_v15 = vld [vmem:[#allocation122_spill] sm:$0xff] }
 0x315   : > { %6829 = vmatmul.mubr.f32.vlgmr.msra.gmra.mrb[0].mxu0 %v8265_v60  ;;  %7153 = vmatmul.mubr.f32.vlgmr.msra.gmra.mrb[0].mxu1 %v8277_v40  ;;  %v11528_v40 = vld [vmem:[#allocation116_spill] sm:$0xff]  ;;  %v11529_v60 = vld [vmem:[#allocation118_spill] sm:$0xff] }
 0x316   : > { %7427 = vmatpush3.bf16.msra.mxu0 %v9996_v29  ;;  %7451 = vmatpush3.bf16.msra.mxu1 %v10000_v8  ;;  %v11436_v29 = vld [vmem:[#allocation35_spill] sm:$0xff]  ;;  %v11437_v8 = vld [vmem:[#allocation37_spill] sm:$0xff] }
 0x317   : > { %6831 = vmatprep.mubr.f32.mxu0 %v8346_v3  ;;  %7155 = vmatprep.mubr.f32.mxu1 %v8358_v58  ;;  %v11526_v58 = vld [vmem:[#allocation112_spill] sm:$0xff]  ;;  %v11527_v3 = vld [vmem:[#allocation114_spill] sm:$0xff] }
 0x318   : > { %6880 = vmatprep.subr.mxu0 %v9903_v59  ;;  %7204 = vmatprep.subr.mxu1 %v9897_v45 }
 0x319   : > { %6832 = vmatmul.mubr.f32.gmra.mrb[2].mxu0 %v8405_v55  ;;  %7156 = vmatmul.mubr.f32.gmra.mrb[2].mxu1 %v8417_v42  ;;  %v11522_v42 = vld [vmem:[#allocation102_spill] sm:$0xff]  ;;  %v11523_v55 = vld [vmem:[#allocation104_spill] sm:$0xff] }
 0x31a   : > { %6834 = vmatprep.mubr.f32.mxu0 %v8486_v41  ;;  %7158 = vmatprep.mubr.f32.mxu1 %v8498_v47  ;;  %v11520_v47 = vld [vmem:[#allocation98_spill] sm:$0xff]  ;;  %v11521_v41 = vld [vmem:[#allocation100_spill] sm:$0xff] }
 0x31b   : > { %6881 = vmatpush3.msra.mxu0 %v9903_v59  ;;  %7205 = vmatpush3.msra.mxu1 %v9897_v45  ;;  %v11438_v59 = vld [vmem:[#allocation39_spill] sm:$0xff]  ;;  %v11439_v45 = vld [vmem:[#allocation41_spill] sm:$0xff] }
 0x31c   : > { %7429 = vmatprep.subr.bf16.mxu0 %v8024_v19  ;;  %7453 = vmatprep.subr.bf16.mxu1 %v8051_v26 }
 0x31d   : > { %6835 = vmatmul.mubr.f32.gmra.mrb[4].mxu0 %v8545_v48  ;;  %7159 = vmatmul.mubr.f32.gmra.mrb[4].mxu1 %v8557_v54  ;;  %v11518_v54 = vld [vmem:[#allocation90_spill] sm:$0xff]  ;;  %v11519_v48 = vld [vmem:[#allocation92_spill] sm:$0xff] }
 0x31e   : > { %6837 = vmatprep.mubr.f32.mxu0 %v8626_v2  ;;  %7161 = vmatprep.mubr.f32.mxu1 %v8638_v56  ;;  %v11516_v56 = vld [vmem:[#allocation86_spill] sm:$0xff]  ;;  %v11517_v2 = vld [vmem:[#allocation88_spill] sm:$0xff] }
 0x321   : > { %6838 = vmatmul.mubr.f32.gmra.mrb[6].mxu0 %v8685_v34  ;;  %7162 = vmatmul.mubr.f32.gmra.mrb[6].mxu1 %v11436_v29  ;;  %v11514_v29 = vld [vmem:[#allocation82_spill] sm:$0xff]  ;;  %v11515_v34 = vld [vmem:[#allocation84_spill] sm:$0xff] }
 0x322   : > { %6840 = vmatprep.mubr.f32.mxu0 %v11437_v8  ;;  %7164 = vmatprep.mubr.f32.mxu1 %v11438_v59  ;;  %v11512_v59 = vld [vmem:[#allocation78_spill] sm:$0xff]  ;;  %v11513_v8 = vld [vmem:[#allocation80_spill] sm:$0xff] }
 0x325   : > { %6841 = vmatmul.mubr.f32.gmra.mrb[8].mxu0 %v11439_v45  ;;  %7165 = vmatmul.mubr.f32.gmra.mrb[8].mxu1 %v11440_v31  ;;  %v11510_v31 = vld [vmem:[#allocation74_spill] sm:$0xff]  ;;  %v11511_v45 = vld [vmem:[#allocation76_spill] sm:$0xff] }
 0x326   : > { %6843 = vmatprep.mubr.f32.mxu0 %v11441_v7  ;;  %7167 = vmatprep.mubr.f32.mxu1 %v11442_v63  ;;  %v11508_v63 = vld [vmem:[#allocation70_spill] sm:$0xff]  ;;  %v11509_v7 = vld [vmem:[#allocation72_spill] sm:$0xff] }
 0x329   : > { %6844 = vmatmul.mubr.f32.gmra.mrb[10].mxu0 %v11443_v24  ;;  %7168 = vmatmul.mubr.f32.gmra.mrb[10].mxu1 %v11444_v28  ;;  %v11506_v28 = vld [vmem:[#allocation66_spill] sm:$0xff]  ;;  %v11507_v24 = vld [vmem:[#allocation68_spill] sm:$0xff] }
 0x32a   : > { %6846 = vmatprep.mubr.f32.mxu0 %v11445_v52  ;;  %7170 = vmatprep.mubr.f32.mxu1 %v11446_v36  ;;  %v11504_v36 = vld [vmem:[#allocation62_spill] sm:$0xff]  ;;  %v11505_v52 = vld [vmem:[#allocation64_spill] sm:$0xff] }
 0x32d   : > { %6847 = vmatmul.mubr.f32.gmra.mrb[12].mxu0 %v11447_v5  ;;  %7171 = vmatmul.mubr.f32.gmra.mrb[12].mxu1 %v11448_v32  ;;  %v11502_v32 = vld [vmem:[#allocation58_spill] sm:$0xff]  ;;  %v11503_v5 = vld [vmem:[#allocation60_spill] sm:$0xff] }
 0x32e   : > { %6849 = vmatprep.mubr.f32.mxu0 %v11449_v0  ;;  %7173 = vmatprep.mubr.f32.mxu1 %v11450_v61  ;;  %v11460_v0 = vld [vmem:[#allocation83_spill] sm:$0xff]  ;;  %v11461_v61 = vld [vmem:[#allocation85_spill] sm:$0xff] }
 0x331   : > { %6850 = vmatmul.mubr.f32.gmra.mrb[14].mxu0 %v11451_v14  ;;  %7174 = vmatmul.mubr.f32.gmra.mrb[14].mxu1 %v11452_v23  ;;  %v11462_v14 = vld [vmem:[#allocation87_spill] sm:$0xff]  ;;  %v11463_v23 = vld [vmem:[#allocation89_spill] sm:$0xff] }
 0x332   : > { %6852 = vmatprep.mubr.f32.mxu0 %v11453_v25  ;;  %7176 = vmatprep.mubr.f32.mxu1 %v11454_v18  ;;  %v11464_v25 = vld [vmem:[#allocation91_spill] sm:$0xff]  ;;  %v11501_v18 = vld [vmem:[#allocation56_spill] sm:$0xff] }
 0x335   : > { %6853 = vmatmul.mubr.f32.gmra.mrb[16].mxu0 %v11455_v20  ;;  %7177 = vmatmul.mubr.f32.gmra.mrb[16].mxu1 %v11456_v53  ;;  %v11499_v53 = vld [vmem:[#allocation52_spill] sm:$0xff]  ;;  %v11500_v20 = vld [vmem:[#allocation54_spill] sm:$0xff] }
 0x336   : > { %6855 = vmatprep.mubr.f32.mxu0 %v11457_v17  ;;  %7179 = vmatprep.mubr.f32.mxu1 %v11458_v44  ;;  %v11497_v44 = vld [vmem:[#allocation48_spill] sm:$0xff]  ;;  %v11498_v17 = vld [vmem:[#allocation50_spill] sm:$0xff] }
 0x339   : > { %6856 = vmatmul.mubr.f32.gmra.mrb[18].mxu0 %v11459_v57  ;;  %7180 = vmatmul.mubr.f32.gmra.mrb[18].mxu1 %v11460_v0  ;;  %v11495_v0 = vld [vmem:[#allocation44_spill] sm:$0xff]  ;;  %v11496_v57 = vld [vmem:[#allocation46_spill] sm:$0xff] }
 0x33a   : > { %6858 = vmatprep.mubr.f32.mxu0 %v11461_v61  ;;  %7182 = vmatprep.mubr.f32.mxu1 %v11462_v14  ;;  %v11485_v14 = vld [vmem:[#allocation24_spill] sm:$0xff]  ;;  %v11494_v61 = vld [vmem:[#allocation42_spill] sm:$0xff] }
 0x33d   : > { %6859 = vmatmul.mubr.f32.gmra.mrb[20].mxu0 %v11463_v23  ;;  %7183 = vmatmul.mubr.f32.gmra.mrb[20].mxu1 %v11464_v25  ;;  %v11483_v25 = vld [vmem:[#allocation20_spill] sm:$0xff]  ;;  %v11484_v23 = vld [vmem:[#allocation22_spill] sm:$0xff] }
 0x33e   : > { %6861 = vmatprep.mubr.f32.mxu0 %v9799_v50  ;;  %7185 = vmatprep.mubr.f32.mxu1 %v9811_v46  ;;  %v11465_v50 = vld [vmem:[#allocation121_spill] sm:$0xff]  ;;  %v11482_v46 = vld [vmem:[#allocation18_spill] sm:$0xff] }
 0x341   : > { %6862 = vmatmul.mubr.f32.gmra.mrb[22].mxu0 %v9861_v1  ;;  %7186 = vmatmul.mubr.f32.gmra.mrb[22].mxu1 %v9875_v51 }
 0x342   : > { %6864 = vmatprep.mubr.f32.mxu0 %v9962_v9  ;;  %7188 = vmatprep.mubr.f32.mxu1 %v9974_v6  ;;  %v11480_v9 = vld [vmem:[#allocation96_spill] sm:$0xff] }
 0x343   : > { %v11481_v51 = vand.u32 4294901760, %v11480_v9  ;;  %v11488_v9 = vld [vmem:[#allocation30_spill] sm:$0xff] }
 0x345   : > { %6865 = vmatmul.mubr.f32.gmra.mrb[24].mxu0 %v10021_v62  ;;  %7189 = vmatmul.mubr.f32.gmra.mrb[24].mxu1 %v10029_v43  ;;  %v11478_v62 = vld [vmem:[#allocation95_spill] sm:$0xff] }
 0x346   : > { %6867 = vmatprep.mubr.f32.mxu0 %v10059_v21  ;;  %7191 = vmatprep.mubr.f32.mxu1 %v10067_v33  ;;  %v11466_v33 = vld [vmem:[#allocation6_spill] sm:$0xff]  ;;  %v11479_v6 = vand.u32 4294901760, %v11478_v62 }
 0x347   : > { %v11486_v62 = vld [vmem:[#allocation26_spill] sm:$0xff] }
 0x348   : > { %v10348_v1 = vpack.c.bf16 %v11481_v51, %v11479_v6  ;;  %v11487_v51 = vld [vmem:[#allocation28_spill] sm:$0xff] }
 0x349   : > { %6868 = vmatmul.mubr.f32.gmra.mrb[26].mxu0 %v10097_v49  ;;  %7192 = vmatmul.mubr.f32.gmra.mrb[26].mxu1 %v11465_v50  ;;  %v11467_v49 = vld [vmem:[#allocation8_spill] sm:$0xff]  ;;  %v11468_v50 = vld [vmem:[#allocation10_spill] sm:$0xff] }
 0x34a   : > { %6870 = vmatprep.mubr.f32.mxu0 %v10135_v30  ;;  %7194 = vmatprep.mubr.f32.mxu1 %v10143_v10  ;;  %v11469_v30 = vld [vmem:[#allocation12_spill] sm:$0xff]  ;;  %v11476_v10 = vld [vmem:[#allocation94_spill] sm:$0xff] }
 0x34b   : > { %v11477_v21 = vand.u32 4294901760, %v11476_v10  ;;  %v11489_v6 = vld [vmem:[#allocation32_spill] sm:$0xff] }
 0x34c   : > { %v11491_v10 = vld [vmem:[#allocation36_spill] sm:$0xff] }
 0x34d   : > { %6871 = vmatmul.mubr.f32.gmra.mrb[28].mxu0 %v10169_v12  ;;  %7195 = vmatmul.mubr.f32.gmra.mrb[28].mxu1 %v10177_v22  ;;  %v11470_v22 = vld [vmem:[#allocation14_spill] sm:$0xff] }
 0x34e   : > { %6873 = vmatprep.mubr.f32.mxu0 %v10203_v27  ;;  %7197 = vmatprep.mubr.f32.mxu1 %v10219_v38  ;;  %v11471_v27 = vld [vmem:[#allocation16_spill] sm:$0xff]  ;;  %v11472_v38 = vld [vmem:[#allocation3_spill] sm:$0xff] }
 0x351   : > { %6874 = vmatmul.mubr.f32.gmra.mrb[30].mxu0 %v10236_v4  ;;  %7198 = vmatmul.mubr.f32.gmra.mrb[30].mxu1 %v10234_v13  ;;  %v11473_v4 = vld [vmem:[#allocation4_spill] sm:$0xff]  ;;  %v11474_v13 = vld [vmem:[#allocation93_spill] sm:$0xff] }
 0x352   : > { %6882 = vmatprep.mubr.f32.mxu0 %v11466_v33  ;;  %7206 = vmatprep.mubr.f32.mxu1 %v11467_v49  ;;  %v11475_v12 = vand.u32 4294901760, %v11474_v13  ;;  %v11493_v13 = vld [vmem:[#allocation40_spill] sm:$0xff] }
 0x354   : > { %v10342_v43 = vpack.c.bf16 %v11477_v21, %v11475_v12  ;;  %v11490_v21 = vld [vmem:[#allocation34_spill] sm:$0xff] }
 0x355   : > { %6883 = vmatmul.mubr.f32.vlgmr.msra.gmra.mrb[0].mxu0 %v11468_v50  ;;  %7207 = vmatmul.mubr.f32.vlgmr.msra.gmra.mrb[0].mxu1 %v11469_v30  ;;  %v11492_v12 = vld [vmem:[#allocation38_spill] sm:$0xff] }
 0x356   : > { %7431 = vmatpush3.bf16.msra.mxu0 %v8024_v19  ;;  %7455 = vmatpush3.bf16.msra.mxu1 %v8051_v26 }
 0x357   : > { %6885 = vmatprep.mubr.f32.mxu0 %v11470_v22  ;;  %7209 = vmatprep.mubr.f32.mxu1 %v11471_v27 }
 0x358   : > { %6934 = vmatprep.subr.mxu0 %v11472_v38  ;;  %7258 = vmatprep.subr.mxu1 %v11473_v4 }
 0x359   : > { %6886 = vmatmul.mubr.f32.gmra.mrb[2].mxu0 %v11482_v46  ;;  %7210 = vmatmul.mubr.f32.gmra.mrb[2].mxu1 %v11483_v25 }
 0x35a   : > { %6888 = vmatprep.mubr.f32.mxu0 %v11484_v23  ;;  %7212 = vmatprep.mubr.f32.mxu1 %v11485_v14 }
 0x35b   : > { %6935 = vmatpush3.msra.mxu0 %v11472_v38  ;;  %7259 = vmatpush3.msra.mxu1 %v11473_v4  ;;  %v11524_v4 = vld [vmem:[#allocation108_spill] sm:$0xff]  ;;  %v11525_v38 = vld [vmem:[#allocation110_spill] sm:$0xff] }
 0x35c   : > { %7433 = vmatprep.subr.bf16.mxu0 %v10342_v43  ;;  %7457 = vmatprep.subr.bf16.mxu1 %v10348_v1 }
 0x35d   : > { %6889 = vmatmul.mubr.f32.gmra.mrb[4].mxu0 %v11486_v62  ;;  %7213 = vmatmul.mubr.f32.gmra.mrb[4].mxu1 %v11487_v51 }
 0x35e   : > { %6891 = vmatprep.mubr.f32.mxu0 %v11488_v9  ;;  %7215 = vmatprep.mubr.f32.mxu1 %v11489_v6 }
 0x361   : > { %6892 = vmatmul.mubr.f32.gmra.mrb[6].mxu0 %v11490_v21  ;;  %7216 = vmatmul.mubr.f32.gmra.mrb[6].mxu1 %v11491_v10 }
 0x362   : > { %6894 = vmatprep.mubr.f32.mxu0 %v11492_v12  ;;  %7218 = vmatprep.mubr.f32.mxu1 %v11493_v13 }
 0x365   : > { %6895 = vmatmul.mubr.f32.gmra.mrb[8].mxu0 %v11494_v61  ;;  %7219 = vmatmul.mubr.f32.gmra.mrb[8].mxu1 %v11495_v0 }
 0x366   : > { %6897 = vmatprep.mubr.f32.mxu0 %v11496_v57  ;;  %7221 = vmatprep.mubr.f32.mxu1 %v11497_v44 }
 0x369   : > { %6898 = vmatmul.mubr.f32.gmra.mrb[10].mxu0 %v11498_v17  ;;  %7222 = vmatmul.mubr.f32.gmra.mrb[10].mxu1 %v11499_v53 }
 0x36a   : > { %6900 = vmatprep.mubr.f32.mxu0 %v11500_v20  ;;  %7224 = vmatprep.mubr.f32.mxu1 %v11501_v18 }
 0x36d   : > { %6901 = vmatmul.mubr.f32.gmra.mrb[12].mxu0 %v11502_v32  ;;  %7225 = vmatmul.mubr.f32.gmra.mrb[12].mxu1 %v11503_v5 }
 0x36e   : > { %6903 = vmatprep.mubr.f32.mxu0 %v11504_v36  ;;  %7227 = vmatprep.mubr.f32.mxu1 %v11505_v52 }
 0x371   : > { %6904 = vmatmul.mubr.f32.gmra.mrb[14].mxu0 %v11506_v28  ;;  %7228 = vmatmul.mubr.f32.gmra.mrb[14].mxu1 %v11507_v24 }
 0x372   : > { %6906 = vmatprep.mubr.f32.mxu0 %v11508_v63  ;;  %7230 = vmatprep.mubr.f32.mxu1 %v11509_v7 }
 0x375   : > { %6907 = vmatmul.mubr.f32.gmra.mrb[16].mxu0 %v11510_v31  ;;  %7231 = vmatmul.mubr.f32.gmra.mrb[16].mxu1 %v11511_v45 }
 0x376   : > { %6909 = vmatprep.mubr.f32.mxu0 %v11512_v59  ;;  %7233 = vmatprep.mubr.f32.mxu1 %v11513_v8 }
 0x379   : > { %6910 = vmatmul.mubr.f32.gmra.mrb[18].mxu0 %v11514_v29  ;;  %7234 = vmatmul.mubr.f32.gmra.mrb[18].mxu1 %v11515_v34 }
 0x37a   : > { %6912 = vmatprep.mubr.f32.mxu0 %v11516_v56  ;;  %7236 = vmatprep.mubr.f32.mxu1 %v11517_v2 }
 0x37d   : > { %6913 = vmatmul.mubr.f32.gmra.mrb[20].mxu0 %v11518_v54  ;;  %7237 = vmatmul.mubr.f32.gmra.mrb[20].mxu1 %v11519_v48 }
 0x37e   : > { %6915 = vmatprep.mubr.f32.mxu0 %v11520_v47  ;;  %7239 = vmatprep.mubr.f32.mxu1 %v11521_v41  ;;  %v11532_v41 = vld [vmem:[#allocation124_spill] sm:$0xff] }
 0x381   : > { %6916 = vmatmul.mubr.f32.gmra.mrb[22].mxu0 %v11522_v42  ;;  %7240 = vmatmul.mubr.f32.gmra.mrb[22].mxu1 %v11523_v55  ;;  %v11533_v42 = vld [vmem:[#allocation126_spill] sm:$0xff]  ;;  %v11534_v55 = vld [vmem:[#allocation128_spill] sm:$0xff] }
 0x382   : > { %6918 = vmatprep.mubr.f32.mxu0 %v11524_v4  ;;  %7242 = vmatprep.mubr.f32.mxu1 %v11525_v38  ;;  %v11535_v4 = vld [vmem:[#allocation130_spill] sm:$0xff] }
 0x385   : > { %6919 = vmatmul.mubr.f32.gmra.mrb[24].mxu0 %v11526_v58  ;;  %7243 = vmatmul.mubr.f32.gmra.mrb[24].mxu1 %v11527_v3 }
 0x386   : > { %6921 = vmatprep.mubr.f32.mxu0 %v11528_v40  ;;  %7245 = vmatprep.mubr.f32.mxu1 %v11529_v60 }
 0x389   : > { %6922 = vmatmul.mubr.f32.gmra.mrb[26].mxu0 %v11530_v35  ;;  %7246 = vmatmul.mubr.f32.gmra.mrb[26].mxu1 %v11531_v15  ;;  %v11536_v35 = vand.u32 4294901760, %v11466_v33  ;;  %v11537_v15 = vand.u32 4294901760, %v11467_v49  ;;  %v11543_v33 = vld [vmem:[#allocation105_spill] sm:$0xff]  ;;  %v11551_v49 = vand.u32 4294901760, %v11489_v6 }
 0x38a   : > { %6924 = vmatprep.mubr.f32.mxu0 %v11532_v41  ;;  %7248 = vmatprep.mubr.f32.mxu1 %v11533_v42  ;;  %v11538_v42 = vand.u32 4294901760, %v11468_v50  ;;  %v11547_v50 = vand.u32 4294901760, %v11485_v14  ;;  %v11557_v14 = vand.u32 4294901760, %v11495_v0  ;;  %v11564_v0 = vand.u32 4294901760, %v11502_v32 }
 0x38b   : > { %v11571_v32 = vand.u32 4294901760, %v11509_v7  ;;  %v11578_v7 = vand.u32 4294901760, %v11516_v56  ;;  %v11587_v56 = vld [vmem:[#allocation104_spill] sm:$0xff] }
 0x38d   : > { %6925 = vmatmul.mubr.f32.gmra.mrb[28].mxu0 %v11534_v55  ;;  %7249 = vmatmul.mubr.f32.gmra.mrb[28].mxu1 %v11535_v4  ;;  %v11539_v55 = vand.u32 4294901760, %v11469_v30  ;;  %v11552_v30 = vand.u32 4294901760, %v11490_v21 }
 0x38e   : > { %6927 = vmatprep.mubr.f32.mxu0 %v10211_v16  ;;  %7251 = vmatprep.mubr.f32.mxu1 %v10225_v11 }
 0x391   : > { %6928 = vmatmul.mubr.f32.gmra.mrb[30].mxu0 %v10243_v39  ;;  %7252 = vmatmul.mubr.f32.gmra.mrb[30].mxu1 %v10240_v37  ;;  %v11540_v39 = vand.u32 4294901760, %v11470_v22  ;;  %v11541_v37 = vand.u32 4294901760, %v11471_v27  ;;  %v11553_v22 = vand.u32 4294901760, %v11491_v10  ;;  %v11554_v27 = vand.u32 4294901760, %v11492_v12 }
 0x392   : > { %6936 = vmatprep.mubr.f32.mxu0 %v11536_v35  ;;  %7260 = vmatprep.mubr.f32.mxu1 %v11537_v15  ;;  %v11542_v35 = vld [vmem:[#allocation106_spill] sm:$0xff]  ;;  %v11544_v15 = vand.u32 4294901760, %v11482_v46  ;;  %v11548_v46 = vand.u32 4294901760, %v11486_v62  ;;  %v11560_v62 = vand.u32 4294901760, %v11498_v17  ;;  %v11567_v17 = vand.u32 4294901760, %v11505_v52 }
 0x393   : > { %v11574_v52 = vand.u32 4294901760, %v11512_v59  ;;  %v11581_v59 = vand.u32 4294901760, %v11519_v48  ;;  %v11588_v10 = vand.u32 4294901760, %v11587_v56  ;;  %v11592_v48 = vand.u32 4294901760, %v11526_v58  ;;  %v11601_v58 = vld [vmem:[#allocation126_spill] sm:$0xff]  ;;  %v11651_v56 = vld [vmem:[#allocation79_spill] sm:$0xff] }
 0x395   : > { %6937 = vmatmul.mubr.f32.vlgmr.msra.gmra.mrb[0].mxu0 %v11538_v42  ;;  %7261 = vmatmul.mubr.f32.vlgmr.msra.gmra.mrb[0].mxu1 %v11539_v55  ;;  %v11545_v42 = vand.u32 4294901760, %v11483_v25  ;;  %v11546_v55 = vand.u32 4294901760, %v11484_v23  ;;  %v11558_v23 = vand.u32 4294901760, %v11496_v57  ;;  %v11559_v25 = vand.u32 4294901760, %v11497_v44 }
 0x396   : > { %7435 = vmatpush3.bf16.msra.mxu0 %v10342_v43  ;;  %7459 = vmatpush3.bf16.msra.mxu1 %v10348_v1  ;;  %v11549_v1 = vand.u32 4294901760, %v11487_v51  ;;  %v11550_v43 = vand.u32 4294901760, %v11488_v9  ;;  %v11561_v51 = vand.u32 4294901760, %v11499_v53  ;;  %v11562_v9 = vand.u32 4294901760, %v11500_v20 }
 0x397   : > { %6939 = vmatprep.mubr.f32.mxu0 %v11540_v39  ;;  %7263 = vmatprep.mubr.f32.mxu1 %v11541_v37  ;;  %v11555_v37 = vand.u32 4294901760, %v11493_v13  ;;  %v11556_v39 = vand.u32 4294901760, %v11494_v61  ;;  %v11563_v61 = vand.u32 4294901760, %v11501_v18  ;;  %v11565_v57 = vand.u32 4294901760, %v11503_v5 }
 0x398   : > { %6988 = vmatprep.subr.mxu0 %v11542_v35  ;;  %7312 = vmatprep.subr.mxu1 %v11543_v33  ;;  %v11566_v44 = vand.u32 4294901760, %v11504_v36  ;;  %v11568_v53 = vand.u32 4294901760, %v11506_v28  ;;  %v11569_v20 = vand.u32 4294901760, %v11507_v24  ;;  %v11570_v18 = vand.u32 4294901760, %v11508_v63 }
 0x399   : > { %6940 = vmatmul.mubr.f32.gmra.mrb[2].mxu0 %v11544_v15  ;;  %7264 = vmatmul.mubr.f32.gmra.mrb[2].mxu1 %v11545_v42  ;;  %v11572_v5 = vand.u32 4294901760, %v11510_v31  ;;  %v11573_v36 = vand.u32 4294901760, %v11511_v45  ;;  %v11575_v28 = vand.u32 4294901760, %v11513_v8  ;;  %v11576_v24 = vand.u32 4294901760, %v11514_v29  ;;  %v11583_v29 = vld [vmem:[#allocation100_spill] sm:$0xff]  ;;  %v11598_v42 = vld [vmem:[#allocation122_spill] sm:$0xff] }
 0x39a   : > { %6942 = vmatprep.mubr.f32.mxu0 %v11546_v55  ;;  %7266 = vmatprep.mubr.f32.mxu1 %v11547_v50  ;;  %v11577_v63 = vand.u32 4294901760, %v11515_v34  ;;  %v11579_v31 = vand.u32 4294901760, %v11517_v2  ;;  %v11580_v45 = vand.u32 4294901760, %v11518_v54  ;;  %v11582_v8 = vand.u32 4294901760, %v11520_v47  ;;  %v11585_v34 = vld [vmem:[#allocation102_spill] sm:$0xff]  ;;  %v11589_v2 = vld [vmem:[#allocation108_spill] sm:$0xff] }
 0x39b   : > { %6989 = vmatpush3.msra.mxu0 %v11542_v35  ;;  %7313 = vmatpush3.msra.mxu1 %v11543_v33  ;;  %v11584_v6 = vand.u32 4294901760, %v11583_v29  ;;  %v11586_v21 = vand.u32 4294901760, %v11585_v34  ;;  %v11590_v12 = vand.u32 4294901760, %v11589_v2  ;;  %v11591_v54 = vand.u32 4294901760, %v11525_v38  ;;  %v11596_v33 = vld [vmem:[#allocation120_spill] sm:$0xff]  ;;  %v11647_v29 = vld [vmem:[#allocation71_spill] sm:$0xff] }
 0x39c   : > { %7437 = vmatprep.subr.bf16.mxu0 %v8024_v19  ;;  %7461 = vmatprep.subr.bf16.mxu1 %v8051_v26  ;;  %v11593_v47 = vand.u32 4294901760, %v11527_v3  ;;  %v11594_v13 = vand.u32 4294901760, %v11528_v40  ;;  %v11595_v35 = vand.u32 4294901760, %v11529_v60  ;;  %v11597_v15 = vand.u32 4294901760, %v11596_v33  ;;  %v11603_v3 = vld [vmem:[#allocation128_spill] sm:$0xff]  ;;  %v11649_v34 = vld [vmem:[#allocation75_spill] sm:$0xff] }
 0x39d   : > { %6943 = vmatmul.mubr.f32.gmra.mrb[4].mxu0 %v11548_v46  ;;  %7267 = vmatmul.mubr.f32.gmra.mrb[4].mxu1 %v11549_v1  ;;  %v11599_v55 = vand.u32 4294901760, %v11598_v42  ;;  %v11600_v38 = vand.u32 4294901760, %v11532_v41  ;;  %v11602_v50 = vand.u32 4294901760, %v11601_v58  ;;  %v11604_v46 = vand.u32 4294901760, %v11603_v3  ;;  %v11610_v41 = vld [vmem:[#allocation135_spill] sm:$0xff]  ;;  %v11660_v33 = vld [vmem:[#allocation101_spill] sm:$0xff] }
 0x39e   : > { %6945 = vmatprep.mubr.f32.mxu0 %v11550_v43  ;;  %7269 = vmatprep.mubr.f32.mxu1 %v11551_v49  ;;  %v11605_v40 = vand.u32 4294901760, %v11535_v4  ;;  %v11606_v60 = vand.u32 4294901760, %v10211_v16  ;;  %v11607_v1 = vand.u32 4294901760, %v10225_v11  ;;  %v11608_v43 = vld [vmem:[#allocation136_spill] sm:$0xff]  ;;  %v11615_v4 = vld [vmem:[#allocation11_spill] sm:$0xff]  ;;  %v11616_v16 = vld [vmem:[#allocation13_spill] sm:$0xff] }
 0x39f   : > { %v11609_v49 = vand.u32 4294901760, %v11608_v43  ;;  %v11617_v11 = vld [vmem:[#allocation15_spill] sm:$0xff]  ;;  %v11665_v58 = vld [vmem:[#allocation113_spill] sm:$0xff] }
 0x3a0   : > { %v11653_v2 = vld [vmem:[#allocation83_spill] sm:$0xff]  ;;  %v11667_v3 = vld [vmem:[#allocation117_spill] sm:$0xff] }
 0x3a1   : > { %6946 = vmatmul.mubr.f32.gmra.mrb[6].mxu0 %v11552_v30  ;;  %7270 = vmatmul.mubr.f32.gmra.mrb[6].mxu1 %v11553_v22  ;;  %v11611_v30 = vand.u32 4294901760, %v11610_v41  ;;  %v11612_v22 = vld [vmem:[#allocation5_spill] sm:$0xff]  ;;  %v11662_v42 = vld [vmem:[#allocation107_spill] sm:$0xff] }
 0x3a2   : > { %6948 = vmatprep.mubr.f32.mxu0 %v11554_v27  ;;  %7272 = vmatprep.mubr.f32.mxu1 %v11555_v37  ;;  %v11613_v27 = vld [vmem:[#allocation7_spill] sm:$0xff]  ;;  %v11614_v37 = vld [vmem:[#allocation9_spill] sm:$0xff] }
 0x3a3   : > { %v11672_v43 = vld [vmem:[#allocation127_spill] sm:$0xff] }
 0x3a4   : > { %v11674_v41 = vld [vmem:[#allocation131_spill] sm:$0xff] }
 0x3a5   : > { %6949 = vmatmul.mubr.f32.gmra.mrb[8].mxu0 %v11556_v39  ;;  %7273 = vmatmul.mubr.f32.gmra.mrb[8].mxu1 %v11557_v14  ;;  %v11618_v39 = vld [vmem:[#allocation3_spill] sm:$0xff]  ;;  %v11619_v14 = vld [vmem:[#allocation4_spill] sm:$0xff] }
 0x3a6   : > { %6951 = vmatprep.mubr.f32.mxu0 %v11558_v23  ;;  %7275 = vmatprep.mubr.f32.mxu1 %v11559_v25  ;;  %v11620_v23 = vld [vmem:[#allocation17_spill] sm:$0xff]  ;;  %v11621_v25 = vld [vmem:[#allocation19_spill] sm:$0xff] }
 0x3a9   : > { %6952 = vmatmul.mubr.f32.gmra.mrb[10].mxu0 %v11560_v62  ;;  %7276 = vmatmul.mubr.f32.gmra.mrb[10].mxu1 %v11561_v51  ;;  %v11622_v62 = vld [vmem:[#allocation21_spill] sm:$0xff]  ;;  %v11623_v51 = vld [vmem:[#allocation23_spill] sm:$0xff] }
 0x3aa   : > { %6954 = vmatprep.mubr.f32.mxu0 %v11562_v9  ;;  %7278 = vmatprep.mubr.f32.mxu1 %v11563_v61  ;;  %v11626_v9 = vld [vmem:[#allocation29_spill] sm:$0xff]  ;;  %v11627_v61 = vld [vmem:[#allocation31_spill] sm:$0xff] }
 0x3ad   : > { %6955 = vmatmul.mubr.f32.gmra.mrb[12].mxu0 %v11564_v0  ;;  %7279 = vmatmul.mubr.f32.gmra.mrb[12].mxu1 %v11565_v57  ;;  %v11628_v0 = vld [vmem:[#allocation33_spill] sm:$0xff]  ;;  %v11629_v57 = vld [vmem:[#allocation35_spill] sm:$0xff] }
 0x3ae   : > { %6957 = vmatprep.mubr.f32.mxu0 %v11566_v44  ;;  %7281 = vmatprep.mubr.f32.mxu1 %v11567_v17  ;;  %v11630_v44 = vld [vmem:[#allocation37_spill] sm:$0xff]  ;;  %v11631_v17 = vld [vmem:[#allocation39_spill] sm:$0xff] }
 0x3b1   : > { %6958 = vmatmul.mubr.f32.gmra.mrb[14].mxu0 %v11568_v53  ;;  %7282 = vmatmul.mubr.f32.gmra.mrb[14].mxu1 %v11569_v20  ;;  %v11632_v53 = vld [vmem:[#allocation41_spill] sm:$0xff]  ;;  %v11633_v20 = vld [vmem:[#allocation43_spill] sm:$0xff] }
 0x3b2   : > { %6960 = vmatprep.mubr.f32.mxu0 %v11570_v18  ;;  %7284 = vmatprep.mubr.f32.mxu1 %v11571_v32  ;;  %v11634_v18 = vld [vmem:[#allocation45_spill] sm:$0xff]  ;;  %v11635_v32 = vld [vmem:[#allocation47_spill] sm:$0xff] }
 0x3b5   : > { %6961 = vmatmul.mubr.f32.gmra.mrb[16].mxu0 %v11572_v5  ;;  %7285 = vmatmul.mubr.f32.gmra.mrb[16].mxu1 %v11573_v36  ;;  %v11636_v5 = vld [vmem:[#allocation49_spill] sm:$0xff]  ;;  %v11637_v36 = vld [vmem:[#allocation51_spill] sm:$0xff] }
 0x3b6   : > { %6963 = vmatprep.mubr.f32.mxu0 %v11574_v52  ;;  %7287 = vmatprep.mubr.f32.mxu1 %v11575_v28  ;;  %v11638_v52 = vld [vmem:[#allocation53_spill] sm:$0xff]  ;;  %v11639_v28 = vld [vmem:[#allocation55_spill] sm:$0xff] }
 0x3b9   : > { %6964 = vmatmul.mubr.f32.gmra.mrb[18].mxu0 %v11576_v24  ;;  %7288 = vmatmul.mubr.f32.gmra.mrb[18].mxu1 %v11577_v63  ;;  %v11640_v24 = vld [vmem:[#allocation57_spill] sm:$0xff]  ;;  %v11641_v63 = vld [vmem:[#allocation59_spill] sm:$0xff] }
 0x3ba   : > { %6966 = vmatprep.mubr.f32.mxu0 %v11578_v7  ;;  %7290 = vmatprep.mubr.f32.mxu1 %v11579_v31  ;;  %v11642_v7 = vld [vmem:[#allocation61_spill] sm:$0xff]  ;;  %v11643_v31 = vld [vmem:[#allocation63_spill] sm:$0xff] }
 0x3bd   : > { %6967 = vmatmul.mubr.f32.gmra.mrb[20].mxu0 %v11580_v45  ;;  %7291 = vmatmul.mubr.f32.gmra.mrb[20].mxu1 %v11581_v59  ;;  %v11644_v45 = vld [vmem:[#allocation65_spill] sm:$0xff]  ;;  %v11645_v59 = vld [vmem:[#allocation67_spill] sm:$0xff] }
 0x3be   : > { %6969 = vmatprep.mubr.f32.mxu0 %v11582_v8  ;;  %7293 = vmatprep.mubr.f32.mxu1 %v11584_v6  ;;  %v11646_v8 = vld [vmem:[#allocation69_spill] sm:$0xff] }
 0x3bf   : > { %v11648_v6 = vld [vmem:[#allocation73_spill] sm:$0xff] }
 0x3c1   : > { %6970 = vmatmul.mubr.f32.gmra.mrb[22].mxu0 %v11586_v21  ;;  %7294 = vmatmul.mubr.f32.gmra.mrb[22].mxu1 %v11588_v10  ;;  %v11650_v21 = vld [vmem:[#allocation77_spill] sm:$0xff] }
 0x3c2   : > { %6972 = vmatprep.mubr.f32.mxu0 %v11590_v12  ;;  %7296 = vmatprep.mubr.f32.mxu1 %v11591_v54  ;;  %v11652_v10 = vld [vmem:[#allocation81_spill] sm:$0xff]  ;;  %v11655_v54 = vld [vmem:[#allocation87_spill] sm:$0xff] }
 0x3c3   : > { %v11654_v12 = vld [vmem:[#allocation85_spill] sm:$0xff] }
 0x3c5   : > { %6973 = vmatmul.mubr.f32.gmra.mrb[24].mxu0 %v11592_v48  ;;  %7297 = vmatmul.mubr.f32.gmra.mrb[24].mxu1 %v11593_v47  ;;  %v11656_v48 = vld [vmem:[#allocation89_spill] sm:$0xff]  ;;  %v11657_v47 = vld [vmem:[#allocation91_spill] sm:$0xff] }
 0x3c6   : > { %6975 = vmatprep.mubr.f32.mxu0 %v11594_v13  ;;  %7299 = vmatprep.mubr.f32.mxu1 %v11595_v35  ;;  %v11658_v13 = vld [vmem:[#allocation97_spill] sm:$0xff]  ;;  %v11659_v35 = vld [vmem:[#allocation99_spill] sm:$0xff] }
 0x3c9   : > { %6976 = vmatmul.mubr.f32.gmra.mrb[26].mxu0 %v11597_v15  ;;  %7300 = vmatmul.mubr.f32.gmra.mrb[26].mxu1 %v11599_v55  ;;  %v11661_v15 = vld [vmem:[#allocation103_spill] sm:$0xff]  ;;  %v11663_v55 = vld [vmem:[#allocation109_spill] sm:$0xff] }
 0x3ca   : > { %6978 = vmatprep.mubr.f32.mxu0 %v11600_v38  ;;  %7302 = vmatprep.mubr.f32.mxu1 %v11602_v50  ;;  %v11664_v38 = vld [vmem:[#allocation111_spill] sm:$0xff] }
 0x3cb   : > { %v11666_v50 = vld [vmem:[#allocation115_spill] sm:$0xff] }
 0x3cd   : > { %6979 = vmatmul.mubr.f32.gmra.mrb[28].mxu0 %v11604_v46  ;;  %7303 = vmatmul.mubr.f32.gmra.mrb[28].mxu1 %v11605_v40  ;;  %v11668_v46 = vld [vmem:[#allocation119_spill] sm:$0xff]  ;;  %v11669_v40 = vld [vmem:[#allocation121_spill] sm:$0xff] }
 0x3ce   : > { %6981 = vmatprep.mubr.f32.mxu0 %v11606_v60  ;;  %7305 = vmatprep.mubr.f32.mxu1 %v11607_v1  ;;  %v11670_v60 = vld [vmem:[#allocation123_spill] sm:$0xff]  ;;  %v11671_v1 = vld [vmem:[#allocation125_spill] sm:$0xff] }
 0x3d1   : > { %6982 = vmatmul.mubr.f32.gmra.mrb[30].mxu0 %v11609_v49  ;;  %7306 = vmatmul.mubr.f32.gmra.mrb[30].mxu1 %v11611_v30  ;;  %v11673_v49 = vld [vmem:[#allocation129_spill] sm:$0xff]  ;;  %v11675_v30 = vld [vmem:[#allocation132_spill] sm:$0xff] }
 0x3d2   : > { %6990 = vmatprep.mubr.f32.mxu0 %v11612_v22  ;;  %7314 = vmatprep.mubr.f32.mxu1 %v11613_v27 }
 0x3d5   : > { %6991 = vmatmul.mubr.f32.vlgmr.msra.gmra.mrb[0].mxu0 %v11614_v37  ;;  %7315 = vmatmul.mubr.f32.vlgmr.msra.gmra.mrb[0].mxu1 %v11615_v4 }
 0x3d6   : > { %7439 = vmatpush3.bf16.msra.mxu0 %v8024_v19  ;;  %7463 = vmatpush3.bf16.msra.mxu1 %v8051_v26  ;;  %v11624_v19 = vld [vmem:[#allocation25_spill] sm:$0xff]  ;;  %v11625_v26 = vld [vmem:[#allocation27_spill] sm:$0xff] }
 0x3d7   : > { %6993 = vmatprep.mubr.f32.mxu0 %v11616_v16  ;;  %7317 = vmatprep.mubr.f32.mxu1 %v11617_v11 }
 0x3d8   : > { %7042 = vmatprep.subr.mxu0 %v11618_v39  ;;  %7366 = vmatprep.subr.mxu1 %v11619_v14 }
 0x3d9   : > { %6994 = vmatmul.mubr.f32.gmra.mrb[2].mxu0 %v11620_v23  ;;  %7318 = vmatmul.mubr.f32.gmra.mrb[2].mxu1 %v11621_v25 }
 0x3da   : > { %6996 = vmatprep.mubr.f32.mxu0 %v11622_v62  ;;  %7320 = vmatprep.mubr.f32.mxu1 %v11623_v51 }
 0x3db   : > { %7043 = vmatpush3.msra.mxu0 %v11618_v39  ;;  %7367 = vmatpush3.msra.mxu1 %v11619_v14  ;;  %v11676_v39 = vld [vmem:[#allocation134_spill] sm:$0xff]  ;;  %v11677_v14 = vld [vmem:[#allocation133_spill] sm:$0xff] }
 0x3dd   : > { %6997 = vmatmul.mubr.f32.gmra.mrb[4].mxu0 %v11624_v19  ;;  %7321 = vmatmul.mubr.f32.gmra.mrb[4].mxu1 %v11625_v26 }
 0x3de   : > { %6999 = vmatprep.mubr.f32.mxu0 %v11626_v9  ;;  %7323 = vmatprep.mubr.f32.mxu1 %v11627_v61 }
 0x3e1   : > { %7000 = vmatmul.mubr.f32.gmra.mrb[6].mxu0 %v11628_v0  ;;  %7324 = vmatmul.mubr.f32.gmra.mrb[6].mxu1 %v11629_v57 }
 0x3e2   : > { %7002 = vmatprep.mubr.f32.mxu0 %v11630_v44  ;;  %7326 = vmatprep.mubr.f32.mxu1 %v11631_v17 }
 0x3e5   : > { %7003 = vmatmul.mubr.f32.gmra.mrb[8].mxu0 %v11632_v53  ;;  %7327 = vmatmul.mubr.f32.gmra.mrb[8].mxu1 %v11633_v20 }
 0x3e6   : > { %7005 = vmatprep.mubr.f32.mxu0 %v11634_v18  ;;  %7329 = vmatprep.mubr.f32.mxu1 %v11635_v32 }
 0x3e9   : > { %7006 = vmatmul.mubr.f32.gmra.mrb[10].mxu0 %v11636_v5  ;;  %7330 = vmatmul.mubr.f32.gmra.mrb[10].mxu1 %v11637_v36 }
 0x3ea   : > { %7008 = vmatprep.mubr.f32.mxu0 %v11638_v52  ;;  %7332 = vmatprep.mubr.f32.mxu1 %v11639_v28 }
 0x3ed   : > { %7009 = vmatmul.mubr.f32.gmra.mrb[12].mxu0 %v11640_v24  ;;  %7333 = vmatmul.mubr.f32.gmra.mrb[12].mxu1 %v11641_v63 }
 0x3ee   : > { %7011 = vmatprep.mubr.f32.mxu0 %v11642_v7  ;;  %7335 = vmatprep.mubr.f32.mxu1 %v11643_v31 }
 0x3f1   : > { %7012 = vmatmul.mubr.f32.gmra.mrb[14].mxu0 %v11644_v45  ;;  %7336 = vmatmul.mubr.f32.gmra.mrb[14].mxu1 %v11645_v59 }
 0x3f2   : > { %7014 = vmatprep.mubr.f32.mxu0 %v11646_v8  ;;  %7338 = vmatprep.mubr.f32.mxu1 %v11647_v29 }
 0x3f5   : > { %7015 = vmatmul.mubr.f32.gmra.mrb[16].mxu0 %v11648_v6  ;;  %7339 = vmatmul.mubr.f32.gmra.mrb[16].mxu1 %v11649_v34 }
 0x3f6   : > { %7017 = vmatprep.mubr.f32.mxu0 %v11650_v21  ;;  %7341 = vmatprep.mubr.f32.mxu1 %v11651_v56 }
 0x3f9   : > { %7018 = vmatmul.mubr.f32.gmra.mrb[18].mxu0 %v11652_v10  ;;  %7342 = vmatmul.mubr.f32.gmra.mrb[18].mxu1 %v11653_v2 }
 0x3fa   : > { %7020 = vmatprep.mubr.f32.mxu0 %v11654_v12  ;;  %7344 = vmatprep.mubr.f32.mxu1 %v11655_v54 }
 0x3fd   : > { %7021 = vmatmul.mubr.f32.gmra.mrb[20].mxu0 %v11656_v48  ;;  %7345 = vmatmul.mubr.f32.gmra.mrb[20].mxu1 %v11657_v47 }
 0x3fe   : > { %7023 = vmatprep.mubr.f32.mxu0 %v11658_v13  ;;  %7347 = vmatprep.mubr.f32.mxu1 %v11659_v35 }
 0x401   : > { %7024 = vmatmul.mubr.f32.gmra.mrb[22].mxu0 %v11660_v33  ;;  %7348 = vmatmul.mubr.f32.gmra.mrb[22].mxu1 %v11661_v15 }
 0x402   : > { %7026 = vmatprep.mubr.f32.mxu0 %v11662_v42  ;;  %7350 = vmatprep.mubr.f32.mxu1 %v11663_v55 }
 0x405   : > { %7027 = vmatmul.mubr.f32.gmra.mrb[24].mxu0 %v11664_v38  ;;  %7351 = vmatmul.mubr.f32.gmra.mrb[24].mxu1 %v11665_v58 }
 0x406   : > { %7029 = vmatprep.mubr.f32.mxu0 %v11666_v50  ;;  %7353 = vmatprep.mubr.f32.mxu1 %v11667_v3 }
 0x409   : > { %7030 = vmatmul.mubr.f32.gmra.mrb[26].mxu0 %v11668_v46  ;;  %7354 = vmatmul.mubr.f32.gmra.mrb[26].mxu1 %v11669_v40 }
 0x40a   : > { %7032 = vmatprep.mubr.f32.mxu0 %v11670_v60  ;;  %7356 = vmatprep.mubr.f32.mxu1 %v11671_v1 }
 0x40d   : > { %7033 = vmatmul.mubr.f32.gmra.mrb[28].mxu0 %v11672_v43  ;;  %7357 = vmatmul.mubr.f32.gmra.mrb[28].mxu1 %v11673_v49 }
 0x40e   : > { %7035 = vmatprep.mubr.f32.mxu0 %v11674_v41  ;;  %7359 = vmatprep.mubr.f32.mxu1 %v11675_v30 }
 0x411   : > { %7036 = vmatmul.mubr.f32.gmra.mrb[30].mxu0 %v11676_v39  ;;  %7360 = vmatmul.mubr.f32.gmra.mrb[30].mxu1 %v11677_v14 }
 0x412   : > { %7044 = vmatprep.mubr.f32.mxu0 %v11612_v22  ;;  %7368 = vmatprep.mubr.f32.mxu1 %v11613_v27  ;;  %v10685_v22 = vld [vmem:[%s10960_s2] ss:$0 sm:$0xff] }
 0x415   : > { %7045 = vmatmul.mubr.f32.vlgmr.msra.gmra.mrb[0].mxu0 %v11614_v37  ;;  %7369 = vmatmul.mubr.f32.vlgmr.msra.gmra.mrb[0].mxu1 %v11615_v4 }
 0x416   : > { %7047 = vmatprep.mubr.f32.mxu0 %v11616_v16  ;;  %7371 = vmatprep.mubr.f32.mxu1 %v11617_v11 }
 0x419   : > { %7048 = vmatmul.mubr.f32.gmra.mrb[2].mxu0 %v11620_v23  ;;  %7372 = vmatmul.mubr.f32.gmra.mrb[2].mxu1 %v11621_v25 }
 0x41a   : > { %7050 = vmatprep.mubr.f32.mxu0 %v11622_v62  ;;  %7374 = vmatprep.mubr.f32.mxu1 %v11623_v51 }
 0x41d   : > { %7051 = vmatmul.mubr.f32.gmra.mrb[4].mxu0 %v11624_v19  ;;  %7375 = vmatmul.mubr.f32.gmra.mrb[4].mxu1 %v11625_v26 }
 0x41e   : > { %7053 = vmatprep.mubr.f32.mxu0 %v11626_v9  ;;  %7377 = vmatprep.mubr.f32.mxu1 %v11627_v61 }
 0x421   : > { %7054 = vmatmul.mubr.f32.gmra.mrb[6].mxu0 %v11628_v0  ;;  %7378 = vmatmul.mubr.f32.gmra.mrb[6].mxu1 %v11629_v57 }
 0x422   : > { %7056 = vmatprep.mubr.f32.mxu0 %v11630_v44  ;;  %7380 = vmatprep.mubr.f32.mxu1 %v11631_v17 }
 0x425   : > { %7057 = vmatmul.mubr.f32.gmra.mrb[8].mxu0 %v11632_v53  ;;  %7381 = vmatmul.mubr.f32.gmra.mrb[8].mxu1 %v11633_v20 }
 0x426   : > { %7059 = vmatprep.mubr.f32.mxu0 %v11634_v18  ;;  %7383 = vmatprep.mubr.f32.mxu1 %v11635_v32 }
 0x429   : > { %7060 = vmatmul.mubr.f32.gmra.mrb[10].mxu0 %v11636_v5  ;;  %7384 = vmatmul.mubr.f32.gmra.mrb[10].mxu1 %v11637_v36 }
 0x42a   : > { %7062 = vmatprep.mubr.f32.mxu0 %v11638_v52  ;;  %7386 = vmatprep.mubr.f32.mxu1 %v11639_v28 }
 0x42d   : > { %7063 = vmatmul.mubr.f32.gmra.mrb[12].mxu0 %v11640_v24  ;;  %7387 = vmatmul.mubr.f32.gmra.mrb[12].mxu1 %v11641_v63 }
 0x42e   : > { %7065 = vmatprep.mubr.f32.mxu0 %v11642_v7  ;;  %7389 = vmatprep.mubr.f32.mxu1 %v11643_v31 }
 0x431   : > { %7066 = vmatmul.mubr.f32.gmra.mrb[14].mxu0 %v11644_v45  ;;  %7390 = vmatmul.mubr.f32.gmra.mrb[14].mxu1 %v11645_v59 }
 0x432   : > { %7068 = vmatprep.mubr.f32.mxu0 %v11646_v8  ;;  %7392 = vmatprep.mubr.f32.mxu1 %v11647_v29 }
 0x435   : > { %7069 = vmatmul.mubr.f32.gmra.mrb[16].mxu0 %v11648_v6  ;;  %7393 = vmatmul.mubr.f32.gmra.mrb[16].mxu1 %v11649_v34 }
 0x436   : > { %7071 = vmatprep.mubr.f32.mxu0 %v11650_v21  ;;  %7395 = vmatprep.mubr.f32.mxu1 %v11651_v56 }
 0x439   : > { %7072 = vmatmul.mubr.f32.gmra.mrb[18].mxu0 %v11652_v10  ;;  %7396 = vmatmul.mubr.f32.gmra.mrb[18].mxu1 %v11653_v2 }
 0x43a   : > { %7074 = vmatprep.mubr.f32.mxu0 %v11654_v12  ;;  %7398 = vmatprep.mubr.f32.mxu1 %v11655_v54 }
 0x43d   : > { %7075 = vmatmul.mubr.f32.gmra.mrb[20].mxu0 %v11656_v48  ;;  %7399 = vmatmul.mubr.f32.gmra.mrb[20].mxu1 %v11657_v47 }
 0x43e   : > { %7077 = vmatprep.mubr.f32.mxu0 %v11658_v13  ;;  %7401 = vmatprep.mubr.f32.mxu1 %v11659_v35 }
 0x441   : > { %7078 = vmatmul.mubr.f32.gmra.mrb[22].mxu0 %v11660_v33  ;;  %7402 = vmatmul.mubr.f32.gmra.mrb[22].mxu1 %v11661_v15 }
 0x442   : > { %7080 = vmatprep.mubr.f32.mxu0 %v11662_v42  ;;  %7404 = vmatprep.mubr.f32.mxu1 %v11663_v55 }
 0x445   : > { %7081 = vmatmul.mubr.f32.gmra.mrb[24].mxu0 %v11664_v38  ;;  %7405 = vmatmul.mubr.f32.gmra.mrb[24].mxu1 %v11665_v58 }
 0x446   : > { %7083 = vmatprep.mubr.f32.mxu0 %v11666_v50  ;;  %7407 = vmatprep.mubr.f32.mxu1 %v11667_v3 }
 0x449   : > { %7084 = vmatmul.mubr.f32.gmra.mrb[26].mxu0 %v11668_v46  ;;  %7408 = vmatmul.mubr.f32.gmra.mrb[26].mxu1 %v11669_v40 }
 0x44a   : > { %7086 = vmatprep.mubr.f32.mxu0 %v11670_v60  ;;  %7410 = vmatprep.mubr.f32.mxu1 %v11671_v1 }
 0x44d   : > { %7087 = vmatmul.mubr.f32.gmra.mrb[28].mxu0 %v11672_v43  ;;  %7411 = vmatmul.mubr.f32.gmra.mrb[28].mxu1 %v11673_v49 }
 0x44e   : > { %7089 = vmatprep.mubr.f32.mxu0 %v11674_v41  ;;  %7413 = vmatprep.mubr.f32.mxu1 %v11675_v30 }
 0x451   : > { %7090 = vmatmul.mubr.f32.gmra.mrb[30].mxu0 %v11676_v39  ;;  %7414 = vmatmul.mubr.f32.gmra.mrb[30].mxu1 %v11677_v14 }
 0x4e8   : > { %v7046_v27 = vpop.f32.mrb[0].mxu0  ;;  %v7370_v37 = vpop.f32.mrb[0].mxu1 }
 0x4e9   : > { %v7464_v4 = vadd.f32 %v7046_v27, %v10685_v22  ;;  %v7496_v16 = vadd.f32 %v7370_v37, %v10685_v22  ;;  %v3020_v11 = vpop.f32.mrb[1].mxu0  ;;  %v5693_v23 = vpop.f32.mrb[1].mxu1 }
 0x4ea   : > { %v7465_v25 = vadd.f32 %v10685_v22, %v3020_v11  ;;  %v7497_v62 = vadd.f32 %v10685_v22, %v5693_v23 }
 0x4eb   : > { %3211 = vst.msk [vmem:[#allocation2 + $0x8] sm:$0xff] %vm1167_vm1, %v7464_v4  ;;  %5885 = vst.msk [vmem:[#allocation2 + $0x18] sm:$0xff] %vm1167_vm1, %v7496_v16 }
 0x4ec   : > { %3210 = vst.msk [vmem:[#allocation2] sm:$0xff] %vm1167_vm1, %v7465_v25  ;;  %5884 = vst.msk [vmem:[#allocation2 + $0x10] sm:$0xff] %vm1167_vm1, %v7497_v62  ;;  %v7049_v51 = vpop.f32.mrb[2].mxu0  ;;  %v7373_v19 = vpop.f32.mrb[2].mxu1 }
 0x4ed   : > { %v7466_v26 = vadd.f32 %v7049_v51, %v10685_v22  ;;  %v7498_v9 = vadd.f32 %v7373_v19, %v10685_v22  ;;  %v3032_v61 = vpop.f32.mrb[3].mxu0  ;;  %v5705_v0 = vpop.f32.mrb[3].mxu1 }
 0x4ee   : > { %v7467_v57 = vadd.f32 %v10685_v22, %v3032_v61  ;;  %v7499_v44 = vadd.f32 %v10685_v22, %v5705_v0 }
 0x4ef   : > { %3213 = vst.msk [vmem:[#allocation2 + $0x28] sm:$0xff] %vm1167_vm1, %v7466_v26  ;;  %5887 = vst.msk [vmem:[#allocation2 + $0x38] sm:$0xff] %vm1167_vm1, %v7498_v9 }
 0x4f0   : > { %3212 = vst.msk [vmem:[#allocation2 + $0x20] sm:$0xff] %vm1167_vm1, %v7467_v57  ;;  %5886 = vst.msk [vmem:[#allocation2 + $0x30] sm:$0xff] %vm1167_vm1, %v7499_v44  ;;  %v7052_v17 = vpop.f32.mrb[4].mxu0  ;;  %v7376_v53 = vpop.f32.mrb[4].mxu1 }
 0x4f1   : > { %v7468_v20 = vadd.f32 %v7052_v17, %v10685_v22  ;;  %v7500_v18 = vadd.f32 %v7376_v53, %v10685_v22  ;;  %v3044_v32 = vpop.f32.mrb[5].mxu0  ;;  %v5717_v5 = vpop.f32.mrb[5].mxu1 }
 0x4f2   : > { %v5917_v36 = vld [vmem:[#allocation2 + $0x8] sm:$0xff]  ;;  %v5919_v52 = vld [vmem:[#allocation2 + $0x18] sm:$0xff]  ;;  %v7469_v28 = vadd.f32 %v10685_v22, %v3044_v32  ;;  %v7501_v24 = vadd.f32 %v10685_v22, %v5717_v5 }
 0x4f3   : > { %5981 = vst.msk [vmem:[%s10705_s4 + $0x8] sm:$0xff] %vm1167_vm1, %v5917_v36  ;;  %5983 = vst.msk [vmem:[%s10705_s4 + $0x18] sm:$0xff] %vm1167_vm1, %v5919_v52  ;;  %v5916_v63 = vld [vmem:[#allocation2] sm:$0xff]  ;;  %v5918_v7 = vld [vmem:[#allocation2 + $0x10] sm:$0xff] }
 0x4f4   : > { %3215 = vst.msk [vmem:[#allocation2 + $0x48] sm:$0xff] %vm1167_vm1, %v7468_v20  ;;  %5889 = vst.msk [vmem:[#allocation2 + $0x58] sm:$0xff] %vm1167_vm1, %v7500_v18  ;;  %v7055_v31 = vpop.f32.mrb[6].mxu0  ;;  %v7379_v45 = vpop.f32.mrb[6].mxu1 }
 0x4f5   : > { %5980 = vst.msk [vmem:[%s10705_s4] sm:$0xff] %vm1167_vm1, %v5916_v63  ;;  %5982 = vst.msk [vmem:[%s10705_s4 + $0x10] sm:$0xff] %vm1167_vm1, %v5918_v7  ;;  %v7470_v59 = vadd.f32 %v7055_v31, %v10685_v22  ;;  %v7502_v8 = vadd.f32 %v7379_v45, %v10685_v22  ;;  %v3056_v29 = vpop.f32.mrb[7].mxu0  ;;  %v5729_v6 = vpop.f32.mrb[7].mxu1 }
 0x4f6   : > { %3214 = vst.msk [vmem:[#allocation2 + $0x40] sm:$0xff] %vm1167_vm1, %v7469_v28  ;;  %5888 = vst.msk [vmem:[#allocation2 + $0x50] sm:$0xff] %vm1167_vm1, %v7501_v24  ;;  %v5921_v34 = vld [vmem:[#allocation2 + $0x28] sm:$0xff]  ;;  %v5923_v21 = vld [vmem:[#allocation2 + $0x38] sm:$0xff]  ;;  %v7471_v56 = vadd.f32 %v10685_v22, %v3056_v29  ;;  %v7503_v10 = vadd.f32 %v10685_v22, %v5729_v6 }
 0x4f7   : > { %5985 = vst.msk [vmem:[%s10705_s4 + $0x28] sm:$0xff] %vm1167_vm1, %v5921_v34  ;;  %5987 = vst.msk [vmem:[%s10705_s4 + $0x38] sm:$0xff] %vm1167_vm1, %v5923_v21  ;;  %v5920_v2 = vld [vmem:[#allocation2 + $0x20] sm:$0xff]  ;;  %v5922_v12 = vld [vmem:[#allocation2 + $0x30] sm:$0xff] }
 0x4f8   : > { %3217 = vst.msk [vmem:[#allocation2 + $0x68] sm:$0xff] %vm1167_vm1, %v7470_v59  ;;  %5891 = vst.msk [vmem:[#allocation2 + $0x78] sm:$0xff] %vm1167_vm1, %v7502_v8  ;;  %v7058_v54 = vpop.f32.mrb[8].mxu0  ;;  %v7382_v48 = vpop.f32.mrb[8].mxu1 }
 0x4f9   : > { %5984 = vst.msk [vmem:[%s10705_s4 + $0x20] sm:$0xff] %vm1167_vm1, %v5920_v2  ;;  %5986 = vst.msk [vmem:[%s10705_s4 + $0x30] sm:$0xff] %vm1167_vm1, %v5922_v12  ;;  %v7472_v47 = vadd.f32 %v7058_v54, %v10685_v22  ;;  %v7504_v13 = vadd.f32 %v7382_v48, %v10685_v22  ;;  %v3068_v35 = vpop.f32.mrb[9].mxu0  ;;  %v5741_v33 = vpop.f32.mrb[9].mxu1 }
 0x4fa   : > { %3216 = vst.msk [vmem:[#allocation2 + $0x60] sm:$0xff] %vm1167_vm1, %v7471_v56  ;;  %5890 = vst.msk [vmem:[#allocation2 + $0x70] sm:$0xff] %vm1167_vm1, %v7503_v10  ;;  %v7473_v55 = vadd.f32 %v10685_v22, %v3068_v35  ;;  %v7505_v38 = vadd.f32 %v10685_v22, %v5741_v33 }
 0x4fb   : > { %v5925_v15 = vld [vmem:[#allocation2 + $0x48] sm:$0xff]  ;;  %v5927_v42 = vld [vmem:[#allocation2 + $0x58] sm:$0xff]  ;;  %3219 = vst.msk [vmem:[#allocation2 + $0x88] sm:$0xff] %vm1167_vm1, %v7472_v47  ;;  %5893 = vst.msk [vmem:[#allocation2 + $0x98] sm:$0xff] %vm1167_vm1, %v7504_v13 }
 0x4fc   : > { %5989 = vst.msk [vmem:[%s10705_s4 + $0x48] sm:$0xff] %vm1167_vm1, %v5925_v15  ;;  %5991 = vst.msk [vmem:[%s10705_s4 + $0x58] sm:$0xff] %vm1167_vm1, %v5927_v42  ;;  %v7061_v3 = vpop.f32.mrb[10].mxu0  ;;  %v7385_v46 = vpop.f32.mrb[10].mxu1 }
 0x4fd   : > { %v5924_v58 = vld [vmem:[#allocation2 + $0x40] sm:$0xff]  ;;  %v5926_v50 = vld [vmem:[#allocation2 + $0x50] sm:$0xff]  ;;  %3218 = vst.msk [vmem:[#allocation2 + $0x80] sm:$0xff] %vm1167_vm1, %v7473_v55  ;;  %5892 = vst.msk [vmem:[#allocation2 + $0x90] sm:$0xff] %vm1167_vm1, %v7505_v38  ;;  %v7474_v40 = vadd.f32 %v7061_v3, %v10685_v22  ;;  %v7506_v60 = vadd.f32 %v7385_v46, %v10685_v22  ;;  %v3080_v1 = vpop.f32.mrb[11].mxu0  ;;  %v5753_v43 = vpop.f32.mrb[11].mxu1 }
 0x4fe   : > { %5988 = vst.msk [vmem:[%s10705_s4 + $0x40] sm:$0xff] %vm1167_vm1, %v5924_v58  ;;  %5990 = vst.msk [vmem:[%s10705_s4 + $0x50] sm:$0xff] %vm1167_vm1, %v5926_v50  ;;  %v7475_v30 = vadd.f32 %v10685_v22, %v3080_v1  ;;  %v7507_v39 = vadd.f32 %v10685_v22, %v5753_v43 }
 0x4ff   : > { %v5929_v49 = vld [vmem:[#allocation2 + $0x68] sm:$0xff]  ;;  %v5931_v41 = vld [vmem:[#allocation2 + $0x78] sm:$0xff]  ;;  %3221 = vst.msk [vmem:[#allocation2 + $0xa8] sm:$0xff] %vm1167_vm1, %v7474_v40  ;;  %5895 = vst.msk [vmem:[#allocation2 + $0xb8] sm:$0xff] %vm1167_vm1, %v7506_v60 }
 0x500   : > { %5993 = vst.msk [vmem:[%s10705_s4 + $0x68] sm:$0xff] %vm1167_vm1, %v5929_v49  ;;  %5995 = vst.msk [vmem:[%s10705_s4 + $0x78] sm:$0xff] %vm1167_vm1, %v5931_v41  ;;  %v7064_v37 = vpop.f32.mrb[12].mxu0  ;;  %v7388_v4 = vpop.f32.mrb[12].mxu1 }
 0x501   : > { %v5928_v14 = vld [vmem:[#allocation2 + $0x60] sm:$0xff]  ;;  %v5930_v27 = vld [vmem:[#allocation2 + $0x70] sm:$0xff]  ;;  %3220 = vst.msk [vmem:[#allocation2 + $0xa0] sm:$0xff] %vm1167_vm1, %v7475_v30  ;;  %5894 = vst.msk [vmem:[#allocation2 + $0xb0] sm:$0xff] %vm1167_vm1, %v7507_v39  ;;  %v7476_v16 = vadd.f32 %v7064_v37, %v10685_v22  ;;  %v7508_v11 = vadd.f32 %v7388_v4, %v10685_v22  ;;  %v3092_v23 = vpop.f32.mrb[13].mxu0  ;;  %v5765_v25 = vpop.f32.mrb[13].mxu1 }
 0x502   : > { %5992 = vst.msk [vmem:[%s10705_s4 + $0x60] sm:$0xff] %vm1167_vm1, %v5928_v14  ;;  %5994 = vst.msk [vmem:[%s10705_s4 + $0x70] sm:$0xff] %vm1167_vm1, %v5930_v27  ;;  %v5933_v62 = vld [vmem:[#allocation2 + $0x88] sm:$0xff]  ;;  %v5935_v51 = vld [vmem:[#allocation2 + $0x98] sm:$0xff]  ;;  %v7477_v19 = vadd.f32 %v10685_v22, %v3092_v23  ;;  %v7509_v26 = vadd.f32 %v10685_v22, %v5765_v25 }
 0x503   : > { %5997 = vst.msk [vmem:[%s10705_s4 + $0x88] sm:$0xff] %vm1167_vm1, %v5933_v62  ;;  %5999 = vst.msk [vmem:[%s10705_s4 + $0x98] sm:$0xff] %vm1167_vm1, %v5935_v51 }
 0x504   : > { %v5932_v9 = vld [vmem:[#allocation2 + $0x80] sm:$0xff]  ;;  %v5934_v61 = vld [vmem:[#allocation2 + $0x90] sm:$0xff]  ;;  %3223 = vst.msk [vmem:[#allocation2 + $0xc8] sm:$0xff] %vm1167_vm1, %v7476_v16  ;;  %5897 = vst.msk [vmem:[#allocation2 + $0xd8] sm:$0xff] %vm1167_vm1, %v7508_v11  ;;  %v7067_v0 = vpop.f32.mrb[14].mxu0  ;;  %v7391_v57 = vpop.f32.mrb[14].mxu1 }
 0x505   : > { %5996 = vst.msk [vmem:[%s10705_s4 + $0x80] sm:$0xff] %vm1167_vm1, %v5932_v9  ;;  %5998 = vst.msk [vmem:[%s10705_s4 + $0x90] sm:$0xff] %vm1167_vm1, %v5934_v61  ;;  %v7478_v44 = vadd.f32 %v7067_v0, %v10685_v22  ;;  %v7510_v17 = vadd.f32 %v7391_v57, %v10685_v22  ;;  %v3104_v53 = vpop.f32.mrb[15].mxu0  ;;  %v5777_v20 = vpop.f32.mrb[15].mxu1 }
 0x506   : > { %3222 = vst.msk [vmem:[#allocation2 + $0xc0] sm:$0xff] %vm1167_vm1, %v7477_v19  ;;  %5896 = vst.msk [vmem:[#allocation2 + $0xd0] sm:$0xff] %vm1167_vm1, %v7509_v26  ;;  %v5937_v18 = vld [vmem:[#allocation2 + $0xa8] sm:$0xff]  ;;  %v5939_v32 = vld [vmem:[#allocation2 + $0xb8] sm:$0xff]  ;;  %v7479_v5 = vadd.f32 %v10685_v22, %v3104_v53  ;;  %v7511_v36 = vadd.f32 %v10685_v22, %v5777_v20 }
 0x507   : > { %6001 = vst.msk [vmem:[%s10705_s4 + $0xa8] sm:$0xff] %vm1167_vm1, %v5937_v18  ;;  %6003 = vst.msk [vmem:[%s10705_s4 + $0xb8] sm:$0xff] %vm1167_vm1, %v5939_v32 }
 0x508   : > { %v5936_v52 = vld [vmem:[#allocation2 + $0xa0] sm:$0xff]  ;;  %v5938_v28 = vld [vmem:[#allocation2 + $0xb0] sm:$0xff]  ;;  %3225 = vst.msk [vmem:[#allocation2 + $0xe8] sm:$0xff] %vm1167_vm1, %v7478_v44  ;;  %5899 = vst.msk [vmem:[#allocation2 + $0xf8] sm:$0xff] %vm1167_vm1, %v7510_v17  ;;  %v7070_v24 = vpop.f32.mrb[16].mxu0  ;;  %v7394_v63 = vpop.f32.mrb[16].mxu1 }
 0x509   : > { %6000 = vst.msk [vmem:[%s10705_s4 + $0xa0] sm:$0xff] %vm1167_vm1, %v5936_v52  ;;  %6002 = vst.msk [vmem:[%s10705_s4 + $0xb0] sm:$0xff] %vm1167_vm1, %v5938_v28  ;;  %v7480_v7 = vadd.f32 %v7070_v24, %v10685_v22  ;;  %v7512_v31 = vadd.f32 %v7394_v63, %v10685_v22  ;;  %v3116_v45 = vpop.f32.mrb[17].mxu0  ;;  %v5789_v59 = vpop.f32.mrb[17].mxu1 }
 0x50a   : > { %3224 = vst.msk [vmem:[#allocation2 + $0xe0] sm:$0xff] %vm1167_vm1, %v7479_v5  ;;  %5898 = vst.msk [vmem:[#allocation2 + $0xf0] sm:$0xff] %vm1167_vm1, %v7511_v36  ;;  %v7481_v6 = vadd.f32 %v10685_v22, %v3116_v45  ;;  %v7513_v34 = vadd.f32 %v10685_v22, %v5789_v59 }
 0x50b   : > { %v5941_v8 = vld [vmem:[#allocation2 + $0xc8] sm:$0xff]  ;;  %v5943_v29 = vld [vmem:[#allocation2 + $0xd8] sm:$0xff]  ;;  %3227 = vst.msk [vmem:[#allocation2 + $0x108] sm:$0xff] %vm1167_vm1, %v7480_v7  ;;  %5901 = vst.msk [vmem:[#allocation2 + $0x118] sm:$0xff] %vm1167_vm1, %v7512_v31 }
 0x50c   : > { %6005 = vst.msk [vmem:[%s10705_s4 + $0xc8] sm:$0xff] %vm1167_vm1, %v5941_v8  ;;  %6007 = vst.msk [vmem:[%s10705_s4 + $0xd8] sm:$0xff] %vm1167_vm1, %v5943_v29  ;;  %v7073_v10 = vpop.f32.mrb[18].mxu0  ;;  %v7397_v2 = vpop.f32.mrb[18].mxu1 }
 0x50d   : > { %v5940_v21 = vld [vmem:[#allocation2 + $0xc0] sm:$0xff]  ;;  %v5942_v56 = vld [vmem:[#allocation2 + $0xd0] sm:$0xff]  ;;  %3226 = vst.msk [vmem:[#allocation2 + $0x100] sm:$0xff] %vm1167_vm1, %v7481_v6  ;;  %5900 = vst.msk [vmem:[#allocation2 + $0x110] sm:$0xff] %vm1167_vm1, %v7513_v34  ;;  %v7482_v12 = vadd.f32 %v7073_v10, %v10685_v22  ;;  %v7514_v54 = vadd.f32 %v7397_v2, %v10685_v22  ;;  %v3128_v48 = vpop.f32.mrb[19].mxu0  ;;  %v5801_v47 = vpop.f32.mrb[19].mxu1 }
 0x50e   : > { %6004 = vst.msk [vmem:[%s10705_s4 + $0xc0] sm:$0xff] %vm1167_vm1, %v5940_v21  ;;  %6006 = vst.msk [vmem:[%s10705_s4 + $0xd0] sm:$0xff] %vm1167_vm1, %v5942_v56  ;;  %v7483_v33 = vadd.f32 %v10685_v22, %v3128_v48  ;;  %v7515_v15 = vadd.f32 %v10685_v22, %v5801_v47 }
 0x50f   : > { %v5945_v13 = vld [vmem:[#allocation2 + $0xe8] sm:$0xff]  ;;  %v5947_v35 = vld [vmem:[#allocation2 + $0xf8] sm:$0xff]  ;;  %3229 = vst.msk [vmem:[#allocation2 + $0x128] sm:$0xff] %vm1167_vm1, %v7482_v12  ;;  %5903 = vst.msk [vmem:[#allocation2 + $0x138] sm:$0xff] %vm1167_vm1, %v7514_v54 }
 0x510   : > { %6009 = vst.msk [vmem:[%s10705_s4 + $0xe8] sm:$0xff] %vm1167_vm1, %v5945_v13  ;;  %6011 = vst.msk [vmem:[%s10705_s4 + $0xf8] sm:$0xff] %vm1167_vm1, %v5947_v35  ;;  %v7076_v38 = vpop.f32.mrb[20].mxu0  ;;  %v7400_v58 = vpop.f32.mrb[20].mxu1 }
 0x511   : > { %v5944_v42 = vld [vmem:[#allocation2 + $0xe0] sm:$0xff]  ;;  %v5946_v55 = vld [vmem:[#allocation2 + $0xf0] sm:$0xff]  ;;  %3228 = vst.msk [vmem:[#allocation2 + $0x120] sm:$0xff] %vm1167_vm1, %v7483_v33  ;;  %5902 = vst.msk [vmem:[#allocation2 + $0x130] sm:$0xff] %vm1167_vm1, %v7515_v15  ;;  %v7484_v50 = vadd.f32 %v7076_v38, %v10685_v22  ;;  %v7516_v3 = vadd.f32 %v7400_v58, %v10685_v22  ;;  %v3140_v46 = vpop.f32.mrb[21].mxu0  ;;  %v5813_v40 = vpop.f32.mrb[21].mxu1 }
 0x512   : > { %6008 = vst.msk [vmem:[%s10705_s4 + $0xe0] sm:$0xff] %vm1167_vm1, %v5944_v42  ;;  %6010 = vst.msk [vmem:[%s10705_s4 + $0xf0] sm:$0xff] %vm1167_vm1, %v5946_v55  ;;  %v5949_v60 = vld [vmem:[#allocation2 + $0x108] sm:$0xff]  ;;  %v5951_v1 = vld [vmem:[#allocation2 + $0x118] sm:$0xff]  ;;  %v7485_v43 = vadd.f32 %v10685_v22, %v3140_v46  ;;  %v7517_v49 = vadd.f32 %v10685_v22, %v5813_v40 }
 0x513   : > { %6013 = vst.msk [vmem:[%s10705_s4 + $0x108] sm:$0xff] %vm1167_vm1, %v5949_v60  ;;  %6015 = vst.msk [vmem:[%s10705_s4 + $0x118] sm:$0xff] %vm1167_vm1, %v5951_v1 }
 0x514   : > { %v5948_v41 = vld [vmem:[#allocation2 + $0x100] sm:$0xff]  ;;  %v5950_v30 = vld [vmem:[#allocation2 + $0x110] sm:$0xff]  ;;  %3231 = vst.msk [vmem:[#allocation2 + $0x148] sm:$0xff] %vm1167_vm1, %v7484_v50  ;;  %5905 = vst.msk [vmem:[#allocation2 + $0x158] sm:$0xff] %vm1167_vm1, %v7516_v3  ;;  %v7079_v39 = vpop.f32.mrb[22].mxu0  ;;  %v7403_v14 = vpop.f32.mrb[22].mxu1 }
 0x515   : > { %6012 = vst.msk [vmem:[%s10705_s4 + $0x100] sm:$0xff] %vm1167_vm1, %v5948_v41  ;;  %6014 = vst.msk [vmem:[%s10705_s4 + $0x110] sm:$0xff] %vm1167_vm1, %v5950_v30  ;;  %v7486_v27 = vadd.f32 %v7079_v39, %v10685_v22  ;;  %v7518_v37 = vadd.f32 %v7403_v14, %v10685_v22  ;;  %v3152_v4 = vpop.f32.mrb[23].mxu0  ;;  %v5825_v16 = vpop.f32.mrb[23].mxu1 }
 0x516   : > { %3230 = vst.msk [vmem:[#allocation2 + $0x140] sm:$0xff] %vm1167_vm1, %v7485_v43  ;;  %5904 = vst.msk [vmem:[#allocation2 + $0x150] sm:$0xff] %vm1167_vm1, %v7517_v49  ;;  %v5953_v11 = vld [vmem:[#allocation2 + $0x128] sm:$0xff]  ;;  %v5955_v23 = vld [vmem:[#allocation2 + $0x138] sm:$0xff]  ;;  %v7487_v25 = vadd.f32 %v10685_v22, %v3152_v4  ;;  %v7519_v62 = vadd.f32 %v10685_v22, %v5825_v16 }
 0x517   : > { %6017 = vst.msk [vmem:[%s10705_s4 + $0x128] sm:$0xff] %vm1167_vm1, %v5953_v11  ;;  %6019 = vst.msk [vmem:[%s10705_s4 + $0x138] sm:$0xff] %vm1167_vm1, %v5955_v23 }
 0x518   : > { %v5952_v51 = vld [vmem:[#allocation2 + $0x120] sm:$0xff]  ;;  %v5954_v19 = vld [vmem:[#allocation2 + $0x130] sm:$0xff]  ;;  %3233 = vst.msk [vmem:[#allocation2 + $0x168] sm:$0xff] %vm1167_vm1, %v7486_v27  ;;  %5907 = vst.msk [vmem:[#allocation2 + $0x178] sm:$0xff] %vm1167_vm1, %v7518_v37  ;;  %v7082_v26 = vpop.f32.mrb[24].mxu0  ;;  %v7406_v9 = vpop.f32.mrb[24].mxu1 }
 0x519   : > { %6016 = vst.msk [vmem:[%s10705_s4 + $0x120] sm:$0xff] %vm1167_vm1, %v5952_v51  ;;  %6018 = vst.msk [vmem:[%s10705_s4 + $0x130] sm:$0xff] %vm1167_vm1, %v5954_v19  ;;  %v7488_v61 = vadd.f32 %v7082_v26, %v10685_v22  ;;  %v7520_v0 = vadd.f32 %v7406_v9, %v10685_v22  ;;  %v3164_v57 = vpop.f32.mrb[25].mxu0  ;;  %v5837_v44 = vpop.f32.mrb[25].mxu1 }
 0x51a   : > { %3232 = vst.msk [vmem:[#allocation2 + $0x160] sm:$0xff] %vm1167_vm1, %v7487_v25  ;;  %5906 = vst.msk [vmem:[#allocation2 + $0x170] sm:$0xff] %vm1167_vm1, %v7519_v62  ;;  %v7489_v20 = vadd.f32 %v10685_v22, %v3164_v57  ;;  %v7521_v18 = vadd.f32 %v10685_v22, %v5837_v44 }
 0x51b   : > { %v5957_v17 = vld [vmem:[#allocation2 + $0x148] sm:$0xff]  ;;  %v5959_v53 = vld [vmem:[#allocation2 + $0x158] sm:$0xff]  ;;  %3235 = vst.msk [vmem:[#allocation2 + $0x188] sm:$0xff] %vm1167_vm1, %v7488_v61  ;;  %5909 = vst.msk [vmem:[#allocation2 + $0x198] sm:$0xff] %vm1167_vm1, %v7520_v0 }
 0x51c   : > { %6021 = vst.msk [vmem:[%s10705_s4 + $0x148] sm:$0xff] %vm1167_vm1, %v5957_v17  ;;  %6023 = vst.msk [vmem:[%s10705_s4 + $0x158] sm:$0xff] %vm1167_vm1, %v5959_v53  ;;  %v7085_v36 = vpop.f32.mrb[26].mxu0  ;;  %v7409_v52 = vpop.f32.mrb[26].mxu1 }
 0x51d   : > { %v5956_v32 = vld [vmem:[#allocation2 + $0x140] sm:$0xff]  ;;  %v5958_v5 = vld [vmem:[#allocation2 + $0x150] sm:$0xff]  ;;  %3234 = vst.msk [vmem:[#allocation2 + $0x180] sm:$0xff] %vm1167_vm1, %v7489_v20  ;;  %5908 = vst.msk [vmem:[#allocation2 + $0x190] sm:$0xff] %vm1167_vm1, %v7521_v18  ;;  %v7490_v28 = vadd.f32 %v7085_v36, %v10685_v22  ;;  %v7522_v24 = vadd.f32 %v7409_v52, %v10685_v22  ;;  %v3176_v63 = vpop.f32.mrb[27].mxu0  ;;  %v5849_v7 = vpop.f32.mrb[27].mxu1 }
 0x51e   : > { %6020 = vst.msk [vmem:[%s10705_s4 + $0x140] sm:$0xff] %vm1167_vm1, %v5956_v32  ;;  %6022 = vst.msk [vmem:[%s10705_s4 + $0x150] sm:$0xff] %vm1167_vm1, %v5958_v5  ;;  %v7491_v59 = vadd.f32 %v10685_v22, %v3176_v63  ;;  %v7523_v8 = vadd.f32 %v10685_v22, %v5849_v7 }
 0x51f   : > { %v5961_v31 = vld [vmem:[#allocation2 + $0x168] sm:$0xff]  ;;  %v5963_v45 = vld [vmem:[#allocation2 + $0x178] sm:$0xff]  ;;  %3237 = vst.msk [vmem:[#allocation2 + $0x1a8] sm:$0xff] %vm1167_vm1, %v7490_v28  ;;  %5911 = vst.msk [vmem:[#allocation2 + $0x1b8] sm:$0xff] %vm1167_vm1, %v7522_v24 }
 0x520   : > { %6025 = vst.msk [vmem:[%s10705_s4 + $0x168] sm:$0xff] %vm1167_vm1, %v5961_v31  ;;  %6027 = vst.msk [vmem:[%s10705_s4 + $0x178] sm:$0xff] %vm1167_vm1, %v5963_v45  ;;  %v7088_v34 = vpop.f32.mrb[28].mxu0  ;;  %v7412_v21 = vpop.f32.mrb[28].mxu1 }
 0x521   : > { %v5960_v29 = vld [vmem:[#allocation2 + $0x160] sm:$0xff]  ;;  %v5962_v6 = vld [vmem:[#allocation2 + $0x170] sm:$0xff]  ;;  %3236 = vst.msk [vmem:[#allocation2 + $0x1a0] sm:$0xff] %vm1167_vm1, %v7491_v59  ;;  %5910 = vst.msk [vmem:[#allocation2 + $0x1b0] sm:$0xff] %vm1167_vm1, %v7523_v8  ;;  %v7492_v56 = vadd.f32 %v7088_v34, %v10685_v22  ;;  %v7524_v10 = vadd.f32 %v7412_v21, %v10685_v22  ;;  %v3188_v2 = vpop.f32.mrb[29].mxu0  ;;  %v5861_v12 = vpop.f32.mrb[29].mxu1 }
 0x522   : > { %6024 = vst.msk [vmem:[%s10705_s4 + $0x160] sm:$0xff] %vm1167_vm1, %v5960_v29  ;;  %6026 = vst.msk [vmem:[%s10705_s4 + $0x170] sm:$0xff] %vm1167_vm1, %v5962_v6  ;;  %v5965_v54 = vld [vmem:[#allocation2 + $0x188] sm:$0xff]  ;;  %v5967_v48 = vld [vmem:[#allocation2 + $0x198] sm:$0xff]  ;;  %v7493_v47 = vadd.f32 %v10685_v22, %v3188_v2  ;;  %v7525_v13 = vadd.f32 %v10685_v22, %v5861_v12 }
 0x523   : > { %6029 = vst.msk [vmem:[%s10705_s4 + $0x188] sm:$0xff] %vm1167_vm1, %v5965_v54  ;;  %6031 = vst.msk [vmem:[%s10705_s4 + $0x198] sm:$0xff] %vm1167_vm1, %v5967_v48 }
 0x524   : > { %v5964_v35 = vld [vmem:[#allocation2 + $0x180] sm:$0xff]  ;;  %v5966_v33 = vld [vmem:[#allocation2 + $0x190] sm:$0xff]  ;;  %3239 = vst.msk [vmem:[#allocation2 + $0x1c8] sm:$0xff] %vm1167_vm1, %v7492_v56  ;;  %5913 = vst.msk [vmem:[#allocation2 + $0x1d8] sm:$0xff] %vm1167_vm1, %v7524_v10  ;;  %v7091_v15 = vpop.f32.mrb[30].mxu0  ;;  %v7415_v42 = vpop.f32.mrb[30].mxu1 }
 0x525   : > { %6028 = vst.msk [vmem:[%s10705_s4 + $0x180] sm:$0xff] %vm1167_vm1, %v5964_v35  ;;  %6030 = vst.msk [vmem:[%s10705_s4 + $0x190] sm:$0xff] %vm1167_vm1, %v5966_v33  ;;  %v7494_v55 = vadd.f32 %v7091_v15, %v10685_v22  ;;  %v7526_v38 = vadd.f32 %v7415_v42, %v10685_v22  ;;  %v3200_v58 = vpop.f32.mrb[31].mxu0  ;;  %v5873_v50 = vpop.f32.mrb[31].mxu1 }
 0x526   : > { %3238 = vst.msk [vmem:[#allocation2 + $0x1c0] sm:$0xff] %vm1167_vm1, %v7493_v47  ;;  %5912 = vst.msk [vmem:[#allocation2 + $0x1d0] sm:$0xff] %vm1167_vm1, %v7525_v13  ;;  %v5969_v3 = vld [vmem:[#allocation2 + $0x1a8] sm:$0xff]  ;;  %v5971_v46 = vld [vmem:[#allocation2 + $0x1b8] sm:$0xff]  ;;  %v7495_v40 = vadd.f32 %v10685_v22, %v3200_v58  ;;  %v7527_v60 = vadd.f32 %v10685_v22, %v5873_v50 }
 0x527   : > { %6033 = vst.msk [vmem:[%s10705_s4 + $0x1a8] sm:$0xff] %vm1167_vm1, %v5969_v3  ;;  %6035 = vst.msk [vmem:[%s10705_s4 + $0x1b8] sm:$0xff] %vm1167_vm1, %v5971_v46 }
 0x528   : > { %v5968_v1 = vld [vmem:[#allocation2 + $0x1a0] sm:$0xff]  ;;  %v5970_v43 = vld [vmem:[#allocation2 + $0x1b0] sm:$0xff]  ;;  %3241 = vst.msk [vmem:[#allocation2 + $0x1e8] sm:$0xff] %vm1167_vm1, %v7494_v55  ;;  %5915 = vst.msk [vmem:[#allocation2 + $0x1f8] sm:$0xff] %vm1167_vm1, %v7526_v38 }
 0x529   : > { %6032 = vst.msk [vmem:[%s10705_s4 + $0x1a0] sm:$0xff] %vm1167_vm1, %v5968_v1  ;;  %6034 = vst.msk [vmem:[%s10705_s4 + $0x1b0] sm:$0xff] %vm1167_vm1, %v5970_v43 }
 0x52a   : > { %3240 = vst.msk [vmem:[#allocation2 + $0x1e0] sm:$0xff] %vm1167_vm1, %v7495_v40  ;;  %5914 = vst.msk [vmem:[#allocation2 + $0x1f0] sm:$0xff] %vm1167_vm1, %v7527_v60 }
 0x52b   : > { %v5973_v22 = vld [vmem:[#allocation2 + $0x1c8] sm:$0xff]  ;;  %v5975_v49 = vld [vmem:[#allocation2 + $0x1d8] sm:$0xff] }
 0x52c   : > { %6037 = vst.msk [vmem:[%s10705_s4 + $0x1c8] sm:$0xff] %vm1167_vm1, %v5973_v22  ;;  %6039 = vst.msk [vmem:[%s10705_s4 + $0x1d8] sm:$0xff] %vm1167_vm1, %v5975_v49 }
 0x52d   : > { %v5972_v41 = vld [vmem:[#allocation2 + $0x1c0] sm:$0xff]  ;;  %v5974_v30 = vld [vmem:[#allocation2 + $0x1d0] sm:$0xff] }
 0x52e   : > { %6036 = vst.msk [vmem:[%s10705_s4 + $0x1c0] sm:$0xff] %vm1167_vm1, %v5972_v41  ;;  %6038 = vst.msk [vmem:[%s10705_s4 + $0x1d0] sm:$0xff] %vm1167_vm1, %v5974_v30 }
 0x52f   : > { %v5977_v39 = vld [vmem:[#allocation2 + $0x1e8] sm:$0xff]  ;;  %v5979_v14 = vld [vmem:[#allocation2 + $0x1f8] sm:$0xff] }
 0x530   : > { %6041 = vst.msk [vmem:[%s10705_s4 + $0x1e8] sm:$0xff] %vm1167_vm1, %v5977_v39  ;;  %6043 = vst.msk [vmem:[%s10705_s4 + $0x1f8] sm:$0xff] %vm1167_vm1, %v5979_v14 }
 0x531   : > { %v5976_v27 = vld [vmem:[#allocation2 + $0x1e0] sm:$0xff]  ;;  %v5978_v37 = vld [vmem:[#allocation2 + $0x1f0] sm:$0xff] }
 0x532   : > { %6040 = vst.msk [vmem:[%s10705_s4 + $0x1e0] sm:$0xff] %vm1167_vm1, %v5976_v27  ;;  %6042 = vst.msk [vmem:[%s10705_s4 + $0x1f0] sm:$0xff] %vm1167_vm1, %v5978_v37 }
 0x533 PF: > { %s13_s14 = sadd.s32 1, %s7910_s14   ;;  %s11678_s12 = smov %s7906_s13 }
 0x534   : > { %p10_p5 = scmp.ge.s32.totalorder %s13_s14, 4   ;;  %s11679_s13 = smov %s11681_s15 }
 0x536   :  { %12 = sbr.rel (!%p10_p5) target bundleno = 2 (0x2), region = 67 }

</bundles_post_ra>
